<compile_context>
chip_gen: v5e
topology: v5e:2x2
jax: 0.10.0
libtpu: 0.0.40
codegen_flags: <defaults>
</compile_context>

<pallas_src>
import functools

import jax
import jax.numpy as jnp
from jax.experimental import pallas as pl
from jax.experimental.pallas import tpu as pltpu


# ---------------------------------------------------------------------------
# Pallas kernels
# ---------------------------------------------------------------------------

def _conv_pool_relu_kernel(p_ref, w_ref, b_ref, o_ref):
    """Fused conv-as-im2col + bias + 2x2/stride-2 maxpool + ReLU.

    p_ref: (4, K, pt)  im2col patches pre-grouped by position inside the 2x2
           pool window; column p indexes (batch, pooled_row, pooled_col).
    w_ref: (Cout, K); b_ref: (Cout, 1); o_ref: (Cout, pt)  (lane-dense output).
    Weights/bias use constant index_maps and stay VMEM-resident across the
    pixel-tile grid.
    """
    w = w_ref[...]
    y0 = jnp.dot(w, p_ref[0], preferred_element_type=jnp.float32)
    y1 = jnp.dot(w, p_ref[1], preferred_element_type=jnp.float32)
    y2 = jnp.dot(w, p_ref[2], preferred_element_type=jnp.float32)
    y3 = jnp.dot(w, p_ref[3], preferred_element_type=jnp.float32)
    m = jnp.maximum(jnp.maximum(y0, y1), jnp.maximum(y2, y3))
    # bias is per-output-channel, so max-then-add == add-then-max.
    o_ref[...] = jnp.maximum(m + b_ref[...], 0.0)


def _grid_sample_kernel(ixy_ref, img_ref, wcol_ref, hrow_ref, o_ref, *, C, H):
    """Per-batch F.grid_sample (bilinear, zeros padding, align_corners=True).

    Bilinear weights are the tent function max(0, 1 - |index - coord|), which
    realizes zeros padding for free (no in-range index gets weight).  The
    sampling is factored: the column weights Gx (W, HW) are contracted on the
    MXU against the image reshaped to (C*H, W); the row weights Gy (H, HW) are
    then applied elementwise per channel and reduced over H (sublane sum).

    ixy_ref : (N, 2, HW)  pixel-space sample coords [ix; iy]   (resident).
    img_ref : (N, C*H, W) input images, rows = (c, h)          (resident).
    wcol_ref: (W, HW)     column-index constant (float)        (resident).
    hrow_ref: (H, HW)     row-index constant (float)           (resident).
    o_ref   : (1, C, HW)  sampled output for this batch (lane-dense).
    """
    b = pl.program_id(0)
    coords = ixy_ref[b]                            # (2, HW)
    ix = coords[0:1, :]                            # (1, HW)
    iy = coords[1:2, :]

    # Column interpolation weights + the heavy (C*H, W) @ (W, HW) contraction.
    gmx = jnp.maximum(1.0 - jnp.abs(wcol_ref[...] - ix), 0.0)          # (W, HW)
    t = jnp.dot(img_ref[b], gmx, preferred_element_type=jnp.float32)   # (C*H, HW)

    # Row interpolation weights; per-channel weighted reduce over H.
    gmy = jnp.maximum(1.0 - jnp.abs(hrow_ref[...] - iy), 0.0)          # (H, HW)
    for ci in range(C):
        o_ref[0, ci:ci + 1, :] = jnp.sum(t[ci * H:(ci + 1) * H, :] * gmy,
                                         axis=0, keepdims=True)


# ---------------------------------------------------------------------------
# Wrappers (Pallas plumbing + tiny XLA glue)
# ---------------------------------------------------------------------------

def _pool_patches_cnhw(x_cnhw, kh, kw):
    """im2col patches for a VALID conv, pre-grouped by 2x2 pool-window slot.

    x_cnhw: (Cin, N, H, W).  Returns pt: (4, K, P) with K = Cin*kh*kw (column
    order (cin, ki, kj), matching weight.reshape(Cout, -1)) and P = N*Hp*Wp
    pooled pixels in (n, ip, jp) order.  Built directly in this layout: the
    final reshape only merges adjacent axes, so no relayout transpose is
    emitted.  Odd conv-output extents drop the last row/col (MaxPool2d floor).
    """
    cin, n, hin, win = x_cnhw.shape
    ho, wo = hin - kh + 1, win - kw + 1
    hp, wp = ho // 2, wo // 2
    slots = []
    for di in range(2):
        for dj in range(2):
            taps = [x_cnhw[:, :, di + ki:di + ki + 2 * hp:2,
                           dj + kj:dj + kj + 2 * wp:2]
                    for ki in range(kh) for kj in range(kw)]
            slots.append(jnp.stack(taps, axis=1))    # (Cin, kh*kw, N, hp, wp)
    pt = jnp.stack(slots, axis=0)                    # (4, Cin, kh*kw, N, hp, wp)
    return pt.reshape(4, cin * kh * kw, n * hp * wp), (hp, wp)


def _conv_pool_relu(patches, wmat, bias):
    """pallas_call wrapper for the fused conv+pool+ReLU kernel."""
    _, K, P = patches.shape
    cout = wmat.shape[0]
    pt = 256 if P > 256 else P            # lane tile of the pooled-pixel axis
    return pl.pallas_call(
        _conv_pool_relu_kernel,
        out_shape=jax.ShapeDtypeStruct((cout, P), jnp.float32),
        grid=(pl.cdiv(P, pt),),
        in_specs=[
            pl.BlockSpec((4, K, pt), lambda p: (0, 0, p)),
            pl.BlockSpec((cout, K), lambda p: (0, 0)),      # resident weights
            pl.BlockSpec((cout, 1), lambda p: (0, 0)),      # resident bias
        ],
        out_specs=pl.BlockSpec((cout, pt), lambda p: (0, p)),
        compiler_params=pltpu.CompilerParams(
            dimension_semantics=("parallel",)),
    )(patches, wmat, bias.reshape(cout, 1))


def stn_forward(x, params):
    """Forward pass of SpatialTransformerNetwork.  x: (N, C, H, W) float32."""
    n, c, h, w = x.shape
    hw = h * w
    w1, b1 = params["w1"], params["b1"]          # (8, C, 7, 7), (8,)
    w2, b2 = params["w2"], params["b2"]          # (10, 8, 5, 5), (10,)
    fw1, fb1 = params["fw1"], params["fb1"]      # (size, 32), (32,)
    fw2, fb2 = params["fw2"], params["fb2"]      # (32, 6), (6,)

    # ---- localization stage 1: Conv(7x7) + MaxPool(2,2) + ReLU, one kernel.
    x_cnhw = jnp.transpose(x, (1, 0, 2, 3))                      # 32 KB copy
    pt1, (hp1, wp1) = _pool_patches_cnhw(x_cnhw, 7, 7)
    pooled1 = _conv_pool_relu(pt1, w1.reshape(8, c * 49), b1)    # (8, N*hp1*wp1)

    # ---- localization stage 2: Conv(5x5) + MaxPool(2,2) + ReLU.  The stage-1
    # output is already in (Cin2, N, H2, W2) layout -> no relayout in between.
    pt2, (hp2, wp2) = _pool_patches_cnhw(pooled1.reshape(8, n, hp1, wp1), 5, 5)
    pooled2 = _conv_pool_relu(pt2, w2.reshape(10, 8 * 25), b2)   # (10, N*hp2*wp2)

    # ---- fc_loc + affine_grid + unnormalization: a few hundred FLOPs total,
    # hoisted out of the sampling kernel (perf review) and left to XLA, which
    # fuses them into one tiny matmul+elementwise kernel.
    xs = jnp.transpose(pooled2.reshape(10, n, hp2, wp2),
                       (1, 0, 2, 3)).reshape(n, -1)              # NCHW flatten
    hidden = jnp.maximum(xs @ fw1 + fb1, 0.0)
    theta = hidden @ fw2 + fb2                                   # (N, 6)

    pidx = jnp.arange(hw, dtype=jnp.int32)
    jj = (pidx % w).astype(jnp.float32)
    ii = (pidx // w).astype(jnp.float32)
    xb = jj * (2.0 / (w - 1)) - 1.0      # align_corners=True base grid
    yb = ii * (2.0 / (h - 1)) - 1.0      # (H, W >= 2 assumed; PyTorch special-
    gx = theta[:, 0:1] * xb + theta[:, 1:2] * yb + theta[:, 2:3]   # cases 1)
    gy = theta[:, 3:4] * xb + theta[:, 4:5] * yb + theta[:, 5:6]
    ix = (gx + 1.0) * (0.5 * (w - 1))    # unnormalize (align_corners=True)
    iy = (gy + 1.0) * (0.5 * (h - 1))
    ixy = jnp.stack([ix, iy], axis=1)                            # (N, 2, HW)

    # Batch-invariant constants, VMEM-resident across the grid (constant maps).
    wcol = jnp.broadcast_to(jnp.arange(w, dtype=jnp.float32)[:, None], (w, hw))
    hrow = jnp.broadcast_to(jnp.arange(h, dtype=jnp.float32)[:, None], (h, hw))
    img3 = x.reshape(n, c * h, w)

    out_f = pl.pallas_call(
        functools.partial(_grid_sample_kernel, C=c, H=h),
        out_shape=jax.ShapeDtypeStruct((n, c, hw), jnp.float32),
        grid=(n,),
        in_specs=[
            pl.BlockSpec((n, 2, hw), lambda b: (0, 0, 0)),       # coords (resident)
            pl.BlockSpec((n, c * h, w), lambda b: (0, 0, 0)),    # images (resident)
            pl.BlockSpec((w, hw), lambda b: (0, 0)),             # wcol   (resident)
            pl.BlockSpec((h, hw), lambda b: (0, 0)),             # hrow   (resident)
        ],
        out_specs=pl.BlockSpec((1, c, hw), lambda b: (b, 0, 0)),
        compiler_params=pltpu.CompilerParams(
            dimension_semantics=("parallel",)),                  # 2 TCs on v7x
    )(ixy, img3, wcol, hrow)
    return out_f.reshape(n, c, h, w)


# ---------------------------------------------------------------------------
# main
# ---------------------------------------------------------------------------

if __name__ == "__main__":
    # NOTE: spatial size must be >= 23 for the localization net to produce a
    # non-empty feature map (7x7 conv, pool/2, 5x5 conv, pool/2); use 32.
    N, C, H, W = 2, 4, 32, 32
    h_loc = ((H - 6) // 2 - 4) // 2
    w_loc = ((W - 6) // 2 - 4) // 2
    size = 10 * h_loc * w_loc                     # == np.product(out.shape[1:])

    key = jax.random.PRNGKey(0)
    ks = jax.random.split(key, 9)
    params = {
        "w1": jax.random.normal(ks[0], (8, C, 7, 7), jnp.float32) * (C * 49) ** -0.5,
        "b1": jax.random.normal(ks[1], (8,), jnp.float32) * 0.1,
        "w2": jax.random.normal(ks[2], (10, 8, 5, 5), jnp.float32) * (8 * 25) ** -0.5,
        "b2": jax.random.normal(ks[3], (10,), jnp.float32) * 0.1,
        "fw1": jax.random.normal(ks[4], (size, 32), jnp.float32) * size ** -0.5,
        "fb1": jax.random.normal(ks[5], (32,), jnp.float32) * 0.1,
        "fw2": jax.random.normal(ks[6], (32, 6), jnp.float32) * 32 ** -0.5,
        "fb2": jax.random.normal(ks[7], (6,), jnp.float32) * 0.1,
    }
    x = jax.random.normal(ks[8], (N, C, H, W), jnp.float32)

    y = jax.jit(stn_forward)(x, params)
    jax.block_until_ready(y)
    assert y.shape == (N, C, H, W) and y.dtype == jnp.float32
    print("KERNEL_OK")
</pallas_src>

<mosaic_0001>
module attributes {stable_mosaic.version = 11 : i64} {
  func.func @_conv_pool_relu_kernel(%arg0: i32, %arg1: memref<4x196x256xf32, #tpu.memory_space<vmem>>, %arg2: memref<8x196xf32, #tpu.memory_space<vmem>>, %arg3: memref<8x1xf32, #tpu.memory_space<vmem>>, %arg4: memref<8x256xf32, #tpu.memory_space<vmem>>) attributes {dimension_semantics = [#tpu.dimension_semantics<parallel>], iteration_bounds = array<i64: 2>, scalar_prefetch = 0 : i64, scratch_operands = 0 : i64, tpu.core_type = #tpu.core_type<tc>, window_params = [{transform_indices = @transform_0, window_bounds = array<i64: 4, 196, 256>}, {pipeline_mode = #tpu.pipeline_mode<synchronous>, transform_indices = @transform_1, window_bounds = array<i64: 8, 196>}, {pipeline_mode = #tpu.pipeline_mode<synchronous>, transform_indices = @transform_2, window_bounds = array<i64: 8, 1>}, {transform_indices = @transform_3, window_bounds = array<i64: 8, 256>}]} {
    %c0 = arith.constant 0 : index
    %c0_0 = arith.constant 0 : index
    %0 = vector.load %arg2[%c0, %c0_0] : memref<8x196xf32, #tpu.memory_space<vmem>>, vector<8x196xf32>
    %c0_1 = arith.constant 0 : index
    %c0_2 = arith.constant 0 : index
    %c0_3 = arith.constant 0 : index
    %1 = vector.load %arg1[%c0_1, %c0_2, %c0_3] : memref<4x196x256xf32, #tpu.memory_space<vmem>>, vector<1x196x256xf32>
    %2 = vector.shape_cast %1 : vector<1x196x256xf32> to vector<196x256xf32>
    %cst = arith.constant dense<0.000000e+00> : vector<8x256xf32>
    %3 = tpu.matmul %0, %2, %cst {dimension_numbers = #tpu.dot_dimension_numbers<[1], [0], [0], [1], [0, 0, 1, 1], [], []>} : vector<8x196xf32>, vector<196x256xf32>, vector<8x256xf32> -> vector<8x256xf32>
    %c1 = arith.constant 1 : index
    %c0_4 = arith.constant 0 : index
    %c0_5 = arith.constant 0 : index
    %4 = vector.load %arg1[%c1, %c0_4, %c0_5] : memref<4x196x256xf32, #tpu.memory_space<vmem>>, vector<1x196x256xf32>
    %5 = vector.shape_cast %4 : vector<1x196x256xf32> to vector<196x256xf32>
    %cst_6 = arith.constant dense<0.000000e+00> : vector<8x256xf32>
    %6 = tpu.matmul %0, %5, %cst_6 {dimension_numbers = #tpu.dot_dimension_numbers<[1], [0], [0], [1], [0, 0, 1, 1], [], []>} : vector<8x196xf32>, vector<196x256xf32>, vector<8x256xf32> -> vector<8x256xf32>
    %c2 = arith.constant 2 : index
    %c0_7 = arith.constant 0 : index
    %c0_8 = arith.constant 0 : index
    %7 = vector.load %arg1[%c2, %c0_7, %c0_8] : memref<4x196x256xf32, #tpu.memory_space<vmem>>, vector<1x196x256xf32>
    %8 = vector.shape_cast %7 : vector<1x196x256xf32> to vector<196x256xf32>
    %cst_9 = arith.constant dense<0.000000e+00> : vector<8x256xf32>
    %9 = tpu.matmul %0, %8, %cst_9 {dimension_numbers = #tpu.dot_dimension_numbers<[1], [0], [0], [1], [0, 0, 1, 1], [], []>} : vector<8x196xf32>, vector<196x256xf32>, vector<8x256xf32> -> vector<8x256xf32>
    %c3 = arith.constant 3 : index
    %c0_10 = arith.constant 0 : index
    %c0_11 = arith.constant 0 : index
    %10 = vector.load %arg1[%c3, %c0_10, %c0_11] : memref<4x196x256xf32, #tpu.memory_space<vmem>>, vector<1x196x256xf32>
    %11 = vector.shape_cast %10 : vector<1x196x256xf32> to vector<196x256xf32>
    %cst_12 = arith.constant dense<0.000000e+00> : vector<8x256xf32>
    %12 = tpu.matmul %0, %11, %cst_12 {dimension_numbers = #tpu.dot_dimension_numbers<[1], [0], [0], [1], [0, 0, 1, 1], [], []>} : vector<8x196xf32>, vector<196x256xf32>, vector<8x256xf32> -> vector<8x256xf32>
    %13 = arith.maximumf %3, %6 : vector<8x256xf32>
    %14 = arith.maximumf %9, %12 : vector<8x256xf32>
    %15 = arith.maximumf %13, %14 : vector<8x256xf32>
    %c0_13 = arith.constant 0 : index
    %c0_14 = arith.constant 0 : index
    %16 = vector.load %arg3[%c0_13, %c0_14] : memref<8x1xf32, #tpu.memory_space<vmem>>, vector<8x1xf32>
    %17 = vector.broadcast %16 : vector<8x1xf32> to vector<8x256xf32>
    %18 = arith.addf %15, %17 : vector<8x256xf32>
    %cst_15 = arith.constant 0.000000e+00 : f32
    %19 = vector.broadcast %cst_15 : f32 to vector<8x256xf32>
    %20 = arith.maximumf %18, %19 : vector<8x256xf32>
    %c0_16 = arith.constant 0 : index
    %c0_17 = arith.constant 0 : index
    %21 = vector.load %arg4[%c0_16, %c0_17] : memref<8x256xf32, #tpu.memory_space<vmem>>, vector<8x256xf32>
    tpu.vector_store %arg4[%c0_16, %c0_17], %20 {strides = array<i32>} : memref<8x256xf32, #tpu.memory_space<vmem>>, vector<8x256xf32>,
    return
  }
  func.func @transform_0(%arg0: i32) -> (i32, i32, i32) {
    %c0_i32 = arith.constant 0 : i32
    %c0_i32_0 = arith.constant 0 : i32
    %c0_i32_1 = arith.constant 0 : i32
    return %c0_i32, %c0_i32_0, %arg0 : i32, i32, i32
  }
  func.func @transform_1(%arg0: i32) -> (i32, i32) {
    %c0_i32 = arith.constant 0 : i32
    %c0_i32_0 = arith.constant 0 : i32
    %c0_i32_1 = arith.constant 0 : i32
    return %c0_i32, %c0_i32_0 : i32, i32
  }
  func.func @transform_2(%arg0: i32) -> (i32, i32) {
    %c0_i32 = arith.constant 0 : i32
    %c0_i32_0 = arith.constant 0 : i32
    %c0_i32_1 = arith.constant 0 : i32
    return %c0_i32, %c0_i32_0 : i32, i32
  }
  func.func @transform_3(%arg0: i32) -> (i32, i32) {
    %c0_i32 = arith.constant 0 : i32
    %c0_i32_0 = arith.constant 0 : i32
    return %c0_i32, %arg0 : i32, i32
  }
}

module attributes {stable_mosaic.version = 11 : i64} {
  func.func @_conv_pool_relu_kernel(%arg0: i32, %arg1: memref<4x200x32xf32, #tpu.memory_space<vmem>>, %arg2: memref<10x200xf32, #tpu.memory_space<vmem>>, %arg3: memref<10x1xf32, #tpu.memory_space<vmem>>, %arg4: memref<10x32xf32, #tpu.memory_space<vmem>>) attributes {dimension_semantics = [#tpu.dimension_semantics<parallel>], iteration_bounds = array<i64: 1>, scalar_prefetch = 0 : i64, scratch_operands = 0 : i64, tpu.core_type = #tpu.core_type<tc>, window_params = [{transform_indices = @transform_0, window_bounds = array<i64: 4, 200, 32>}, {pipeline_mode = #tpu.pipeline_mode<synchronous>, transform_indices = @transform_1, window_bounds = array<i64: 10, 200>}, {pipeline_mode = #tpu.pipeline_mode<synchronous>, transform_indices = @transform_2, window_bounds = array<i64: 10, 1>}, {transform_indices = @transform_3, window_bounds = array<i64: 10, 32>}]} {
    %c0 = arith.constant 0 : index
    %c0_0 = arith.constant 0 : index
    %0 = vector.load %arg2[%c0, %c0_0] : memref<10x200xf32, #tpu.memory_space<vmem>>, vector<10x200xf32>
    %c0_1 = arith.constant 0 : index
    %c0_2 = arith.constant 0 : index
    %c0_3 = arith.constant 0 : index
    %1 = vector.load %arg1[%c0_1, %c0_2, %c0_3] : memref<4x200x32xf32, #tpu.memory_space<vmem>>, vector<1x200x32xf32>
    %2 = vector.shape_cast %1 : vector<1x200x32xf32> to vector<200x32xf32>
    %cst = arith.constant dense<0.000000e+00> : vector<10x32xf32>
    %3 = tpu.matmul %0, %2, %cst {dimension_numbers = #tpu.dot_dimension_numbers<[1], [0], [0], [1], [0, 0, 1, 1], [], []>} : vector<10x200xf32>, vector<200x32xf32>, vector<10x32xf32> -> vector<10x32xf32>
    %c1 = arith.constant 1 : index
    %c0_4 = arith.constant 0 : index
    %c0_5 = arith.constant 0 : index
    %4 = vector.load %arg1[%c1, %c0_4, %c0_5] : memref<4x200x32xf32, #tpu.memory_space<vmem>>, vector<1x200x32xf32>
    %5 = vector.shape_cast %4 : vector<1x200x32xf32> to vector<200x32xf32>
    %cst_6 = arith.constant dense<0.000000e+00> : vector<10x32xf32>
    %6 = tpu.matmul %0, %5, %cst_6 {dimension_numbers = #tpu.dot_dimension_numbers<[1], [0], [0], [1], [0, 0, 1, 1], [], []>} : vector<10x200xf32>, vector<200x32xf32>, vector<10x32xf32> -> vector<10x32xf32>
    %c2 = arith.constant 2 : index
    %c0_7 = arith.constant 0 : index
    %c0_8 = arith.constant 0 : index
    %7 = vector.load %arg1[%c2, %c0_7, %c0_8] : memref<4x200x32xf32, #tpu.memory_space<vmem>>, vector<1x200x32xf32>
    %8 = vector.shape_cast %7 : vector<1x200x32xf32> to vector<200x32xf32>
    %cst_9 = arith.constant dense<0.000000e+00> : vector<10x32xf32>
    %9 = tpu.matmul %0, %8, %cst_9 {dimension_numbers = #tpu.dot_dimension_numbers<[1], [0], [0], [1], [0, 0, 1, 1], [], []>} : vector<10x200xf32>, vector<200x32xf32>, vector<10x32xf32> -> vector<10x32xf32>
    %c3 = arith.constant 3 : index
    %c0_10 = arith.constant 0 : index
    %c0_11 = arith.constant 0 : index
    %10 = vector.load %arg1[%c3, %c0_10, %c0_11] : memref<4x200x32xf32, #tpu.memory_space<vmem>>, vector<1x200x32xf32>
    %11 = vector.shape_cast %10 : vector<1x200x32xf32> to vector<200x32xf32>
    %cst_12 = arith.constant dense<0.000000e+00> : vector<10x32xf32>
    %12 = tpu.matmul %0, %11, %cst_12 {dimension_numbers = #tpu.dot_dimension_numbers<[1], [0], [0], [1], [0, 0, 1, 1], [], []>} : vector<10x200xf32>, vector<200x32xf32>, vector<10x32xf32> -> vector<10x32xf32>
    %13 = arith.maximumf %3, %6 : vector<10x32xf32>
    %14 = arith.maximumf %9, %12 : vector<10x32xf32>
    %15 = arith.maximumf %13, %14 : vector<10x32xf32>
    %c0_13 = arith.constant 0 : index
    %c0_14 = arith.constant 0 : index
    %16 = vector.load %arg3[%c0_13, %c0_14] : memref<10x1xf32, #tpu.memory_space<vmem>>, vector<10x1xf32>
    %17 = vector.broadcast %16 : vector<10x1xf32> to vector<10x32xf32>
    %18 = arith.addf %15, %17 : vector<10x32xf32>
    %cst_15 = arith.constant 0.000000e+00 : f32
    %19 = vector.broadcast %cst_15 : f32 to vector<10x32xf32>
    %20 = arith.maximumf %18, %19 : vector<10x32xf32>
    %c0_16 = arith.constant 0 : index
    %c0_17 = arith.constant 0 : index
    %21 = vector.load %arg4[%c0_16, %c0_17] : memref<10x32xf32, #tpu.memory_space<vmem>>, vector<10x32xf32>
    tpu.vector_store %arg4[%c0_16, %c0_17], %20 {strides = array<i32>} : memref<10x32xf32, #tpu.memory_space<vmem>>, vector<10x32xf32>,
    return
  }
  func.func @transform_0(%arg0: i32) -> (i32, i32, i32) {
    %c0_i32 = arith.constant 0 : i32
    %c0_i32_0 = arith.constant 0 : i32
    %c0_i32_1 = arith.constant 0 : i32
    return %c0_i32, %c0_i32_0, %arg0 : i32, i32, i32
  }
  func.func @transform_1(%arg0: i32) -> (i32, i32) {
    %c0_i32 = arith.constant 0 : i32
    %c0_i32_0 = arith.constant 0 : i32
    %c0_i32_1 = arith.constant 0 : i32
    return %c0_i32, %c0_i32_0 : i32, i32
  }
  func.func @transform_2(%arg0: i32) -> (i32, i32) {
    %c0_i32 = arith.constant 0 : i32
    %c0_i32_0 = arith.constant 0 : i32
    %c0_i32_1 = arith.constant 0 : i32
    return %c0_i32, %c0_i32_0 : i32, i32
  }
  func.func @transform_3(%arg0: i32) -> (i32, i32) {
    %c0_i32 = arith.constant 0 : i32
    %c0_i32_0 = arith.constant 0 : i32
    return %c0_i32, %arg0 : i32, i32
  }
}

module attributes {stable_mosaic.version = 11 : i64} {
  func.func @_grid_sample_kernel(%arg0: i32, %arg1: memref<2x2x1024xf32, #tpu.memory_space<vmem>>, %arg2: memref<2x128x32xf32, #tpu.memory_space<vmem>>, %arg3: memref<32x1024xf32, #tpu.memory_space<vmem>>, %arg4: memref<32x1024xf32, #tpu.memory_space<vmem>>, %arg5: memref<1x4x1024xf32, #tpu.memory_space<vmem>>) attributes {dimension_semantics = [#tpu.dimension_semantics<parallel>], iteration_bounds = array<i64: 2>, scalar_prefetch = 0 : i64, scratch_operands = 0 : i64, tpu.core_type = #tpu.core_type<tc>, window_params = [{pipeline_mode = #tpu.pipeline_mode<synchronous>, transform_indices = @transform_0, window_bounds = array<i64: 2, 2, 1024>}, {pipeline_mode = #tpu.pipeline_mode<synchronous>, transform_indices = @transform_1, window_bounds = array<i64: 2, 128, 32>}, {pipeline_mode = #tpu.pipeline_mode<synchronous>, transform_indices = @transform_2, window_bounds = array<i64: 32, 1024>}, {pipeline_mode = #tpu.pipeline_mode<synchronous>, transform_indices = @transform_3, window_bounds = array<i64: 32, 1024>}, {transform_indices = @transform_4, window_bounds = array<i64: 1, 4, 1024>}]} {
    %0 = arith.index_cast %arg0 : i32 to index
    %c0 = arith.constant 0 : index
    %c0_0 = arith.constant 0 : index
    %1 = vector.load %arg1[%0, %c0, %c0_0] : memref<2x2x1024xf32, #tpu.memory_space<vmem>>, vector<1x2x1024xf32>
    %2 = vector.shape_cast %1 : vector<1x2x1024xf32> to vector<2x1024xf32>
    %3 = vector.extract_strided_slice %2 {offsets = [0, 0], sizes = [1, 1024], strides = [1, 1]} : vector<2x1024xf32> to vector<1x1024xf32>
    %4 = vector.extract_strided_slice %2 {offsets = [1, 0], sizes = [1, 1024], strides = [1, 1]} : vector<2x1024xf32> to vector<1x1024xf32>
    %c0_1 = arith.constant 0 : index
    %c0_2 = arith.constant 0 : index
    %5 = vector.load %arg3[%c0_1, %c0_2] : memref<32x1024xf32, #tpu.memory_space<vmem>>, vector<32x1024xf32>
    %6 = vector.broadcast %3 : vector<1x1024xf32> to vector<32x1024xf32>
    %7 = arith.subf %5, %6 : vector<32x1024xf32>
    %8 = math.absf %7 : vector<32x1024xf32>
    %cst = arith.constant 1.000000e+00 : f32
    %9 = vector.broadcast %cst : f32 to vector<32x1024xf32>
    %10 = arith.subf %9, %8 : vector<32x1024xf32>
    %cst_3 = arith.constant 0.000000e+00 : f32
    %11 = vector.broadcast %cst_3 : f32 to vector<32x1024xf32>
    %12 = arith.maximumf %10, %11 : vector<32x1024xf32>
    %13 = arith.index_cast %arg0 : i32 to index
    %c0_4 = arith.constant 0 : index
    %c0_5 = arith.constant 0 : index
    %14 = vector.load %arg2[%13, %c0_4, %c0_5] : memref<2x128x32xf32, #tpu.memory_space<vmem>>, vector<1x128x32xf32>
    %15 = vector.shape_cast %14 : vector<1x128x32xf32> to vector<128x32xf32>
    %cst_6 = arith.constant dense<0.000000e+00> : vector<128x1024xf32>
    %16 = tpu.matmul %15, %12, %cst_6 {dimension_numbers = #tpu.dot_dimension_numbers<[1], [0], [0], [1], [0, 0, 1, 1], [], []>} : vector<128x32xf32>, vector<32x1024xf32>, vector<128x1024xf32> -> vector<128x1024xf32>
    %c0_7 = arith.constant 0 : index
    %c0_8 = arith.constant 0 : index
    %17 = vector.load %arg4[%c0_7, %c0_8] : memref<32x1024xf32, #tpu.memory_space<vmem>>, vector<32x1024xf32>
    %18 = vector.broadcast %4 : vector<1x1024xf32> to vector<32x1024xf32>
    %19 = arith.subf %17, %18 : vector<32x1024xf32>
    %20 = math.absf %19 : vector<32x1024xf32>
    %cst_9 = arith.constant 1.000000e+00 : f32
    %21 = vector.broadcast %cst_9 : f32 to vector<32x1024xf32>
    %22 = arith.subf %21, %20 : vector<32x1024xf32>
    %cst_10 = arith.constant 0.000000e+00 : f32
    %23 = vector.broadcast %cst_10 : f32 to vector<32x1024xf32>
    %24 = arith.maximumf %22, %23 : vector<32x1024xf32>
    %25 = vector.extract_strided_slice %16 {offsets = [0, 0], sizes = [32, 1024], strides = [1, 1]} : vector<128x1024xf32> to vector<32x1024xf32>
    %26 = arith.mulf %25, %24 : vector<32x1024xf32>
    %cst_11 = arith.constant dense<0.000000e+00> : vector<1024xf32>
    %27 = vector.multi_reduction <add>, %26, %cst_11 [0] : vector<32x1024xf32> to vector<1024xf32>
    %28 = vector.shape_cast %27 : vector<1024xf32> to vector<1x1024xf32>
    %c0_12 = arith.constant 0 : index
    %c0_13 = arith.constant 0 : index
    %c0_14 = arith.constant 0 : index
    %29 = vector.load %arg5[%c0_12, %c0_13, %c0_14] : memref<1x4x1024xf32, #tpu.memory_space<vmem>>, vector<1x1x1024xf32>
    %30 = vector.shape_cast %29 : vector<1x1x1024xf32> to vector<1x1024xf32>
    %31 = vector.shape_cast %28 : vector<1x1024xf32> to vector<1x1x1024xf32>
    tpu.vector_store %arg5[%c0_12, %c0_13, %c0_14], %31 {strides = array<i32>} : memref<1x4x1024xf32, #tpu.memory_space<vmem>>, vector<1x1x1024xf32>,
    %32 = vector.extract_strided_slice %16 {offsets = [32, 0], sizes = [32, 1024], strides = [1, 1]} : vector<128x1024xf32> to vector<32x1024xf32>
    %33 = arith.mulf %32, %24 : vector<32x1024xf32>
    %cst_15 = arith.constant dense<0.000000e+00> : vector<1024xf32>
    %34 = vector.multi_reduction <add>, %33, %cst_15 [0] : vector<32x1024xf32> to vector<1024xf32>
    %35 = vector.shape_cast %34 : vector<1024xf32> to vector<1x1024xf32>
    %c0_16 = arith.constant 0 : index
    %c1 = arith.constant 1 : index
    %c0_17 = arith.constant 0 : index
    %36 = vector.load %arg5[%c0_16, %c1, %c0_17] : memref<1x4x1024xf32, #tpu.memory_space<vmem>>, vector<1x1x1024xf32>
    %37 = vector.shape_cast %36 : vector<1x1x1024xf32> to vector<1x1024xf32>
    %38 = vector.shape_cast %35 : vector<1x1024xf32> to vector<1x1x1024xf32>
    tpu.vector_store %arg5[%c0_16, %c1, %c0_17], %38 {strides = array<i32>} : memref<1x4x1024xf32, #tpu.memory_space<vmem>>, vector<1x1x1024xf32>,
    %39 = vector.extract_strided_slice %16 {offsets = [64, 0], sizes = [32, 1024], strides = [1, 1]} : vector<128x1024xf32> to vector<32x1024xf32>
    %40 = arith.mulf %39, %24 : vector<32x1024xf32>
    %cst_18 = arith.constant dense<0.000000e+00> : vector<1024xf32>
    %41 = vector.multi_reduction <add>, %40, %cst_18 [0] : vector<32x1024xf32> to vector<1024xf32>
    %42 = vector.shape_cast %41 : vector<1024xf32> to vector<1x1024xf32>
    %c0_19 = arith.constant 0 : index
    %c2 = arith.constant 2 : index
    %c0_20 = arith.constant 0 : index
    %43 = vector.load %arg5[%c0_19, %c2, %c0_20] : memref<1x4x1024xf32, #tpu.memory_space<vmem>>, vector<1x1x1024xf32>
    %44 = vector.shape_cast %43 : vector<1x1x1024xf32> to vector<1x1024xf32>
    %45 = vector.shape_cast %42 : vector<1x1024xf32> to vector<1x1x1024xf32>
    tpu.vector_store %arg5[%c0_19, %c2, %c0_20], %45 {strides = array<i32>} : memref<1x4x1024xf32, #tpu.memory_space<vmem>>, vector<1x1x1024xf32>,
    %46 = vector.extract_strided_slice %16 {offsets = [96, 0], sizes = [32, 1024], strides = [1, 1]} : vector<128x1024xf32> to vector<32x1024xf32>
    %47 = arith.mulf %46, %24 : vector<32x1024xf32>
    %cst_21 = arith.constant dense<0.000000e+00> : vector<1024xf32>
    %48 = vector.multi_reduction <add>, %47, %cst_21 [0] : vector<32x1024xf32> to vector<1024xf32>
    %49 = vector.shape_cast %48 : vector<1024xf32> to vector<1x1024xf32>
    %c0_22 = arith.constant 0 : index
    %c3 = arith.constant 3 : index
    %c0_23 = arith.constant 0 : index
    %50 = vector.load %arg5[%c0_22, %c3, %c0_23] : memref<1x4x1024xf32, #tpu.memory_space<vmem>>, vector<1x1x1024xf32>
    %51 = vector.shape_cast %50 : vector<1x1x1024xf32> to vector<1x1024xf32>
    %52 = vector.shape_cast %49 : vector<1x1024xf32> to vector<1x1x1024xf32>
    tpu.vector_store %arg5[%c0_22, %c3, %c0_23], %52 {strides = array<i32>} : memref<1x4x1024xf32, #tpu.memory_space<vmem>>, vector<1x1x1024xf32>,
    return
  }
  func.func @transform_0(%arg0: i32) -> (i32, i32, i32) {
    %c0_i32 = arith.constant 0 : i32
    %c0_i32_0 = arith.constant 0 : i32
    %c0_i32_1 = arith.constant 0 : i32
    %c0_i32_2 = arith.constant 0 : i32
    return %c0_i32, %c0_i32_0, %c0_i32_1 : i32, i32, i32
  }
  func.func @transform_1(%arg0: i32) -> (i32, i32, i32) {
    %c0_i32 = arith.constant 0 : i32
    %c0_i32_0 = arith.constant 0 : i32
    %c0_i32_1 = arith.constant 0 : i32
    %c0_i32_2 = arith.constant 0 : i32
    return %c0_i32, %c0_i32_0, %c0_i32_1 : i32, i32, i32
  }
  func.func @transform_2(%arg0: i32) -> (i32, i32) {
    %c0_i32 = arith.constant 0 : i32
    %c0_i32_0 = arith.constant 0 : i32
    %c0_i32_1 = arith.constant 0 : i32
    return %c0_i32, %c0_i32_0 : i32, i32
  }
  func.func @transform_3(%arg0: i32) -> (i32, i32) {
    %c0_i32 = arith.constant 0 : i32
    %c0_i32_0 = arith.constant 0 : i32
    %c0_i32_1 = arith.constant 0 : i32
    return %c0_i32, %c0_i32_0 : i32, i32
  }
  func.func @transform_4(%arg0: i32) -> (i32, i32, i32) {
    %c0_i32 = arith.constant 0 : i32
    %c0_i32_0 = arith.constant 0 : i32
    %c0_i32_1 = arith.constant 0 : i32
    return %arg0, %c0_i32, %c0_i32_0 : i32, i32, i32
  }
}

</mosaic_0001>

<bundles_post_ra>
// kernel: stn_forward.3
= control target key start
LH: loop header
LB: loop body
LE: loop exit
PB: predicated region body
PF: predicated region fallthrough
CT: control target
= control target key end

     0   :  { %s2785_s12 = smov 0   ;;  %s2787_s13 = smov 0   ;;  %s4703_s0 = inlined_call_operand.vmem [shape: f32[4,196,338], index: 0, kind: input, shape index: {}]   ;;  %s4704_s1 = inlined_call_operand.vmem [shape: f32[8,196], index: 1, kind: input, shape index: {}]   ;;  %s4705_s2 = inlined_call_operand.vmem [shape: f32[8,1], index: 2, kind: input, shape index: {}]   ;;  %s4706_s3 = inlined_call_operand.vmem [shape: f32[8,338], index: 3, kind: output, shape index: {}]  }
   0x1   :  { %s2789_s14 = smov 0  }
   0x2 LB: > { %s2801_s15 = sadd.s32 4294967295, %s2662_s14   ;;  %s2804_s16 = sadd.s32 1, %s2662_s14   ;;  %s2662_s14 = sphi %s2789_s14, %s4730_s14   ;;  %s2658_s13 = sphi %s2787_s13, %s4729_s13   ;;  %s2654_s12 = sphi %s2785_s12, %s4728_s12  }
   0x3   : > { %s17_s17 = ssub.s32 %s2662_s14, %s2804_s16  ;;  %s20_s18 = sadd.s32 1, %s2658_s13 }
   0x4   : > { %p18_p0 = scmp.eq.s32.totalorder %s17_s17, 0  ;;  %p27_p1 = scmp.ne.s32.totalorder %s2658_s13, %s2654_s12 }
   0x5   : > { %p28_p2 = scmp.eq.s32.totalorder %s2662_s14, 0  ;;  %p99_p3 = scmp.eq.s32.totalorder %s2801_s15, 1 }
   0x6   : > { %s2814_s19 = scalar_select %p18_p0, %s2658_s13, %s20_s18  }
   0x7   : > { %p29_p4 = por %p28_p2, %p27_p1  ;;  %p2816_p5 = por %p99_p3, %p27_p1 }
   0x8   : > { %p2099_p6 = scmp.ge.s32.totalorder %s2662_s14, 2 }
   0xa   : > { %127 = sbr.rel (%p2099_p6) target bundleno = 469 (0x1d5), region = 24 }
   0xf   : > { %130 = sbr.rel (!%p29_p4) target bundleno = 469 (0x1d5), region = 28  ;;  %s132_s21 = sand.u32 (%p29_p4), 1, %s2658_s13  }
  0x10   : > { %s2100_s22 = sshll.u32 (%p29_p4), %s2662_s14, 1  ;;  %s2320_s23 = smul.u32 (%p29_p4), 1600, %s132_s21 }
  0x11   : > { %s136_s24 = ssub.s32 (%p29_p4), 3, %s2100_s22  ;;  %s2314_s25 = sshll.u32 (%p29_p4), %s2662_s14, 4 }
  0x12   : > { %p137_p7 = scmp.lt.s32.totalorder (%p29_p4), %s136_s24, 2  ;;  %s2827_s28 = scalar_lea.vmem (%p29_p4), %s4703_s0, %s2314_s25  }
  0x13   : > { %s2831_s4 = scalar_lea.vmem (%p29_p4), [#allocation2], %s2320_s23  }
  0x14   : > { %s4732_s24 = smov (!%p137_p7, %s136_s24), 2 }
  0x15   : > { %s139_s29 = smul.u32 800, %s4732_s24  ;;  %s2829_s30 = sshll.u32 %s4732_s24, 3 }
  0x17   : > { %p2104_p8 = scmp.eq.s32.totalorder %s139_s29, 0 }
  0x18   : > { %p147_p9 = scmp.lt.u32.totalorder (!%p2104_p8), %s2829_s30, 8 }
  0x19   : > { %146 = sbr.rel (%p2104_p8) target bundleno = 469 (0x1d5), region = 32 }
  0x1e   : > { %150 = sbr.rel (%p147_p9) target bundleno = 361 (0x169), region = 36  ;;  %s2835_s5 = sand.u32 (!%p147_p9), 7, %s2829_s30  }
  0x1f   : > { %p365_p10 = scmp.eq.s32.totalorder (!%p147_p9), %s2835_s5, 0  ;;  %p2105_p11 = scmp.ne.s32.totalorder (!%p147_p9), %s2835_s5, 0 }
  0x23   : > { %368 = sbr.rel (%p2105_p11) target bundleno = 146 (0x92), region = 51  ;;  %s2840_s6 = sshrl.u32 (!%p2105_p11), %s2829_s30, 3 }
  0x24   : > { %p2106_p12 = scmp.le.s32.totalorder (!%p2105_p11), %s2840_s6, 0 }
  0x28   : > { %1997 = sbr.rel (%p2106_p12) target bundleno = 146 (0x92), region = 210  ;;  %s4708_s7 = smov (!%p2106_p12), %s2831_s4 }
  0x29   : > { %s4709_s8 = smov (!%p2106_p12), %s2827_s28  ;;  %s2849_s9 = smov (!%p2106_p12), 0  }
  0x2a   : > { %s2851_s10 = smov (!%p2106_p12), 0  }
  0x2d LB: >> { %v379_v0 = vld [vmem:[%s2670_s8] sm:$0xff]  ;;  %v381_v1 = vld [vmem:[%s2670_s8 + $0x18] sm:$0xff]  ;;  %v383_v2 = vld [vmem:[%s2670_s8 + $0x30] sm:$0xff]  ;;  %s579_s11 = sadd.s32 1, %s2674_s9  ;;  %s373_s10 = sadd.s32 1, %s2678_s10   ;;  %s2678_s10 = sphi %s2851_s10, %s373_s10   ;;  %s2674_s9 = sphi %s2849_s9, %s4712_s9   ;;  %s2670_s8 = sphi %s4709_s8, %s4711_s8   ;;  %s2666_s7 = sphi %s4708_s7, %s4710_s7  }
  0x2e   : >> { %380 = vst [vmem:[%s2666_s7] sm:$0xff] %v379_v0  ;;  %v385_v3 = vld [vmem:[%s2670_s8 + $0x48] sm:$0xff]  ;;  %p580_p13 = scmp.ge.s32.totalorder %s579_s11, %s2840_s6  ;;  %v387_v4 = vld [vmem:[%s2670_s8 + $0x60] sm:$0xff]  ;;  %v389_v5 = vld [vmem:[%s2670_s8 + $0x78] sm:$0xff]  ;;  %p372_p0 = scmp.ge.s32.totalorder %s373_s10, %s2840_s6 }
  0x2f   : >> { %382 = vst [vmem:[%s2666_s7 + $0x10] sm:$0xff] %v381_v1  ;;  %v391_v6 = vld [vmem:[%s2670_s8 + $0x90] sm:$0xff]  ;;  %v393_v7 = vld [vmem:[%s2670_s8 + $0xa8] sm:$0xff]  ;;  %v395_v8 = vld [vmem:[%s2670_s8 + $0xc0] sm:$0xff] }
  0x30   : >> { %384 = vst [vmem:[%s2666_s7 + $0x20] sm:$0xff] %v383_v2  ;;  %s4734_s11 = smov (%p580_p13, %s579_s11), 0  ;;  %v397_v9 = vld [vmem:[%s2670_s8 + $0xd8] sm:$0xff]  ;;  %v399_v10 = vld [vmem:[%s2670_s8 + $0xf0] sm:$0xff]  ;;  %v401_v11 = vld [vmem:[%s2670_s8 + $0x108] sm:$0xff] }
  0x31   : >> { %386 = vst [vmem:[%s2666_s7 + $0x30] sm:$0xff] %v385_v3  ;;  %s2107_s17 = sshll.u32 %s4734_s11, 3  ;;  %v403_v12 = vld [vmem:[%s2670_s8 + $0x120] sm:$0xff]  ;;  %v405_v13 = vld [vmem:[%s2670_s8 + $0x138] sm:$0xff]  ;;  %v407_v14 = vld [vmem:[%s2670_s8 + $0x150] sm:$0xff]  ;;  %s4712_s9 = smov %s4734_s11 }
  0x32   : >> { %388 = vst [vmem:[%s2666_s7 + $0x40] sm:$0xff] %v387_v4  ;;  %s2883_s18 = scalar_lea.vmem %s2827_s28, %s2107_s17   ;;  %s2886_s21 = scalar_lea.vmem %s2831_s4, %s2107_s17 [#allocation2]   ;;  %v409_v15 = vld [vmem:[%s2670_s8 + $0x168] sm:$0xff]  ;;  %v411_v16 = vld [vmem:[%s2670_s8 + $0x180] sm:$0xff]  ;;  %v413_v17 = vld [vmem:[%s2670_s8 + $0x198] sm:$0xff] }
  0x33   : >> { %390 = vst [vmem:[%s2666_s7 + $0x50] sm:$0xff] %v389_v5  ;;  %v415_v18 = vld [vmem:[%s2670_s8 + $0x1b0] sm:$0xff]  ;;  %v417_v19 = vld [vmem:[%s2670_s8 + $0x1c8] sm:$0xff]  ;;  %v419_v20 = vld [vmem:[%s2670_s8 + $0x1e0] sm:$0xff] }
  0x34   : >> { %392 = vst [vmem:[%s2666_s7 + $0x60] sm:$0xff] %v391_v6  ;;  %v421_v21 = vld [vmem:[%s2670_s8 + $0x1f8] sm:$0xff]  ;;  %v423_v22 = vld [vmem:[%s2670_s8 + $0x210] sm:$0xff]  ;;  %v425_v23 = vld [vmem:[%s2670_s8 + $0x228] sm:$0xff] }
  0x35   : >> { %394 = vst [vmem:[%s2666_s7 + $0x70] sm:$0xff] %v393_v7  ;;  %v427_v24 = vld [vmem:[%s2670_s8 + $0x240] sm:$0xff]  ;;  %v429_v25 = vld [vmem:[%s2670_s8 + $0x258] sm:$0xff]  ;;  %v431_v26 = vld [vmem:[%s2670_s8 + $0x270] sm:$0xff] }
  0x36   : >> { %396 = vst [vmem:[%s2666_s7 + $0x80] sm:$0xff] %v395_v8  ;;  %v433_v27 = vld [vmem:[%s2670_s8 + $0x288] sm:$0xff]  ;;  %v435_v28 = vld [vmem:[%s2670_s8 + $0x2a0] sm:$0xff]  ;;  %v437_v29 = vld [vmem:[%s2670_s8 + $0x2b8] sm:$0xff] }
  0x37   : >> { %398 = vst [vmem:[%s2666_s7 + $0x90] sm:$0xff] %v397_v9  ;;  %v439_v30 = vld [vmem:[%s2670_s8 + $0x2d0] sm:$0xff]  ;;  %v441_v31 = vld [vmem:[%s2670_s8 + $0x2e8] sm:$0xff]  ;;  %v443_v32 = vld [vmem:[%s2670_s8 + $0x300] sm:$0xff] }
  0x38   : >> { %400 = vst [vmem:[%s2666_s7 + $0xa0] sm:$0xff] %v399_v10  ;;  %v445_v33 = vld [vmem:[%s2670_s8 + $0x318] sm:$0xff]  ;;  %v447_v34 = vld [vmem:[%s2670_s8 + $0x330] sm:$0xff]  ;;  %v449_v35 = vld [vmem:[%s2670_s8 + $0x348] sm:$0xff] }
  0x39   : >> { %402 = vst [vmem:[%s2666_s7 + $0xb0] sm:$0xff] %v401_v11  ;;  %v451_v36 = vld [vmem:[%s2670_s8 + $0x360] sm:$0xff]  ;;  %v453_v37 = vld [vmem:[%s2670_s8 + $0x378] sm:$0xff]  ;;  %v455_v38 = vld [vmem:[%s2670_s8 + $0x390] sm:$0xff] }
  0x3a   : >> { %404 = vst [vmem:[%s2666_s7 + $0xc0] sm:$0xff] %v403_v12  ;;  %v457_v39 = vld [vmem:[%s2670_s8 + $0x3a8] sm:$0xff]  ;;  %v459_v40 = vld [vmem:[%s2670_s8 + $0x3c0] sm:$0xff]  ;;  %v461_v41 = vld [vmem:[%s2670_s8 + $0x3d8] sm:$0xff] }
  0x3b   : >> { %406 = vst [vmem:[%s2666_s7 + $0xd0] sm:$0xff] %v405_v13  ;;  %v463_v42 = vld [vmem:[%s2670_s8 + $0x3f0] sm:$0xff]  ;;  %v465_v43 = vld [vmem:[%s2670_s8 + $0x408] sm:$0xff]  ;;  %v467_v44 = vld [vmem:[%s2670_s8 + $0x420] sm:$0xff] }
  0x3c   : >> { %408 = vst [vmem:[%s2666_s7 + $0xe0] sm:$0xff] %v407_v14  ;;  %v469_v45 = vld [vmem:[%s2670_s8 + $0x438] sm:$0xff]  ;;  %v471_v46 = vld [vmem:[%s2670_s8 + $0x450] sm:$0xff]  ;;  %v473_v47 = vld [vmem:[%s2670_s8 + $0x468] sm:$0xff] }
  0x3d   : >> { %410 = vst [vmem:[%s2666_s7 + $0xf0] sm:$0xff] %v409_v15  ;;  %v475_v48 = vld [vmem:[%s2670_s8 + $0x480] sm:$0xff]  ;;  %v477_v49 = vld [vmem:[%s2670_s8 + $0x498] sm:$0xff]  ;;  %v479_v50 = vld [vmem:[%s2670_s8 + $0x4b0] sm:$0xff] }
  0x3e   : >> { %412 = vst [vmem:[%s2666_s7 + $0x100] sm:$0xff] %v411_v16  ;;  %v481_v51 = vld [vmem:[%s2670_s8 + $0x4c8] sm:$0xff]  ;;  %v483_v52 = vld [vmem:[%s2670_s8 + $0x4e0] sm:$0xff]  ;;  %v485_v53 = vld [vmem:[%s2670_s8 + $0x4f8] sm:$0xff] }
  0x3f   : >> { %414 = vst [vmem:[%s2666_s7 + $0x110] sm:$0xff] %v413_v17  ;;  %v487_v54 = vld [vmem:[%s2670_s8 + $0x510] sm:$0xff]  ;;  %v489_v55 = vld [vmem:[%s2670_s8 + $0x528] sm:$0xff]  ;;  %v491_v56 = vld [vmem:[%s2670_s8 + $0x540] sm:$0xff] }
  0x40   : >> { %416 = vst [vmem:[%s2666_s7 + $0x120] sm:$0xff] %v415_v18  ;;  %v493_v57 = vld [vmem:[%s2670_s8 + $0x558] sm:$0xff]  ;;  %v495_v58 = vld [vmem:[%s2670_s8 + $0x570] sm:$0xff]  ;;  %v497_v59 = vld [vmem:[%s2670_s8 + $0x588] sm:$0xff] }
  0x41   : >> { %418 = vst [vmem:[%s2666_s7 + $0x130] sm:$0xff] %v417_v19  ;;  %v499_v60 = vld [vmem:[%s2670_s8 + $0x5a0] sm:$0xff]  ;;  %v501_v61 = vld [vmem:[%s2670_s8 + $0x5b8] sm:$0xff]  ;;  %v503_v62 = vld [vmem:[%s2670_s8 + $0x5d0] sm:$0xff] }
  0x42   : >> { %420 = vst [vmem:[%s2666_s7 + $0x140] sm:$0xff] %v419_v20  ;;  %v505_v63 = vld [vmem:[%s2670_s8 + $0x5e8] sm:$0xff]  ;;  %v507_v0 = vld [vmem:[%s2670_s8 + $0x600] sm:$0xff]  ;;  %v509_v1 = vld [vmem:[%s2670_s8 + $0x618] sm:$0xff] }
  0x43   : >> { %422 = vst [vmem:[%s2666_s7 + $0x150] sm:$0xff] %v421_v21  ;;  %v511_v2 = vld [vmem:[%s2670_s8 + $0x630] sm:$0xff]  ;;  %v513_v3 = vld [vmem:[%s2670_s8 + $0x648] sm:$0xff]  ;;  %v515_v4 = vld [vmem:[%s2670_s8 + $0x660] sm:$0xff] }
  0x44   : >> { %424 = vst [vmem:[%s2666_s7 + $0x160] sm:$0xff] %v423_v22  ;;  %v517_v5 = vld [vmem:[%s2670_s8 + $0x678] sm:$0xff]  ;;  %v519_v6 = vld [vmem:[%s2670_s8 + $0x690] sm:$0xff]  ;;  %v521_v7 = vld [vmem:[%s2670_s8 + $0x6a8] sm:$0xff] }
  0x45   : >> { %426 = vst [vmem:[%s2666_s7 + $0x170] sm:$0xff] %v425_v23  ;;  %v523_v8 = vld [vmem:[%s2670_s8 + $0x6c0] sm:$0xff]  ;;  %v525_v9 = vld [vmem:[%s2670_s8 + $0x6d8] sm:$0xff]  ;;  %v527_v10 = vld [vmem:[%s2670_s8 + $0x6f0] sm:$0xff] }
  0x46   : >> { %428 = vst [vmem:[%s2666_s7 + $0x180] sm:$0xff] %v427_v24  ;;  %v529_v11 = vld [vmem:[%s2670_s8 + $0x708] sm:$0xff]  ;;  %v531_v12 = vld [vmem:[%s2670_s8 + $0x720] sm:$0xff]  ;;  %v533_v13 = vld [vmem:[%s2670_s8 + $0x738] sm:$0xff] }
  0x47   : >> { %430 = vst [vmem:[%s2666_s7 + $0x190] sm:$0xff] %v429_v25  ;;  %v535_v14 = vld [vmem:[%s2670_s8 + $0x750] sm:$0xff]  ;;  %v537_v15 = vld [vmem:[%s2670_s8 + $0x768] sm:$0xff]  ;;  %v539_v16 = vld [vmem:[%s2670_s8 + $0x780] sm:$0xff] }
  0x48   : >> { %432 = vst [vmem:[%s2666_s7 + $0x1a0] sm:$0xff] %v431_v26  ;;  %v541_v17 = vld [vmem:[%s2670_s8 + $0x798] sm:$0xff]  ;;  %v543_v18 = vld [vmem:[%s2670_s8 + $0x7b0] sm:$0xff]  ;;  %v545_v19 = vld [vmem:[%s2670_s8 + $0x7c8] sm:$0xff] }
  0x49   : >> { %434 = vst [vmem:[%s2666_s7 + $0x1b0] sm:$0xff] %v433_v27  ;;  %v547_v20 = vld [vmem:[%s2670_s8 + $0x7e0] sm:$0xff]  ;;  %v549_v21 = vld [vmem:[%s2670_s8 + $0x7f8] sm:$0xff]  ;;  %v551_v22 = vld [vmem:[%s2670_s8 + $0x810] sm:$0xff] }
  0x4a   : >> { %436 = vst [vmem:[%s2666_s7 + $0x1c0] sm:$0xff] %v435_v28  ;;  %v553_v23 = vld [vmem:[%s2670_s8 + $0x828] sm:$0xff]  ;;  %v555_v24 = vld [vmem:[%s2670_s8 + $0x840] sm:$0xff]  ;;  %v557_v25 = vld [vmem:[%s2670_s8 + $0x858] sm:$0xff] }
  0x4b   : >> { %438 = vst [vmem:[%s2666_s7 + $0x1d0] sm:$0xff] %v437_v29  ;;  %v559_v26 = vld [vmem:[%s2670_s8 + $0x870] sm:$0xff]  ;;  %v561_v27 = vld [vmem:[%s2670_s8 + $0x888] sm:$0xff]  ;;  %v563_v28 = vld [vmem:[%s2670_s8 + $0x8a0] sm:$0xff] }
  0x4c   : >> { %440 = vst [vmem:[%s2666_s7 + $0x1e0] sm:$0xff] %v439_v30  ;;  %v565_v29 = vld [vmem:[%s2670_s8 + $0x8b8] sm:$0xff]  ;;  %v567_v30 = vld [vmem:[%s2670_s8 + $0x8d0] sm:$0xff] }
  0x4d   : >> { %442 = vst [vmem:[%s2666_s7 + $0x1f0] sm:$0xff] %v441_v31  ;;  %v569_v31 = vld [vmem:[%s2670_s8 + $0x8e8] sm:$0xff] }
  0x4e   : >> { %444 = vst [vmem:[%s2666_s7 + $0x200] sm:$0xff] %v443_v32  ;;  %v571_v32 = vld [vmem:[%s2670_s8 + $0x900] sm:$0xff] }
  0x4f   : >> { %446 = vst [vmem:[%s2666_s7 + $0x210] sm:$0xff] %v445_v33  ;;  %v573_v33 = vld [vmem:[%s2670_s8 + $0x918] sm:$0xff] }
  0x50   : >> { %448 = vst [vmem:[%s2666_s7 + $0x220] sm:$0xff] %v447_v34  ;;  %v575_v34 = vld [vmem:[%s2670_s8 + $0x930] sm:$0xff] }
  0x51   : >> { %450 = vst [vmem:[%s2666_s7 + $0x230] sm:$0xff] %v449_v35  ;;  %v577_v35 = vld [vmem:[%s2670_s8 + $0x948] sm:$0xff]  ;;  %s4711_s8 = smov %s2883_s18 }
  0x52   : >> { %452 = vst [vmem:[%s2666_s7 + $0x240] sm:$0xff] %v451_v36 }
  0x53   : >> { %454 = vst [vmem:[%s2666_s7 + $0x250] sm:$0xff] %v453_v37 }
  0x54   : >> { %456 = vst [vmem:[%s2666_s7 + $0x260] sm:$0xff] %v455_v38 }
  0x55   : >> { %458 = vst [vmem:[%s2666_s7 + $0x270] sm:$0xff] %v457_v39 }
  0x56   : >> { %460 = vst [vmem:[%s2666_s7 + $0x280] sm:$0xff] %v459_v40 }
  0x57   : >> { %462 = vst [vmem:[%s2666_s7 + $0x290] sm:$0xff] %v461_v41 }
  0x58   : >> { %464 = vst [vmem:[%s2666_s7 + $0x2a0] sm:$0xff] %v463_v42 }
  0x59   : >> { %466 = vst [vmem:[%s2666_s7 + $0x2b0] sm:$0xff] %v465_v43 }
  0x5a   : >> { %468 = vst [vmem:[%s2666_s7 + $0x2c0] sm:$0xff] %v467_v44 }
  0x5b   : >> { %470 = vst [vmem:[%s2666_s7 + $0x2d0] sm:$0xff] %v469_v45 }
  0x5c   : >> { %472 = vst [vmem:[%s2666_s7 + $0x2e0] sm:$0xff] %v471_v46 }
  0x5d   : >> { %474 = vst [vmem:[%s2666_s7 + $0x2f0] sm:$0xff] %v473_v47 }
  0x5e   : >> { %476 = vst [vmem:[%s2666_s7 + $0x300] sm:$0xff] %v475_v48 }
  0x5f   : >> { %478 = vst [vmem:[%s2666_s7 + $0x310] sm:$0xff] %v477_v49 }
  0x60   : >> { %480 = vst [vmem:[%s2666_s7 + $0x320] sm:$0xff] %v479_v50 }
  0x61   : >> { %482 = vst [vmem:[%s2666_s7 + $0x330] sm:$0xff] %v481_v51 }
  0x62   : >> { %484 = vst [vmem:[%s2666_s7 + $0x340] sm:$0xff] %v483_v52 }
  0x63   : >> { %486 = vst [vmem:[%s2666_s7 + $0x350] sm:$0xff] %v485_v53 }
  0x64   : >> { %488 = vst [vmem:[%s2666_s7 + $0x360] sm:$0xff] %v487_v54 }
  0x65   : >> { %490 = vst [vmem:[%s2666_s7 + $0x370] sm:$0xff] %v489_v55 }
  0x66   : >> { %492 = vst [vmem:[%s2666_s7 + $0x380] sm:$0xff] %v491_v56 }
  0x67   : >> { %494 = vst [vmem:[%s2666_s7 + $0x390] sm:$0xff] %v493_v57 }
  0x68   : >> { %496 = vst [vmem:[%s2666_s7 + $0x3a0] sm:$0xff] %v495_v58 }
  0x69   : >> { %498 = vst [vmem:[%s2666_s7 + $0x3b0] sm:$0xff] %v497_v59 }
  0x6a   : >> { %500 = vst [vmem:[%s2666_s7 + $0x3c0] sm:$0xff] %v499_v60 }
  0x6b   : >> { %502 = vst [vmem:[%s2666_s7 + $0x3d0] sm:$0xff] %v501_v61 }
  0x6c   : >> { %504 = vst [vmem:[%s2666_s7 + $0x3e0] sm:$0xff] %v503_v62 }
  0x6d   : >> { %506 = vst [vmem:[%s2666_s7 + $0x3f0] sm:$0xff] %v505_v63 }
  0x6e   : >> { %508 = vst [vmem:[%s2666_s7 + $0x400] sm:$0xff] %v507_v0 }
  0x6f   : >> { %510 = vst [vmem:[%s2666_s7 + $0x410] sm:$0xff] %v509_v1 }
  0x70   : >> { %512 = vst [vmem:[%s2666_s7 + $0x420] sm:$0xff] %v511_v2 }
  0x71   : >> { %514 = vst [vmem:[%s2666_s7 + $0x430] sm:$0xff] %v513_v3 }
  0x72   : >> { %516 = vst [vmem:[%s2666_s7 + $0x440] sm:$0xff] %v515_v4 }
  0x73   : >> { %518 = vst [vmem:[%s2666_s7 + $0x450] sm:$0xff] %v517_v5 }
  0x74   : >> { %520 = vst [vmem:[%s2666_s7 + $0x460] sm:$0xff] %v519_v6 }
  0x75   : >> { %522 = vst [vmem:[%s2666_s7 + $0x470] sm:$0xff] %v521_v7 }
  0x76   : >> { %524 = vst [vmem:[%s2666_s7 + $0x480] sm:$0xff] %v523_v8 }
  0x77   : >> { %526 = vst [vmem:[%s2666_s7 + $0x490] sm:$0xff] %v525_v9 }
  0x78   : >> { %528 = vst [vmem:[%s2666_s7 + $0x4a0] sm:$0xff] %v527_v10 }
  0x79   : >> { %530 = vst [vmem:[%s2666_s7 + $0x4b0] sm:$0xff] %v529_v11 }
  0x7a   : >> { %532 = vst [vmem:[%s2666_s7 + $0x4c0] sm:$0xff] %v531_v12 }
  0x7b   : >> { %534 = vst [vmem:[%s2666_s7 + $0x4d0] sm:$0xff] %v533_v13 }
  0x7c   : >> { %536 = vst [vmem:[%s2666_s7 + $0x4e0] sm:$0xff] %v535_v14 }
  0x7d   : >> { %538 = vst [vmem:[%s2666_s7 + $0x4f0] sm:$0xff] %v537_v15 }
  0x7e   : >> { %540 = vst [vmem:[%s2666_s7 + $0x500] sm:$0xff] %v539_v16 }
  0x7f   : >> { %542 = vst [vmem:[%s2666_s7 + $0x510] sm:$0xff] %v541_v17 }
  0x80   : >> { %544 = vst [vmem:[%s2666_s7 + $0x520] sm:$0xff] %v543_v18 }
  0x81   : >> { %546 = vst [vmem:[%s2666_s7 + $0x530] sm:$0xff] %v545_v19 }
  0x82   : >> { %548 = vst [vmem:[%s2666_s7 + $0x540] sm:$0xff] %v547_v20 }
  0x83   : >> { %550 = vst [vmem:[%s2666_s7 + $0x550] sm:$0xff] %v549_v21 }
  0x84   : >> { %552 = vst [vmem:[%s2666_s7 + $0x560] sm:$0xff] %v551_v22 }
  0x85   : >> { %554 = vst [vmem:[%s2666_s7 + $0x570] sm:$0xff] %v553_v23 }
  0x86   : >> { %556 = vst [vmem:[%s2666_s7 + $0x580] sm:$0xff] %v555_v24 }
  0x87   : >> { %558 = vst [vmem:[%s2666_s7 + $0x590] sm:$0xff] %v557_v25 }
  0x88   : >> { %560 = vst [vmem:[%s2666_s7 + $0x5a0] sm:$0xff] %v559_v26 }
  0x89   : >> { %562 = vst [vmem:[%s2666_s7 + $0x5b0] sm:$0xff] %v561_v27 }
  0x8a   : >> { %564 = vst [vmem:[%s2666_s7 + $0x5c0] sm:$0xff] %v563_v28 }
  0x8b   : >> { %566 = vst [vmem:[%s2666_s7 + $0x5d0] sm:$0xff] %v565_v29 }
  0x8c   : >> { %568 = vst [vmem:[%s2666_s7 + $0x5e0] sm:$0xff] %v567_v30 }
  0x8d   : >> { %570 = vst [vmem:[%s2666_s7 + $0x5f0] sm:$0xff] %v569_v31  ;;  %375 = sbr.rel (!%p372_p0) target bundleno = 45 (0x2d), region = 216 }
  0x8e   : >> { %572 = vst [vmem:[%s2666_s7 + $0x600] sm:$0xff] %v571_v32 }
  0x8f   : >> { %574 = vst [vmem:[%s2666_s7 + $0x610] sm:$0xff] %v573_v33 }
  0x90   : >> { %576 = vst [vmem:[%s2666_s7 + $0x620] sm:$0xff] %v575_v34 }
  0x91   : >> { %578 = vst [vmem:[%s2666_s7 + $0x630] sm:$0xff] %v577_v35  ;;  %s4710_s7 = smov %s2886_s21 }
  0x92 PF: > { %588 = sbr.rel (%p365_p10) target bundleno = 361 (0x169), region = 62  ;;  %s590_s22 = ssub.s32 (!%p365_p10), %s2829_s30, %s2835_s5 }
  0x93   : > { %s3091_s23 = sshrl.u32 (!%p365_p10), %s2829_s30, 3  ;;  %s3094_s24 = scalar_lea.vmem (!%p365_p10), %s2827_s28, %s590_s22 }
  0x94   : > { %s3097_s25 = scalar_lea.vmem (!%p365_p10), %s2831_s4, %s590_s22 [#allocation2]  ;;  %p2109_p1 = scmp.le.s32.totalorder (!%p365_p10), %s3091_s23, 0 }
  0x97   : > { %2011 = sbr.rel (%p2109_p1) target bundleno = 257 (0x101), region = 221  ;;  %s4713_s26 = smov (!%p2109_p1), %s2831_s4 }
  0x98   : > { %s4714_s27 = smov (!%p2109_p1), %s2827_s28  ;;  %s3106_s29 = smov (!%p2109_p1), 0  }
  0x99   : > { %s3108_s6 = smov (!%p2109_p1), 0  }
  0x9c LB: >> { %v604_v36 = vld [vmem:[%s2686_s27] sm:$0xff]  ;;  %v606_v37 = vld [vmem:[%s2686_s27 + $0x18] sm:$0xff]  ;;  %v608_v38 = vld [vmem:[%s2686_s27 + $0x30] sm:$0xff]  ;;  %s804_s7 = sadd.s32 1, %s2690_s29  ;;  %s598_s6 = sadd.s32 1, %s2694_s6   ;;  %s2694_s6 = sphi %s3108_s6, %s598_s6   ;;  %s2690_s29 = sphi %s3106_s29, %s4717_s29   ;;  %s2686_s27 = sphi %s4714_s27, %s4716_s27   ;;  %s2682_s26 = sphi %s4713_s26, %s4715_s26  }
  0x9d   : >> { %605 = vst [vmem:[%s2682_s26] sm:$0xff] %v604_v36  ;;  %v610_v39 = vld [vmem:[%s2686_s27 + $0x48] sm:$0xff]  ;;  %p805_p2 = scmp.ge.s32.totalorder %s804_s7, %s3091_s23  ;;  %v612_v40 = vld [vmem:[%s2686_s27 + $0x60] sm:$0xff]  ;;  %v614_v41 = vld [vmem:[%s2686_s27 + $0x78] sm:$0xff]  ;;  %p597_p3 = scmp.ge.s32.totalorder %s598_s6, %s3091_s23 }
  0x9e   : >> { %607 = vst [vmem:[%s2682_s26 + $0x10] sm:$0xff] %v606_v37  ;;  %v616_v42 = vld [vmem:[%s2686_s27 + $0x90] sm:$0xff]  ;;  %v618_v43 = vld [vmem:[%s2686_s27 + $0xa8] sm:$0xff]  ;;  %v620_v44 = vld [vmem:[%s2686_s27 + $0xc0] sm:$0xff] }
  0x9f   : >> { %609 = vst [vmem:[%s2682_s26 + $0x20] sm:$0xff] %v608_v38  ;;  %s4736_s7 = smov (%p805_p2, %s804_s7), 0  ;;  %v622_v45 = vld [vmem:[%s2686_s27 + $0xd8] sm:$0xff]  ;;  %v624_v46 = vld [vmem:[%s2686_s27 + $0xf0] sm:$0xff]  ;;  %v626_v47 = vld [vmem:[%s2686_s27 + $0x108] sm:$0xff] }
  0xa0   : >> { %611 = vst [vmem:[%s2682_s26 + $0x30] sm:$0xff] %v610_v39  ;;  %s2110_s8 = sshll.u32 %s4736_s7, 3  ;;  %v628_v48 = vld [vmem:[%s2686_s27 + $0x120] sm:$0xff]  ;;  %v630_v49 = vld [vmem:[%s2686_s27 + $0x138] sm:$0xff]  ;;  %v632_v50 = vld [vmem:[%s2686_s27 + $0x150] sm:$0xff]  ;;  %s4717_s29 = smov %s4736_s7 }
  0xa1   : >> { %613 = vst [vmem:[%s2682_s26 + $0x40] sm:$0xff] %v612_v40  ;;  %s3140_s9 = scalar_lea.vmem %s2827_s28, %s2110_s8   ;;  %s3143_s10 = scalar_lea.vmem %s2831_s4, %s2110_s8 [#allocation2]   ;;  %v634_v51 = vld [vmem:[%s2686_s27 + $0x168] sm:$0xff]  ;;  %v636_v52 = vld [vmem:[%s2686_s27 + $0x180] sm:$0xff]  ;;  %v638_v53 = vld [vmem:[%s2686_s27 + $0x198] sm:$0xff] }
  0xa2   : >> { %615 = vst [vmem:[%s2682_s26 + $0x50] sm:$0xff] %v614_v41  ;;  %v640_v54 = vld [vmem:[%s2686_s27 + $0x1b0] sm:$0xff]  ;;  %v642_v55 = vld [vmem:[%s2686_s27 + $0x1c8] sm:$0xff]  ;;  %v644_v56 = vld [vmem:[%s2686_s27 + $0x1e0] sm:$0xff] }
  0xa3   : >> { %617 = vst [vmem:[%s2682_s26 + $0x60] sm:$0xff] %v616_v42  ;;  %v646_v57 = vld [vmem:[%s2686_s27 + $0x1f8] sm:$0xff]  ;;  %v648_v58 = vld [vmem:[%s2686_s27 + $0x210] sm:$0xff]  ;;  %v650_v59 = vld [vmem:[%s2686_s27 + $0x228] sm:$0xff] }
  0xa4   : >> { %619 = vst [vmem:[%s2682_s26 + $0x70] sm:$0xff] %v618_v43  ;;  %v652_v60 = vld [vmem:[%s2686_s27 + $0x240] sm:$0xff]  ;;  %v654_v61 = vld [vmem:[%s2686_s27 + $0x258] sm:$0xff]  ;;  %v656_v62 = vld [vmem:[%s2686_s27 + $0x270] sm:$0xff] }
  0xa5   : >> { %621 = vst [vmem:[%s2682_s26 + $0x80] sm:$0xff] %v620_v44  ;;  %v658_v63 = vld [vmem:[%s2686_s27 + $0x288] sm:$0xff]  ;;  %v660_v0 = vld [vmem:[%s2686_s27 + $0x2a0] sm:$0xff]  ;;  %v662_v1 = vld [vmem:[%s2686_s27 + $0x2b8] sm:$0xff] }
  0xa6   : >> { %623 = vst [vmem:[%s2682_s26 + $0x90] sm:$0xff] %v622_v45  ;;  %v664_v2 = vld [vmem:[%s2686_s27 + $0x2d0] sm:$0xff]  ;;  %v666_v3 = vld [vmem:[%s2686_s27 + $0x2e8] sm:$0xff]  ;;  %v668_v4 = vld [vmem:[%s2686_s27 + $0x300] sm:$0xff] }
  0xa7   : >> { %625 = vst [vmem:[%s2682_s26 + $0xa0] sm:$0xff] %v624_v46  ;;  %v670_v5 = vld [vmem:[%s2686_s27 + $0x318] sm:$0xff]  ;;  %v672_v6 = vld [vmem:[%s2686_s27 + $0x330] sm:$0xff]  ;;  %v674_v7 = vld [vmem:[%s2686_s27 + $0x348] sm:$0xff] }
  0xa8   : >> { %627 = vst [vmem:[%s2682_s26 + $0xb0] sm:$0xff] %v626_v47  ;;  %v676_v8 = vld [vmem:[%s2686_s27 + $0x360] sm:$0xff]  ;;  %v678_v9 = vld [vmem:[%s2686_s27 + $0x378] sm:$0xff]  ;;  %v680_v10 = vld [vmem:[%s2686_s27 + $0x390] sm:$0xff] }
  0xa9   : >> { %629 = vst [vmem:[%s2682_s26 + $0xc0] sm:$0xff] %v628_v48  ;;  %v682_v11 = vld [vmem:[%s2686_s27 + $0x3a8] sm:$0xff]  ;;  %v684_v12 = vld [vmem:[%s2686_s27 + $0x3c0] sm:$0xff]  ;;  %v686_v13 = vld [vmem:[%s2686_s27 + $0x3d8] sm:$0xff] }
  0xaa   : >> { %631 = vst [vmem:[%s2682_s26 + $0xd0] sm:$0xff] %v630_v49  ;;  %v688_v14 = vld [vmem:[%s2686_s27 + $0x3f0] sm:$0xff]  ;;  %v690_v15 = vld [vmem:[%s2686_s27 + $0x408] sm:$0xff]  ;;  %v692_v16 = vld [vmem:[%s2686_s27 + $0x420] sm:$0xff] }
  0xab   : >> { %633 = vst [vmem:[%s2682_s26 + $0xe0] sm:$0xff] %v632_v50  ;;  %v694_v17 = vld [vmem:[%s2686_s27 + $0x438] sm:$0xff]  ;;  %v696_v18 = vld [vmem:[%s2686_s27 + $0x450] sm:$0xff]  ;;  %v698_v19 = vld [vmem:[%s2686_s27 + $0x468] sm:$0xff] }
  0xac   : >> { %635 = vst [vmem:[%s2682_s26 + $0xf0] sm:$0xff] %v634_v51  ;;  %v700_v20 = vld [vmem:[%s2686_s27 + $0x480] sm:$0xff]  ;;  %v702_v21 = vld [vmem:[%s2686_s27 + $0x498] sm:$0xff]  ;;  %v704_v22 = vld [vmem:[%s2686_s27 + $0x4b0] sm:$0xff] }
  0xad   : >> { %637 = vst [vmem:[%s2682_s26 + $0x100] sm:$0xff] %v636_v52  ;;  %v706_v23 = vld [vmem:[%s2686_s27 + $0x4c8] sm:$0xff]  ;;  %v708_v24 = vld [vmem:[%s2686_s27 + $0x4e0] sm:$0xff]  ;;  %v710_v25 = vld [vmem:[%s2686_s27 + $0x4f8] sm:$0xff] }
  0xae   : >> { %639 = vst [vmem:[%s2682_s26 + $0x110] sm:$0xff] %v638_v53  ;;  %v712_v26 = vld [vmem:[%s2686_s27 + $0x510] sm:$0xff]  ;;  %v714_v27 = vld [vmem:[%s2686_s27 + $0x528] sm:$0xff]  ;;  %v716_v28 = vld [vmem:[%s2686_s27 + $0x540] sm:$0xff] }
  0xaf   : >> { %641 = vst [vmem:[%s2682_s26 + $0x120] sm:$0xff] %v640_v54  ;;  %v718_v29 = vld [vmem:[%s2686_s27 + $0x558] sm:$0xff]  ;;  %v720_v30 = vld [vmem:[%s2686_s27 + $0x570] sm:$0xff]  ;;  %v722_v31 = vld [vmem:[%s2686_s27 + $0x588] sm:$0xff] }
  0xb0   : >> { %643 = vst [vmem:[%s2682_s26 + $0x130] sm:$0xff] %v642_v55  ;;  %v724_v32 = vld [vmem:[%s2686_s27 + $0x5a0] sm:$0xff]  ;;  %v726_v33 = vld [vmem:[%s2686_s27 + $0x5b8] sm:$0xff]  ;;  %v728_v34 = vld [vmem:[%s2686_s27 + $0x5d0] sm:$0xff] }
  0xb1   : >> { %645 = vst [vmem:[%s2682_s26 + $0x140] sm:$0xff] %v644_v56  ;;  %v730_v35 = vld [vmem:[%s2686_s27 + $0x5e8] sm:$0xff]  ;;  %v732_v36 = vld [vmem:[%s2686_s27 + $0x600] sm:$0xff]  ;;  %v734_v37 = vld [vmem:[%s2686_s27 + $0x618] sm:$0xff] }
  0xb2   : >> { %647 = vst [vmem:[%s2682_s26 + $0x150] sm:$0xff] %v646_v57  ;;  %v736_v38 = vld [vmem:[%s2686_s27 + $0x630] sm:$0xff]  ;;  %v738_v39 = vld [vmem:[%s2686_s27 + $0x648] sm:$0xff]  ;;  %v740_v40 = vld [vmem:[%s2686_s27 + $0x660] sm:$0xff] }
  0xb3   : >> { %649 = vst [vmem:[%s2682_s26 + $0x160] sm:$0xff] %v648_v58  ;;  %v742_v41 = vld [vmem:[%s2686_s27 + $0x678] sm:$0xff]  ;;  %v744_v42 = vld [vmem:[%s2686_s27 + $0x690] sm:$0xff]  ;;  %v746_v43 = vld [vmem:[%s2686_s27 + $0x6a8] sm:$0xff] }
  0xb4   : >> { %651 = vst [vmem:[%s2682_s26 + $0x170] sm:$0xff] %v650_v59  ;;  %v748_v44 = vld [vmem:[%s2686_s27 + $0x6c0] sm:$0xff]  ;;  %v750_v45 = vld [vmem:[%s2686_s27 + $0x6d8] sm:$0xff]  ;;  %v752_v46 = vld [vmem:[%s2686_s27 + $0x6f0] sm:$0xff] }
  0xb5   : >> { %653 = vst [vmem:[%s2682_s26 + $0x180] sm:$0xff] %v652_v60  ;;  %v754_v47 = vld [vmem:[%s2686_s27 + $0x708] sm:$0xff]  ;;  %v756_v48 = vld [vmem:[%s2686_s27 + $0x720] sm:$0xff]  ;;  %v758_v49 = vld [vmem:[%s2686_s27 + $0x738] sm:$0xff] }
  0xb6   : >> { %655 = vst [vmem:[%s2682_s26 + $0x190] sm:$0xff] %v654_v61  ;;  %v760_v50 = vld [vmem:[%s2686_s27 + $0x750] sm:$0xff]  ;;  %v762_v51 = vld [vmem:[%s2686_s27 + $0x768] sm:$0xff]  ;;  %v764_v52 = vld [vmem:[%s2686_s27 + $0x780] sm:$0xff] }
  0xb7   : >> { %657 = vst [vmem:[%s2682_s26 + $0x1a0] sm:$0xff] %v656_v62  ;;  %v766_v53 = vld [vmem:[%s2686_s27 + $0x798] sm:$0xff]  ;;  %v768_v54 = vld [vmem:[%s2686_s27 + $0x7b0] sm:$0xff]  ;;  %v770_v55 = vld [vmem:[%s2686_s27 + $0x7c8] sm:$0xff] }
  0xb8   : >> { %659 = vst [vmem:[%s2682_s26 + $0x1b0] sm:$0xff] %v658_v63  ;;  %v772_v56 = vld [vmem:[%s2686_s27 + $0x7e0] sm:$0xff]  ;;  %v774_v57 = vld [vmem:[%s2686_s27 + $0x7f8] sm:$0xff]  ;;  %v776_v58 = vld [vmem:[%s2686_s27 + $0x810] sm:$0xff] }
  0xb9   : >> { %661 = vst [vmem:[%s2682_s26 + $0x1c0] sm:$0xff] %v660_v0  ;;  %v778_v59 = vld [vmem:[%s2686_s27 + $0x828] sm:$0xff]  ;;  %v780_v60 = vld [vmem:[%s2686_s27 + $0x840] sm:$0xff]  ;;  %v782_v61 = vld [vmem:[%s2686_s27 + $0x858] sm:$0xff] }
  0xba   : >> { %663 = vst [vmem:[%s2682_s26 + $0x1d0] sm:$0xff] %v662_v1  ;;  %v784_v62 = vld [vmem:[%s2686_s27 + $0x870] sm:$0xff]  ;;  %v786_v63 = vld [vmem:[%s2686_s27 + $0x888] sm:$0xff]  ;;  %v788_v0 = vld [vmem:[%s2686_s27 + $0x8a0] sm:$0xff] }
  0xbb   : >> { %665 = vst [vmem:[%s2682_s26 + $0x1e0] sm:$0xff] %v664_v2  ;;  %v790_v1 = vld [vmem:[%s2686_s27 + $0x8b8] sm:$0xff]  ;;  %v792_v2 = vld [vmem:[%s2686_s27 + $0x8d0] sm:$0xff] }
  0xbc   : >> { %667 = vst [vmem:[%s2682_s26 + $0x1f0] sm:$0xff] %v666_v3  ;;  %v794_v3 = vld [vmem:[%s2686_s27 + $0x8e8] sm:$0xff] }
  0xbd   : >> { %669 = vst [vmem:[%s2682_s26 + $0x200] sm:$0xff] %v668_v4  ;;  %v796_v4 = vld [vmem:[%s2686_s27 + $0x900] sm:$0xff] }
  0xbe   : >> { %671 = vst [vmem:[%s2682_s26 + $0x210] sm:$0xff] %v670_v5  ;;  %v798_v5 = vld [vmem:[%s2686_s27 + $0x918] sm:$0xff] }
  0xbf   : >> { %673 = vst [vmem:[%s2682_s26 + $0x220] sm:$0xff] %v672_v6  ;;  %v800_v6 = vld [vmem:[%s2686_s27 + $0x930] sm:$0xff] }
  0xc0   : >> { %675 = vst [vmem:[%s2682_s26 + $0x230] sm:$0xff] %v674_v7  ;;  %v802_v7 = vld [vmem:[%s2686_s27 + $0x948] sm:$0xff]  ;;  %s4716_s27 = smov %s3140_s9 }
  0xc1   : >> { %677 = vst [vmem:[%s2682_s26 + $0x240] sm:$0xff] %v676_v8 }
  0xc2   : >> { %679 = vst [vmem:[%s2682_s26 + $0x250] sm:$0xff] %v678_v9 }
  0xc3   : >> { %681 = vst [vmem:[%s2682_s26 + $0x260] sm:$0xff] %v680_v10 }
  0xc4   : >> { %683 = vst [vmem:[%s2682_s26 + $0x270] sm:$0xff] %v682_v11 }
  0xc5   : >> { %685 = vst [vmem:[%s2682_s26 + $0x280] sm:$0xff] %v684_v12 }
  0xc6   : >> { %687 = vst [vmem:[%s2682_s26 + $0x290] sm:$0xff] %v686_v13 }
  0xc7   : >> { %689 = vst [vmem:[%s2682_s26 + $0x2a0] sm:$0xff] %v688_v14 }
  0xc8   : >> { %691 = vst [vmem:[%s2682_s26 + $0x2b0] sm:$0xff] %v690_v15 }
  0xc9   : >> { %693 = vst [vmem:[%s2682_s26 + $0x2c0] sm:$0xff] %v692_v16 }
  0xca   : >> { %695 = vst [vmem:[%s2682_s26 + $0x2d0] sm:$0xff] %v694_v17 }
  0xcb   : >> { %697 = vst [vmem:[%s2682_s26 + $0x2e0] sm:$0xff] %v696_v18 }
  0xcc   : >> { %699 = vst [vmem:[%s2682_s26 + $0x2f0] sm:$0xff] %v698_v19 }
  0xcd   : >> { %701 = vst [vmem:[%s2682_s26 + $0x300] sm:$0xff] %v700_v20 }
  0xce   : >> { %703 = vst [vmem:[%s2682_s26 + $0x310] sm:$0xff] %v702_v21 }
  0xcf   : >> { %705 = vst [vmem:[%s2682_s26 + $0x320] sm:$0xff] %v704_v22 }
  0xd0   : >> { %707 = vst [vmem:[%s2682_s26 + $0x330] sm:$0xff] %v706_v23 }
  0xd1   : >> { %709 = vst [vmem:[%s2682_s26 + $0x340] sm:$0xff] %v708_v24 }
  0xd2   : >> { %711 = vst [vmem:[%s2682_s26 + $0x350] sm:$0xff] %v710_v25 }
  0xd3   : >> { %713 = vst [vmem:[%s2682_s26 + $0x360] sm:$0xff] %v712_v26 }
  0xd4   : >> { %715 = vst [vmem:[%s2682_s26 + $0x370] sm:$0xff] %v714_v27 }
  0xd5   : >> { %717 = vst [vmem:[%s2682_s26 + $0x380] sm:$0xff] %v716_v28 }
  0xd6   : >> { %719 = vst [vmem:[%s2682_s26 + $0x390] sm:$0xff] %v718_v29 }
  0xd7   : >> { %721 = vst [vmem:[%s2682_s26 + $0x3a0] sm:$0xff] %v720_v30 }
  0xd8   : >> { %723 = vst [vmem:[%s2682_s26 + $0x3b0] sm:$0xff] %v722_v31 }
  0xd9   : >> { %725 = vst [vmem:[%s2682_s26 + $0x3c0] sm:$0xff] %v724_v32 }
  0xda   : >> { %727 = vst [vmem:[%s2682_s26 + $0x3d0] sm:$0xff] %v726_v33 }
  0xdb   : >> { %729 = vst [vmem:[%s2682_s26 + $0x3e0] sm:$0xff] %v728_v34 }
  0xdc   : >> { %731 = vst [vmem:[%s2682_s26 + $0x3f0] sm:$0xff] %v730_v35 }
  0xdd   : >> { %733 = vst [vmem:[%s2682_s26 + $0x400] sm:$0xff] %v732_v36 }
  0xde   : >> { %735 = vst [vmem:[%s2682_s26 + $0x410] sm:$0xff] %v734_v37 }
  0xdf   : >> { %737 = vst [vmem:[%s2682_s26 + $0x420] sm:$0xff] %v736_v38 }
  0xe0   : >> { %739 = vst [vmem:[%s2682_s26 + $0x430] sm:$0xff] %v738_v39 }
  0xe1   : >> { %741 = vst [vmem:[%s2682_s26 + $0x440] sm:$0xff] %v740_v40 }
  0xe2   : >> { %743 = vst [vmem:[%s2682_s26 + $0x450] sm:$0xff] %v742_v41 }
  0xe3   : >> { %745 = vst [vmem:[%s2682_s26 + $0x460] sm:$0xff] %v744_v42 }
  0xe4   : >> { %747 = vst [vmem:[%s2682_s26 + $0x470] sm:$0xff] %v746_v43 }
  0xe5   : >> { %749 = vst [vmem:[%s2682_s26 + $0x480] sm:$0xff] %v748_v44 }
  0xe6   : >> { %751 = vst [vmem:[%s2682_s26 + $0x490] sm:$0xff] %v750_v45 }
  0xe7   : >> { %753 = vst [vmem:[%s2682_s26 + $0x4a0] sm:$0xff] %v752_v46 }
  0xe8   : >> { %755 = vst [vmem:[%s2682_s26 + $0x4b0] sm:$0xff] %v754_v47 }
  0xe9   : >> { %757 = vst [vmem:[%s2682_s26 + $0x4c0] sm:$0xff] %v756_v48 }
  0xea   : >> { %759 = vst [vmem:[%s2682_s26 + $0x4d0] sm:$0xff] %v758_v49 }
  0xeb   : >> { %761 = vst [vmem:[%s2682_s26 + $0x4e0] sm:$0xff] %v760_v50 }
  0xec   : >> { %763 = vst [vmem:[%s2682_s26 + $0x4f0] sm:$0xff] %v762_v51 }
  0xed   : >> { %765 = vst [vmem:[%s2682_s26 + $0x500] sm:$0xff] %v764_v52 }
  0xee   : >> { %767 = vst [vmem:[%s2682_s26 + $0x510] sm:$0xff] %v766_v53 }
  0xef   : >> { %769 = vst [vmem:[%s2682_s26 + $0x520] sm:$0xff] %v768_v54 }
  0xf0   : >> { %771 = vst [vmem:[%s2682_s26 + $0x530] sm:$0xff] %v770_v55 }
  0xf1   : >> { %773 = vst [vmem:[%s2682_s26 + $0x540] sm:$0xff] %v772_v56 }
  0xf2   : >> { %775 = vst [vmem:[%s2682_s26 + $0x550] sm:$0xff] %v774_v57 }
  0xf3   : >> { %777 = vst [vmem:[%s2682_s26 + $0x560] sm:$0xff] %v776_v58 }
  0xf4   : >> { %779 = vst [vmem:[%s2682_s26 + $0x570] sm:$0xff] %v778_v59 }
  0xf5   : >> { %781 = vst [vmem:[%s2682_s26 + $0x580] sm:$0xff] %v780_v60 }
  0xf6   : >> { %783 = vst [vmem:[%s2682_s26 + $0x590] sm:$0xff] %v782_v61 }
  0xf7   : >> { %785 = vst [vmem:[%s2682_s26 + $0x5a0] sm:$0xff] %v784_v62 }
  0xf8   : >> { %787 = vst [vmem:[%s2682_s26 + $0x5b0] sm:$0xff] %v786_v63 }
  0xf9   : >> { %789 = vst [vmem:[%s2682_s26 + $0x5c0] sm:$0xff] %v788_v0 }
  0xfa   : >> { %791 = vst [vmem:[%s2682_s26 + $0x5d0] sm:$0xff] %v790_v1 }
  0xfb   : >> { %793 = vst [vmem:[%s2682_s26 + $0x5e0] sm:$0xff] %v792_v2 }
  0xfc   : >> { %795 = vst [vmem:[%s2682_s26 + $0x5f0] sm:$0xff] %v794_v3  ;;  %600 = sbr.rel (!%p597_p3) target bundleno = 156 (0x9c), region = 227 }
  0xfd   : >> { %797 = vst [vmem:[%s2682_s26 + $0x600] sm:$0xff] %v796_v4 }
  0xfe   : >> { %799 = vst [vmem:[%s2682_s26 + $0x610] sm:$0xff] %v798_v5 }
  0xff   : >> { %801 = vst [vmem:[%s2682_s26 + $0x620] sm:$0xff] %v800_v6 }
 0x100   : >> { %803 = vst [vmem:[%s2682_s26 + $0x630] sm:$0xff] %v802_v7  ;;  %s4715_s26 = smov %s3143_s10 }
 0x101 PF: > { %s2760_s11 = smov 1  }
 0x102   : > { %s811_s17 = sshll.u32 %s2760_s11, %s2835_s5 }
 0x103   : > { %s3344_s18 = sadd.s32 4294967295, %s811_s17 }
 0x104   : > { %v821_v8 = vld [vmem:[%s3094_s24] sm:%s3344_s18]  ;;  %v823_v9 = vld [vmem:[%s3094_s24 + $0x18] sm:%s3344_s18] }
 0x105   : > { %822 = vst [vmem:[%s3097_s25] sm:%s3344_s18] %v821_v8  ;;  %v825_v10 = vld [vmem:[%s3094_s24 + $0x30] sm:%s3344_s18] }
 0x106   : > { %824 = vst [vmem:[%s3097_s25 + $0x10] sm:%s3344_s18] %v823_v9  ;;  %v827_v11 = vld [vmem:[%s3094_s24 + $0x48] sm:%s3344_s18] }
 0x107   : > { %826 = vst [vmem:[%s3097_s25 + $0x20] sm:%s3344_s18] %v825_v10  ;;  %v829_v12 = vld [vmem:[%s3094_s24 + $0x60] sm:%s3344_s18] }
 0x108   : > { %828 = vst [vmem:[%s3097_s25 + $0x30] sm:%s3344_s18] %v827_v11  ;;  %v831_v13 = vld [vmem:[%s3094_s24 + $0x78] sm:%s3344_s18] }
 0x109   : > { %830 = vst [vmem:[%s3097_s25 + $0x40] sm:%s3344_s18] %v829_v12  ;;  %v833_v14 = vld [vmem:[%s3094_s24 + $0x90] sm:%s3344_s18] }
 0x10a   : > { %832 = vst [vmem:[%s3097_s25 + $0x50] sm:%s3344_s18] %v831_v13  ;;  %v835_v15 = vld [vmem:[%s3094_s24 + $0xa8] sm:%s3344_s18] }
 0x10b   : > { %834 = vst [vmem:[%s3097_s25 + $0x60] sm:%s3344_s18] %v833_v14  ;;  %v837_v16 = vld [vmem:[%s3094_s24 + $0xc0] sm:%s3344_s18] }
 0x10c   : > { %836 = vst [vmem:[%s3097_s25 + $0x70] sm:%s3344_s18] %v835_v15  ;;  %v839_v17 = vld [vmem:[%s3094_s24 + $0xd8] sm:%s3344_s18] }
 0x10d   : > { %838 = vst [vmem:[%s3097_s25 + $0x80] sm:%s3344_s18] %v837_v16  ;;  %v841_v18 = vld [vmem:[%s3094_s24 + $0xf0] sm:%s3344_s18] }
 0x10e   : > { %840 = vst [vmem:[%s3097_s25 + $0x90] sm:%s3344_s18] %v839_v17  ;;  %v843_v19 = vld [vmem:[%s3094_s24 + $0x108] sm:%s3344_s18] }
 0x10f   : > { %842 = vst [vmem:[%s3097_s25 + $0xa0] sm:%s3344_s18] %v841_v18  ;;  %v845_v20 = vld [vmem:[%s3094_s24 + $0x120] sm:%s3344_s18] }
 0x110   : > { %844 = vst [vmem:[%s3097_s25 + $0xb0] sm:%s3344_s18] %v843_v19  ;;  %v847_v21 = vld [vmem:[%s3094_s24 + $0x138] sm:%s3344_s18] }
 0x111   : > { %846 = vst [vmem:[%s3097_s25 + $0xc0] sm:%s3344_s18] %v845_v20  ;;  %v849_v22 = vld [vmem:[%s3094_s24 + $0x150] sm:%s3344_s18] }
 0x112   : > { %848 = vst [vmem:[%s3097_s25 + $0xd0] sm:%s3344_s18] %v847_v21  ;;  %v851_v23 = vld [vmem:[%s3094_s24 + $0x168] sm:%s3344_s18] }
 0x113   : > { %850 = vst [vmem:[%s3097_s25 + $0xe0] sm:%s3344_s18] %v849_v22  ;;  %v853_v24 = vld [vmem:[%s3094_s24 + $0x180] sm:%s3344_s18] }
 0x114   : > { %852 = vst [vmem:[%s3097_s25 + $0xf0] sm:%s3344_s18] %v851_v23  ;;  %v855_v25 = vld [vmem:[%s3094_s24 + $0x198] sm:%s3344_s18] }
 0x115   : > { %854 = vst [vmem:[%s3097_s25 + $0x100] sm:%s3344_s18] %v853_v24  ;;  %v857_v26 = vld [vmem:[%s3094_s24 + $0x1b0] sm:%s3344_s18] }
 0x116   : > { %856 = vst [vmem:[%s3097_s25 + $0x110] sm:%s3344_s18] %v855_v25  ;;  %v859_v27 = vld [vmem:[%s3094_s24 + $0x1c8] sm:%s3344_s18] }
 0x117   : > { %858 = vst [vmem:[%s3097_s25 + $0x120] sm:%s3344_s18] %v857_v26  ;;  %v861_v28 = vld [vmem:[%s3094_s24 + $0x1e0] sm:%s3344_s18] }
 0x118   : > { %860 = vst [vmem:[%s3097_s25 + $0x130] sm:%s3344_s18] %v859_v27  ;;  %v863_v29 = vld [vmem:[%s3094_s24 + $0x1f8] sm:%s3344_s18] }
 0x119   : > { %862 = vst [vmem:[%s3097_s25 + $0x140] sm:%s3344_s18] %v861_v28  ;;  %v865_v30 = vld [vmem:[%s3094_s24 + $0x210] sm:%s3344_s18] }
 0x11a   : > { %864 = vst [vmem:[%s3097_s25 + $0x150] sm:%s3344_s18] %v863_v29  ;;  %v867_v31 = vld [vmem:[%s3094_s24 + $0x228] sm:%s3344_s18] }
 0x11b   : > { %866 = vst [vmem:[%s3097_s25 + $0x160] sm:%s3344_s18] %v865_v30  ;;  %v869_v32 = vld [vmem:[%s3094_s24 + $0x240] sm:%s3344_s18] }
 0x11c   : > { %868 = vst [vmem:[%s3097_s25 + $0x170] sm:%s3344_s18] %v867_v31  ;;  %v871_v33 = vld [vmem:[%s3094_s24 + $0x258] sm:%s3344_s18] }
 0x11d   : > { %870 = vst [vmem:[%s3097_s25 + $0x180] sm:%s3344_s18] %v869_v32  ;;  %v873_v34 = vld [vmem:[%s3094_s24 + $0x270] sm:%s3344_s18] }
 0x11e   : > { %872 = vst [vmem:[%s3097_s25 + $0x190] sm:%s3344_s18] %v871_v33  ;;  %v875_v35 = vld [vmem:[%s3094_s24 + $0x288] sm:%s3344_s18] }
 0x11f   : > { %874 = vst [vmem:[%s3097_s25 + $0x1a0] sm:%s3344_s18] %v873_v34  ;;  %v877_v36 = vld [vmem:[%s3094_s24 + $0x2a0] sm:%s3344_s18] }
 0x120   : > { %876 = vst [vmem:[%s3097_s25 + $0x1b0] sm:%s3344_s18] %v875_v35  ;;  %v879_v37 = vld [vmem:[%s3094_s24 + $0x2b8] sm:%s3344_s18] }
 0x121   : > { %878 = vst [vmem:[%s3097_s25 + $0x1c0] sm:%s3344_s18] %v877_v36  ;;  %v881_v38 = vld [vmem:[%s3094_s24 + $0x2d0] sm:%s3344_s18] }
 0x122   : > { %880 = vst [vmem:[%s3097_s25 + $0x1d0] sm:%s3344_s18] %v879_v37  ;;  %v883_v39 = vld [vmem:[%s3094_s24 + $0x2e8] sm:%s3344_s18] }
 0x123   : > { %882 = vst [vmem:[%s3097_s25 + $0x1e0] sm:%s3344_s18] %v881_v38  ;;  %v885_v40 = vld [vmem:[%s3094_s24 + $0x300] sm:%s3344_s18] }
 0x124   : > { %884 = vst [vmem:[%s3097_s25 + $0x1f0] sm:%s3344_s18] %v883_v39  ;;  %v887_v41 = vld [vmem:[%s3094_s24 + $0x318] sm:%s3344_s18] }
 0x125   : > { %886 = vst [vmem:[%s3097_s25 + $0x200] sm:%s3344_s18] %v885_v40  ;;  %v889_v42 = vld [vmem:[%s3094_s24 + $0x330] sm:%s3344_s18] }
 0x126   : > { %888 = vst [vmem:[%s3097_s25 + $0x210] sm:%s3344_s18] %v887_v41  ;;  %v891_v43 = vld [vmem:[%s3094_s24 + $0x348] sm:%s3344_s18] }
 0x127   : > { %890 = vst [vmem:[%s3097_s25 + $0x220] sm:%s3344_s18] %v889_v42  ;;  %v893_v44 = vld [vmem:[%s3094_s24 + $0x360] sm:%s3344_s18] }
 0x128   : > { %892 = vst [vmem:[%s3097_s25 + $0x230] sm:%s3344_s18] %v891_v43  ;;  %v895_v45 = vld [vmem:[%s3094_s24 + $0x378] sm:%s3344_s18] }
 0x129   : > { %894 = vst [vmem:[%s3097_s25 + $0x240] sm:%s3344_s18] %v893_v44  ;;  %v897_v46 = vld [vmem:[%s3094_s24 + $0x390] sm:%s3344_s18] }
 0x12a   : > { %896 = vst [vmem:[%s3097_s25 + $0x250] sm:%s3344_s18] %v895_v45  ;;  %v899_v47 = vld [vmem:[%s3094_s24 + $0x3a8] sm:%s3344_s18] }
 0x12b   : > { %898 = vst [vmem:[%s3097_s25 + $0x260] sm:%s3344_s18] %v897_v46  ;;  %v901_v48 = vld [vmem:[%s3094_s24 + $0x3c0] sm:%s3344_s18] }
 0x12c   : > { %900 = vst [vmem:[%s3097_s25 + $0x270] sm:%s3344_s18] %v899_v47  ;;  %v903_v49 = vld [vmem:[%s3094_s24 + $0x3d8] sm:%s3344_s18] }
 0x12d   : > { %902 = vst [vmem:[%s3097_s25 + $0x280] sm:%s3344_s18] %v901_v48  ;;  %v905_v50 = vld [vmem:[%s3094_s24 + $0x3f0] sm:%s3344_s18] }
 0x12e   : > { %904 = vst [vmem:[%s3097_s25 + $0x290] sm:%s3344_s18] %v903_v49  ;;  %v907_v51 = vld [vmem:[%s3094_s24 + $0x408] sm:%s3344_s18] }
 0x12f   : > { %906 = vst [vmem:[%s3097_s25 + $0x2a0] sm:%s3344_s18] %v905_v50  ;;  %v909_v52 = vld [vmem:[%s3094_s24 + $0x420] sm:%s3344_s18] }
 0x130   : > { %908 = vst [vmem:[%s3097_s25 + $0x2b0] sm:%s3344_s18] %v907_v51  ;;  %v911_v53 = vld [vmem:[%s3094_s24 + $0x438] sm:%s3344_s18] }
 0x131   : > { %910 = vst [vmem:[%s3097_s25 + $0x2c0] sm:%s3344_s18] %v909_v52  ;;  %v913_v54 = vld [vmem:[%s3094_s24 + $0x450] sm:%s3344_s18] }
 0x132   : > { %912 = vst [vmem:[%s3097_s25 + $0x2d0] sm:%s3344_s18] %v911_v53  ;;  %v915_v55 = vld [vmem:[%s3094_s24 + $0x468] sm:%s3344_s18] }
 0x133   : > { %914 = vst [vmem:[%s3097_s25 + $0x2e0] sm:%s3344_s18] %v913_v54  ;;  %v917_v56 = vld [vmem:[%s3094_s24 + $0x480] sm:%s3344_s18] }
 0x134   : > { %916 = vst [vmem:[%s3097_s25 + $0x2f0] sm:%s3344_s18] %v915_v55  ;;  %v919_v57 = vld [vmem:[%s3094_s24 + $0x498] sm:%s3344_s18] }
 0x135   : > { %918 = vst [vmem:[%s3097_s25 + $0x300] sm:%s3344_s18] %v917_v56  ;;  %v921_v58 = vld [vmem:[%s3094_s24 + $0x4b0] sm:%s3344_s18] }
 0x136   : > { %920 = vst [vmem:[%s3097_s25 + $0x310] sm:%s3344_s18] %v919_v57  ;;  %v923_v59 = vld [vmem:[%s3094_s24 + $0x4c8] sm:%s3344_s18] }
 0x137   : > { %922 = vst [vmem:[%s3097_s25 + $0x320] sm:%s3344_s18] %v921_v58  ;;  %v925_v60 = vld [vmem:[%s3094_s24 + $0x4e0] sm:%s3344_s18] }
 0x138   : > { %924 = vst [vmem:[%s3097_s25 + $0x330] sm:%s3344_s18] %v923_v59  ;;  %v927_v61 = vld [vmem:[%s3094_s24 + $0x4f8] sm:%s3344_s18] }
 0x139   : > { %926 = vst [vmem:[%s3097_s25 + $0x340] sm:%s3344_s18] %v925_v60  ;;  %v929_v62 = vld [vmem:[%s3094_s24 + $0x510] sm:%s3344_s18] }
 0x13a   : > { %928 = vst [vmem:[%s3097_s25 + $0x350] sm:%s3344_s18] %v927_v61  ;;  %v931_v63 = vld [vmem:[%s3094_s24 + $0x528] sm:%s3344_s18] }
 0x13b   : > { %930 = vst [vmem:[%s3097_s25 + $0x360] sm:%s3344_s18] %v929_v62  ;;  %v933_v0 = vld [vmem:[%s3094_s24 + $0x540] sm:%s3344_s18] }
 0x13c   : > { %932 = vst [vmem:[%s3097_s25 + $0x370] sm:%s3344_s18] %v931_v63  ;;  %v935_v1 = vld [vmem:[%s3094_s24 + $0x558] sm:%s3344_s18] }
 0x13d   : > { %934 = vst [vmem:[%s3097_s25 + $0x380] sm:%s3344_s18] %v933_v0  ;;  %v937_v2 = vld [vmem:[%s3094_s24 + $0x570] sm:%s3344_s18] }
 0x13e   : > { %936 = vst [vmem:[%s3097_s25 + $0x390] sm:%s3344_s18] %v935_v1  ;;  %v939_v3 = vld [vmem:[%s3094_s24 + $0x588] sm:%s3344_s18] }
 0x13f   : > { %938 = vst [vmem:[%s3097_s25 + $0x3a0] sm:%s3344_s18] %v937_v2  ;;  %v941_v4 = vld [vmem:[%s3094_s24 + $0x5a0] sm:%s3344_s18] }
 0x140   : > { %940 = vst [vmem:[%s3097_s25 + $0x3b0] sm:%s3344_s18] %v939_v3  ;;  %v943_v5 = vld [vmem:[%s3094_s24 + $0x5b8] sm:%s3344_s18] }
 0x141   : > { %942 = vst [vmem:[%s3097_s25 + $0x3c0] sm:%s3344_s18] %v941_v4  ;;  %v945_v6 = vld [vmem:[%s3094_s24 + $0x5d0] sm:%s3344_s18] }
 0x142   : > { %944 = vst [vmem:[%s3097_s25 + $0x3d0] sm:%s3344_s18] %v943_v5  ;;  %v947_v7 = vld [vmem:[%s3094_s24 + $0x5e8] sm:%s3344_s18] }
 0x143   : > { %946 = vst [vmem:[%s3097_s25 + $0x3e0] sm:%s3344_s18] %v945_v6  ;;  %v949_v8 = vld [vmem:[%s3094_s24 + $0x600] sm:%s3344_s18] }
 0x144   : > { %948 = vst [vmem:[%s3097_s25 + $0x3f0] sm:%s3344_s18] %v947_v7  ;;  %v951_v9 = vld [vmem:[%s3094_s24 + $0x618] sm:%s3344_s18] }
 0x145   : > { %950 = vst [vmem:[%s3097_s25 + $0x400] sm:%s3344_s18] %v949_v8  ;;  %v953_v10 = vld [vmem:[%s3094_s24 + $0x630] sm:%s3344_s18] }
 0x146   : > { %952 = vst [vmem:[%s3097_s25 + $0x410] sm:%s3344_s18] %v951_v9  ;;  %v955_v11 = vld [vmem:[%s3094_s24 + $0x648] sm:%s3344_s18] }
 0x147   : > { %954 = vst [vmem:[%s3097_s25 + $0x420] sm:%s3344_s18] %v953_v10  ;;  %v957_v12 = vld [vmem:[%s3094_s24 + $0x660] sm:%s3344_s18] }
 0x148   : > { %956 = vst [vmem:[%s3097_s25 + $0x430] sm:%s3344_s18] %v955_v11  ;;  %v959_v13 = vld [vmem:[%s3094_s24 + $0x678] sm:%s3344_s18] }
 0x149   : > { %958 = vst [vmem:[%s3097_s25 + $0x440] sm:%s3344_s18] %v957_v12  ;;  %v961_v14 = vld [vmem:[%s3094_s24 + $0x690] sm:%s3344_s18] }
 0x14a   : > { %960 = vst [vmem:[%s3097_s25 + $0x450] sm:%s3344_s18] %v959_v13  ;;  %v963_v15 = vld [vmem:[%s3094_s24 + $0x6a8] sm:%s3344_s18] }
 0x14b   : > { %962 = vst [vmem:[%s3097_s25 + $0x460] sm:%s3344_s18] %v961_v14  ;;  %v965_v16 = vld [vmem:[%s3094_s24 + $0x6c0] sm:%s3344_s18] }
 0x14c   : > { %964 = vst [vmem:[%s3097_s25 + $0x470] sm:%s3344_s18] %v963_v15  ;;  %v967_v17 = vld [vmem:[%s3094_s24 + $0x6d8] sm:%s3344_s18] }
 0x14d   : > { %966 = vst [vmem:[%s3097_s25 + $0x480] sm:%s3344_s18] %v965_v16  ;;  %v969_v18 = vld [vmem:[%s3094_s24 + $0x6f0] sm:%s3344_s18] }
 0x14e   : > { %968 = vst [vmem:[%s3097_s25 + $0x490] sm:%s3344_s18] %v967_v17  ;;  %v971_v19 = vld [vmem:[%s3094_s24 + $0x708] sm:%s3344_s18] }
 0x14f   : > { %970 = vst [vmem:[%s3097_s25 + $0x4a0] sm:%s3344_s18] %v969_v18  ;;  %v973_v20 = vld [vmem:[%s3094_s24 + $0x720] sm:%s3344_s18] }
 0x150   : > { %972 = vst [vmem:[%s3097_s25 + $0x4b0] sm:%s3344_s18] %v971_v19  ;;  %v975_v21 = vld [vmem:[%s3094_s24 + $0x738] sm:%s3344_s18] }
 0x151   : > { %974 = vst [vmem:[%s3097_s25 + $0x4c0] sm:%s3344_s18] %v973_v20  ;;  %v977_v22 = vld [vmem:[%s3094_s24 + $0x750] sm:%s3344_s18] }
 0x152   : > { %976 = vst [vmem:[%s3097_s25 + $0x4d0] sm:%s3344_s18] %v975_v21  ;;  %v979_v23 = vld [vmem:[%s3094_s24 + $0x768] sm:%s3344_s18] }
 0x153   : > { %978 = vst [vmem:[%s3097_s25 + $0x4e0] sm:%s3344_s18] %v977_v22  ;;  %v981_v24 = vld [vmem:[%s3094_s24 + $0x780] sm:%s3344_s18] }
 0x154   : > { %980 = vst [vmem:[%s3097_s25 + $0x4f0] sm:%s3344_s18] %v979_v23  ;;  %v983_v25 = vld [vmem:[%s3094_s24 + $0x798] sm:%s3344_s18] }
 0x155   : > { %982 = vst [vmem:[%s3097_s25 + $0x500] sm:%s3344_s18] %v981_v24  ;;  %v985_v26 = vld [vmem:[%s3094_s24 + $0x7b0] sm:%s3344_s18] }
 0x156   : > { %984 = vst [vmem:[%s3097_s25 + $0x510] sm:%s3344_s18] %v983_v25  ;;  %v987_v27 = vld [vmem:[%s3094_s24 + $0x7c8] sm:%s3344_s18] }
 0x157   : > { %986 = vst [vmem:[%s3097_s25 + $0x520] sm:%s3344_s18] %v985_v26  ;;  %v989_v28 = vld [vmem:[%s3094_s24 + $0x7e0] sm:%s3344_s18] }
 0x158   : > { %988 = vst [vmem:[%s3097_s25 + $0x530] sm:%s3344_s18] %v987_v27  ;;  %v991_v29 = vld [vmem:[%s3094_s24 + $0x7f8] sm:%s3344_s18] }
 0x159   : > { %990 = vst [vmem:[%s3097_s25 + $0x540] sm:%s3344_s18] %v989_v28  ;;  %v993_v30 = vld [vmem:[%s3094_s24 + $0x810] sm:%s3344_s18] }
 0x15a   : > { %992 = vst [vmem:[%s3097_s25 + $0x550] sm:%s3344_s18] %v991_v29  ;;  %v995_v31 = vld [vmem:[%s3094_s24 + $0x828] sm:%s3344_s18] }
 0x15b   : > { %994 = vst [vmem:[%s3097_s25 + $0x560] sm:%s3344_s18] %v993_v30  ;;  %v997_v32 = vld [vmem:[%s3094_s24 + $0x840] sm:%s3344_s18] }
 0x15c   : > { %996 = vst [vmem:[%s3097_s25 + $0x570] sm:%s3344_s18] %v995_v31  ;;  %v999_v33 = vld [vmem:[%s3094_s24 + $0x858] sm:%s3344_s18] }
 0x15d   : > { %998 = vst [vmem:[%s3097_s25 + $0x580] sm:%s3344_s18] %v997_v32  ;;  %v1001_v34 = vld [vmem:[%s3094_s24 + $0x870] sm:%s3344_s18] }
 0x15e   : > { %1000 = vst [vmem:[%s3097_s25 + $0x590] sm:%s3344_s18] %v999_v33  ;;  %v1003_v35 = vld [vmem:[%s3094_s24 + $0x888] sm:%s3344_s18] }
 0x15f   : > { %1002 = vst [vmem:[%s3097_s25 + $0x5a0] sm:%s3344_s18] %v1001_v34  ;;  %v1005_v36 = vld [vmem:[%s3094_s24 + $0x8a0] sm:%s3344_s18] }
 0x160   : > { %1004 = vst [vmem:[%s3097_s25 + $0x5b0] sm:%s3344_s18] %v1003_v35  ;;  %v1007_v37 = vld [vmem:[%s3094_s24 + $0x8b8] sm:%s3344_s18] }
 0x161   : > { %1006 = vst [vmem:[%s3097_s25 + $0x5c0] sm:%s3344_s18] %v1005_v36  ;;  %v1009_v38 = vld [vmem:[%s3094_s24 + $0x8d0] sm:%s3344_s18] }
 0x162   : > { %1008 = vst [vmem:[%s3097_s25 + $0x5d0] sm:%s3344_s18] %v1007_v37  ;;  %v1011_v39 = vld [vmem:[%s3094_s24 + $0x8e8] sm:%s3344_s18] }
 0x163   : > { %1010 = vst [vmem:[%s3097_s25 + $0x5e0] sm:%s3344_s18] %v1009_v38  ;;  %v1013_v40 = vld [vmem:[%s3094_s24 + $0x900] sm:%s3344_s18] }
 0x164   : > { %1012 = vst [vmem:[%s3097_s25 + $0x5f0] sm:%s3344_s18] %v1011_v39  ;;  %v1015_v41 = vld [vmem:[%s3094_s24 + $0x918] sm:%s3344_s18] }
 0x165   : > { %1014 = vst [vmem:[%s3097_s25 + $0x600] sm:%s3344_s18] %v1013_v40  ;;  %v1017_v42 = vld [vmem:[%s3094_s24 + $0x930] sm:%s3344_s18] }
 0x166   : > { %1016 = vst [vmem:[%s3097_s25 + $0x610] sm:%s3344_s18] %v1015_v41  ;;  %v1019_v43 = vld [vmem:[%s3094_s24 + $0x948] sm:%s3344_s18] }
 0x167   : > { %1018 = vst [vmem:[%s3097_s25 + $0x620] sm:%s3344_s18] %v1017_v42 }
 0x168   : > { %1020 = vst [vmem:[%s3097_s25 + $0x630] sm:%s3344_s18] %v1019_v43 }
 0x169 PF: > { %p2113_p4 = scmp.ge.u32.totalorder %s2829_s30, 8 }
 0x16a   : > { %s2761_s5 = smov (!%p2113_p4), 1  }
 0x16b   : > { %153 = sbr.rel (%p2113_p4) target bundleno = 469 (0x1d5), region = 40  ;;  %s154_s21 = sshll.u32 (!%p2113_p4), %s2761_s5, %s2829_s30 }
 0x16c   : > { %s3748_s22 = sadd.s32 (!%p2113_p4), 4294967295, %s154_s21 }
 0x170   : > { %v164_v44 = vld [vmem:[%s2827_s28] sm:%s3748_s22]  ;;  %v166_v45 = vld [vmem:[%s2827_s28 + $0x18] sm:%s3748_s22] }
 0x171   : > { %165 = vst [vmem:[%s2831_s4] sm:%s3748_s22] %v164_v44  ;;  %v168_v46 = vld [vmem:[%s2827_s28 + $0x30] sm:%s3748_s22] }
 0x172   : > { %167 = vst [vmem:[%s2831_s4 + $0x10] sm:%s3748_s22] %v166_v45  ;;  %v170_v47 = vld [vmem:[%s2827_s28 + $0x48] sm:%s3748_s22] }
 0x173   : > { %169 = vst [vmem:[%s2831_s4 + $0x20] sm:%s3748_s22] %v168_v46  ;;  %v172_v48 = vld [vmem:[%s2827_s28 + $0x60] sm:%s3748_s22] }
 0x174   : > { %171 = vst [vmem:[%s2831_s4 + $0x30] sm:%s3748_s22] %v170_v47  ;;  %v174_v49 = vld [vmem:[%s2827_s28 + $0x78] sm:%s3748_s22] }
 0x175   : > { %173 = vst [vmem:[%s2831_s4 + $0x40] sm:%s3748_s22] %v172_v48  ;;  %v176_v50 = vld [vmem:[%s2827_s28 + $0x90] sm:%s3748_s22] }
 0x176   : > { %175 = vst [vmem:[%s2831_s4 + $0x50] sm:%s3748_s22] %v174_v49  ;;  %v178_v51 = vld [vmem:[%s2827_s28 + $0xa8] sm:%s3748_s22] }
 0x177   : > { %177 = vst [vmem:[%s2831_s4 + $0x60] sm:%s3748_s22] %v176_v50  ;;  %v180_v52 = vld [vmem:[%s2827_s28 + $0xc0] sm:%s3748_s22] }
 0x178   : > { %179 = vst [vmem:[%s2831_s4 + $0x70] sm:%s3748_s22] %v178_v51  ;;  %v182_v53 = vld [vmem:[%s2827_s28 + $0xd8] sm:%s3748_s22] }
 0x179   : > { %181 = vst [vmem:[%s2831_s4 + $0x80] sm:%s3748_s22] %v180_v52  ;;  %v184_v54 = vld [vmem:[%s2827_s28 + $0xf0] sm:%s3748_s22] }
 0x17a   : > { %183 = vst [vmem:[%s2831_s4 + $0x90] sm:%s3748_s22] %v182_v53  ;;  %v186_v55 = vld [vmem:[%s2827_s28 + $0x108] sm:%s3748_s22] }
 0x17b   : > { %185 = vst [vmem:[%s2831_s4 + $0xa0] sm:%s3748_s22] %v184_v54  ;;  %v188_v56 = vld [vmem:[%s2827_s28 + $0x120] sm:%s3748_s22] }
 0x17c   : > { %187 = vst [vmem:[%s2831_s4 + $0xb0] sm:%s3748_s22] %v186_v55  ;;  %v190_v57 = vld [vmem:[%s2827_s28 + $0x138] sm:%s3748_s22] }
 0x17d   : > { %189 = vst [vmem:[%s2831_s4 + $0xc0] sm:%s3748_s22] %v188_v56  ;;  %v192_v58 = vld [vmem:[%s2827_s28 + $0x150] sm:%s3748_s22] }
 0x17e   : > { %191 = vst [vmem:[%s2831_s4 + $0xd0] sm:%s3748_s22] %v190_v57  ;;  %v194_v59 = vld [vmem:[%s2827_s28 + $0x168] sm:%s3748_s22] }
 0x17f   : > { %193 = vst [vmem:[%s2831_s4 + $0xe0] sm:%s3748_s22] %v192_v58  ;;  %v196_v60 = vld [vmem:[%s2827_s28 + $0x180] sm:%s3748_s22] }
 0x180   : > { %195 = vst [vmem:[%s2831_s4 + $0xf0] sm:%s3748_s22] %v194_v59  ;;  %v198_v61 = vld [vmem:[%s2827_s28 + $0x198] sm:%s3748_s22] }
 0x181   : > { %197 = vst [vmem:[%s2831_s4 + $0x100] sm:%s3748_s22] %v196_v60  ;;  %v200_v62 = vld [vmem:[%s2827_s28 + $0x1b0] sm:%s3748_s22] }
 0x182   : > { %199 = vst [vmem:[%s2831_s4 + $0x110] sm:%s3748_s22] %v198_v61  ;;  %v202_v63 = vld [vmem:[%s2827_s28 + $0x1c8] sm:%s3748_s22] }
 0x183   : > { %201 = vst [vmem:[%s2831_s4 + $0x120] sm:%s3748_s22] %v200_v62  ;;  %v204_v0 = vld [vmem:[%s2827_s28 + $0x1e0] sm:%s3748_s22] }
 0x184   : > { %203 = vst [vmem:[%s2831_s4 + $0x130] sm:%s3748_s22] %v202_v63  ;;  %v206_v1 = vld [vmem:[%s2827_s28 + $0x1f8] sm:%s3748_s22] }
 0x185   : > { %205 = vst [vmem:[%s2831_s4 + $0x140] sm:%s3748_s22] %v204_v0  ;;  %v208_v2 = vld [vmem:[%s2827_s28 + $0x210] sm:%s3748_s22] }
 0x186   : > { %207 = vst [vmem:[%s2831_s4 + $0x150] sm:%s3748_s22] %v206_v1  ;;  %v210_v3 = vld [vmem:[%s2827_s28 + $0x228] sm:%s3748_s22] }
 0x187   : > { %209 = vst [vmem:[%s2831_s4 + $0x160] sm:%s3748_s22] %v208_v2  ;;  %v212_v4 = vld [vmem:[%s2827_s28 + $0x240] sm:%s3748_s22] }
 0x188   : > { %211 = vst [vmem:[%s2831_s4 + $0x170] sm:%s3748_s22] %v210_v3  ;;  %v214_v5 = vld [vmem:[%s2827_s28 + $0x258] sm:%s3748_s22] }
 0x189   : > { %213 = vst [vmem:[%s2831_s4 + $0x180] sm:%s3748_s22] %v212_v4  ;;  %v216_v6 = vld [vmem:[%s2827_s28 + $0x270] sm:%s3748_s22] }
 0x18a   : > { %215 = vst [vmem:[%s2831_s4 + $0x190] sm:%s3748_s22] %v214_v5  ;;  %v218_v7 = vld [vmem:[%s2827_s28 + $0x288] sm:%s3748_s22] }
 0x18b   : > { %217 = vst [vmem:[%s2831_s4 + $0x1a0] sm:%s3748_s22] %v216_v6  ;;  %v220_v8 = vld [vmem:[%s2827_s28 + $0x2a0] sm:%s3748_s22] }
 0x18c   : > { %219 = vst [vmem:[%s2831_s4 + $0x1b0] sm:%s3748_s22] %v218_v7  ;;  %v222_v9 = vld [vmem:[%s2827_s28 + $0x2b8] sm:%s3748_s22] }
 0x18d   : > { %221 = vst [vmem:[%s2831_s4 + $0x1c0] sm:%s3748_s22] %v220_v8  ;;  %v224_v10 = vld [vmem:[%s2827_s28 + $0x2d0] sm:%s3748_s22] }
 0x18e   : > { %223 = vst [vmem:[%s2831_s4 + $0x1d0] sm:%s3748_s22] %v222_v9  ;;  %v226_v11 = vld [vmem:[%s2827_s28 + $0x2e8] sm:%s3748_s22] }
 0x18f   : > { %225 = vst [vmem:[%s2831_s4 + $0x1e0] sm:%s3748_s22] %v224_v10  ;;  %v228_v12 = vld [vmem:[%s2827_s28 + $0x300] sm:%s3748_s22] }
 0x190   : > { %227 = vst [vmem:[%s2831_s4 + $0x1f0] sm:%s3748_s22] %v226_v11  ;;  %v230_v13 = vld [vmem:[%s2827_s28 + $0x318] sm:%s3748_s22] }
 0x191   : > { %229 = vst [vmem:[%s2831_s4 + $0x200] sm:%s3748_s22] %v228_v12  ;;  %v232_v14 = vld [vmem:[%s2827_s28 + $0x330] sm:%s3748_s22] }
 0x192   : > { %231 = vst [vmem:[%s2831_s4 + $0x210] sm:%s3748_s22] %v230_v13  ;;  %v234_v15 = vld [vmem:[%s2827_s28 + $0x348] sm:%s3748_s22] }
 0x193   : > { %233 = vst [vmem:[%s2831_s4 + $0x220] sm:%s3748_s22] %v232_v14  ;;  %v236_v16 = vld [vmem:[%s2827_s28 + $0x360] sm:%s3748_s22] }
 0x194   : > { %235 = vst [vmem:[%s2831_s4 + $0x230] sm:%s3748_s22] %v234_v15  ;;  %v238_v17 = vld [vmem:[%s2827_s28 + $0x378] sm:%s3748_s22] }
 0x195   : > { %237 = vst [vmem:[%s2831_s4 + $0x240] sm:%s3748_s22] %v236_v16  ;;  %v240_v18 = vld [vmem:[%s2827_s28 + $0x390] sm:%s3748_s22] }
 0x196   : > { %239 = vst [vmem:[%s2831_s4 + $0x250] sm:%s3748_s22] %v238_v17  ;;  %v242_v19 = vld [vmem:[%s2827_s28 + $0x3a8] sm:%s3748_s22] }
 0x197   : > { %241 = vst [vmem:[%s2831_s4 + $0x260] sm:%s3748_s22] %v240_v18  ;;  %v244_v20 = vld [vmem:[%s2827_s28 + $0x3c0] sm:%s3748_s22] }
 0x198   : > { %243 = vst [vmem:[%s2831_s4 + $0x270] sm:%s3748_s22] %v242_v19  ;;  %v246_v21 = vld [vmem:[%s2827_s28 + $0x3d8] sm:%s3748_s22] }
 0x199   : > { %245 = vst [vmem:[%s2831_s4 + $0x280] sm:%s3748_s22] %v244_v20  ;;  %v248_v22 = vld [vmem:[%s2827_s28 + $0x3f0] sm:%s3748_s22] }
 0x19a   : > { %247 = vst [vmem:[%s2831_s4 + $0x290] sm:%s3748_s22] %v246_v21  ;;  %v250_v23 = vld [vmem:[%s2827_s28 + $0x408] sm:%s3748_s22] }
 0x19b   : > { %249 = vst [vmem:[%s2831_s4 + $0x2a0] sm:%s3748_s22] %v248_v22  ;;  %v252_v24 = vld [vmem:[%s2827_s28 + $0x420] sm:%s3748_s22] }
 0x19c   : > { %251 = vst [vmem:[%s2831_s4 + $0x2b0] sm:%s3748_s22] %v250_v23  ;;  %v254_v25 = vld [vmem:[%s2827_s28 + $0x438] sm:%s3748_s22] }
 0x19d   : > { %253 = vst [vmem:[%s2831_s4 + $0x2c0] sm:%s3748_s22] %v252_v24  ;;  %v256_v26 = vld [vmem:[%s2827_s28 + $0x450] sm:%s3748_s22] }
 0x19e   : > { %255 = vst [vmem:[%s2831_s4 + $0x2d0] sm:%s3748_s22] %v254_v25  ;;  %v258_v27 = vld [vmem:[%s2827_s28 + $0x468] sm:%s3748_s22] }
 0x19f   : > { %257 = vst [vmem:[%s2831_s4 + $0x2e0] sm:%s3748_s22] %v256_v26  ;;  %v260_v28 = vld [vmem:[%s2827_s28 + $0x480] sm:%s3748_s22] }
 0x1a0   : > { %259 = vst [vmem:[%s2831_s4 + $0x2f0] sm:%s3748_s22] %v258_v27  ;;  %v262_v29 = vld [vmem:[%s2827_s28 + $0x498] sm:%s3748_s22] }
 0x1a1   : > { %261 = vst [vmem:[%s2831_s4 + $0x300] sm:%s3748_s22] %v260_v28  ;;  %v264_v30 = vld [vmem:[%s2827_s28 + $0x4b0] sm:%s3748_s22] }
 0x1a2   : > { %263 = vst [vmem:[%s2831_s4 + $0x310] sm:%s3748_s22] %v262_v29  ;;  %v266_v31 = vld [vmem:[%s2827_s28 + $0x4c8] sm:%s3748_s22] }
 0x1a3   : > { %265 = vst [vmem:[%s2831_s4 + $0x320] sm:%s3748_s22] %v264_v30  ;;  %v268_v32 = vld [vmem:[%s2827_s28 + $0x4e0] sm:%s3748_s22] }
 0x1a4   : > { %267 = vst [vmem:[%s2831_s4 + $0x330] sm:%s3748_s22] %v266_v31  ;;  %v270_v33 = vld [vmem:[%s2827_s28 + $0x4f8] sm:%s3748_s22] }
 0x1a5   : > { %269 = vst [vmem:[%s2831_s4 + $0x340] sm:%s3748_s22] %v268_v32  ;;  %v272_v34 = vld [vmem:[%s2827_s28 + $0x510] sm:%s3748_s22] }
 0x1a6   : > { %271 = vst [vmem:[%s2831_s4 + $0x350] sm:%s3748_s22] %v270_v33  ;;  %v274_v35 = vld [vmem:[%s2827_s28 + $0x528] sm:%s3748_s22] }
 0x1a7   : > { %273 = vst [vmem:[%s2831_s4 + $0x360] sm:%s3748_s22] %v272_v34  ;;  %v276_v36 = vld [vmem:[%s2827_s28 + $0x540] sm:%s3748_s22] }
 0x1a8   : > { %275 = vst [vmem:[%s2831_s4 + $0x370] sm:%s3748_s22] %v274_v35  ;;  %v278_v37 = vld [vmem:[%s2827_s28 + $0x558] sm:%s3748_s22] }
 0x1a9   : > { %277 = vst [vmem:[%s2831_s4 + $0x380] sm:%s3748_s22] %v276_v36  ;;  %v280_v38 = vld [vmem:[%s2827_s28 + $0x570] sm:%s3748_s22] }
 0x1aa   : > { %279 = vst [vmem:[%s2831_s4 + $0x390] sm:%s3748_s22] %v278_v37  ;;  %v282_v39 = vld [vmem:[%s2827_s28 + $0x588] sm:%s3748_s22] }
 0x1ab   : > { %281 = vst [vmem:[%s2831_s4 + $0x3a0] sm:%s3748_s22] %v280_v38  ;;  %v284_v40 = vld [vmem:[%s2827_s28 + $0x5a0] sm:%s3748_s22] }
 0x1ac   : > { %283 = vst [vmem:[%s2831_s4 + $0x3b0] sm:%s3748_s22] %v282_v39  ;;  %v286_v41 = vld [vmem:[%s2827_s28 + $0x5b8] sm:%s3748_s22] }
 0x1ad   : > { %285 = vst [vmem:[%s2831_s4 + $0x3c0] sm:%s3748_s22] %v284_v40  ;;  %v288_v42 = vld [vmem:[%s2827_s28 + $0x5d0] sm:%s3748_s22] }
 0x1ae   : > { %287 = vst [vmem:[%s2831_s4 + $0x3d0] sm:%s3748_s22] %v286_v41  ;;  %v290_v43 = vld [vmem:[%s2827_s28 + $0x5e8] sm:%s3748_s22] }
 0x1af   : > { %289 = vst [vmem:[%s2831_s4 + $0x3e0] sm:%s3748_s22] %v288_v42  ;;  %v292_v44 = vld [vmem:[%s2827_s28 + $0x600] sm:%s3748_s22] }
 0x1b0   : > { %291 = vst [vmem:[%s2831_s4 + $0x3f0] sm:%s3748_s22] %v290_v43  ;;  %v294_v45 = vld [vmem:[%s2827_s28 + $0x618] sm:%s3748_s22] }
 0x1b1   : > { %293 = vst [vmem:[%s2831_s4 + $0x400] sm:%s3748_s22] %v292_v44  ;;  %v296_v46 = vld [vmem:[%s2827_s28 + $0x630] sm:%s3748_s22] }
 0x1b2   : > { %295 = vst [vmem:[%s2831_s4 + $0x410] sm:%s3748_s22] %v294_v45  ;;  %v298_v47 = vld [vmem:[%s2827_s28 + $0x648] sm:%s3748_s22] }
 0x1b3   : > { %297 = vst [vmem:[%s2831_s4 + $0x420] sm:%s3748_s22] %v296_v46  ;;  %v300_v48 = vld [vmem:[%s2827_s28 + $0x660] sm:%s3748_s22] }
 0x1b4   : > { %299 = vst [vmem:[%s2831_s4 + $0x430] sm:%s3748_s22] %v298_v47  ;;  %v302_v49 = vld [vmem:[%s2827_s28 + $0x678] sm:%s3748_s22] }
 0x1b5   : > { %301 = vst [vmem:[%s2831_s4 + $0x440] sm:%s3748_s22] %v300_v48  ;;  %v304_v50 = vld [vmem:[%s2827_s28 + $0x690] sm:%s3748_s22] }
 0x1b6   : > { %303 = vst [vmem:[%s2831_s4 + $0x450] sm:%s3748_s22] %v302_v49  ;;  %v306_v51 = vld [vmem:[%s2827_s28 + $0x6a8] sm:%s3748_s22] }
 0x1b7   : > { %305 = vst [vmem:[%s2831_s4 + $0x460] sm:%s3748_s22] %v304_v50  ;;  %v308_v52 = vld [vmem:[%s2827_s28 + $0x6c0] sm:%s3748_s22] }
 0x1b8   : > { %307 = vst [vmem:[%s2831_s4 + $0x470] sm:%s3748_s22] %v306_v51  ;;  %v310_v53 = vld [vmem:[%s2827_s28 + $0x6d8] sm:%s3748_s22] }
 0x1b9   : > { %309 = vst [vmem:[%s2831_s4 + $0x480] sm:%s3748_s22] %v308_v52  ;;  %v312_v54 = vld [vmem:[%s2827_s28 + $0x6f0] sm:%s3748_s22] }
 0x1ba   : > { %311 = vst [vmem:[%s2831_s4 + $0x490] sm:%s3748_s22] %v310_v53  ;;  %v314_v55 = vld [vmem:[%s2827_s28 + $0x708] sm:%s3748_s22] }
 0x1bb   : > { %313 = vst [vmem:[%s2831_s4 + $0x4a0] sm:%s3748_s22] %v312_v54  ;;  %v316_v56 = vld [vmem:[%s2827_s28 + $0x720] sm:%s3748_s22] }
 0x1bc   : > { %315 = vst [vmem:[%s2831_s4 + $0x4b0] sm:%s3748_s22] %v314_v55  ;;  %v318_v57 = vld [vmem:[%s2827_s28 + $0x738] sm:%s3748_s22] }
 0x1bd   : > { %317 = vst [vmem:[%s2831_s4 + $0x4c0] sm:%s3748_s22] %v316_v56  ;;  %v320_v58 = vld [vmem:[%s2827_s28 + $0x750] sm:%s3748_s22] }
 0x1be   : > { %319 = vst [vmem:[%s2831_s4 + $0x4d0] sm:%s3748_s22] %v318_v57  ;;  %v322_v59 = vld [vmem:[%s2827_s28 + $0x768] sm:%s3748_s22] }
 0x1bf   : > { %321 = vst [vmem:[%s2831_s4 + $0x4e0] sm:%s3748_s22] %v320_v58  ;;  %v324_v60 = vld [vmem:[%s2827_s28 + $0x780] sm:%s3748_s22] }
 0x1c0   : > { %323 = vst [vmem:[%s2831_s4 + $0x4f0] sm:%s3748_s22] %v322_v59  ;;  %v326_v61 = vld [vmem:[%s2827_s28 + $0x798] sm:%s3748_s22] }
 0x1c1   : > { %325 = vst [vmem:[%s2831_s4 + $0x500] sm:%s3748_s22] %v324_v60  ;;  %v328_v62 = vld [vmem:[%s2827_s28 + $0x7b0] sm:%s3748_s22] }
 0x1c2   : > { %327 = vst [vmem:[%s2831_s4 + $0x510] sm:%s3748_s22] %v326_v61  ;;  %v330_v63 = vld [vmem:[%s2827_s28 + $0x7c8] sm:%s3748_s22] }
 0x1c3   : > { %329 = vst [vmem:[%s2831_s4 + $0x520] sm:%s3748_s22] %v328_v62  ;;  %v332_v0 = vld [vmem:[%s2827_s28 + $0x7e0] sm:%s3748_s22] }
 0x1c4   : > { %331 = vst [vmem:[%s2831_s4 + $0x530] sm:%s3748_s22] %v330_v63  ;;  %v334_v1 = vld [vmem:[%s2827_s28 + $0x7f8] sm:%s3748_s22] }
 0x1c5   : > { %333 = vst [vmem:[%s2831_s4 + $0x540] sm:%s3748_s22] %v332_v0  ;;  %v336_v2 = vld [vmem:[%s2827_s28 + $0x810] sm:%s3748_s22] }
 0x1c6   : > { %335 = vst [vmem:[%s2831_s4 + $0x550] sm:%s3748_s22] %v334_v1  ;;  %v338_v3 = vld [vmem:[%s2827_s28 + $0x828] sm:%s3748_s22] }
 0x1c7   : > { %337 = vst [vmem:[%s2831_s4 + $0x560] sm:%s3748_s22] %v336_v2  ;;  %v340_v4 = vld [vmem:[%s2827_s28 + $0x840] sm:%s3748_s22] }
 0x1c8   : > { %339 = vst [vmem:[%s2831_s4 + $0x570] sm:%s3748_s22] %v338_v3  ;;  %v342_v5 = vld [vmem:[%s2827_s28 + $0x858] sm:%s3748_s22] }
 0x1c9   : > { %341 = vst [vmem:[%s2831_s4 + $0x580] sm:%s3748_s22] %v340_v4  ;;  %v344_v6 = vld [vmem:[%s2827_s28 + $0x870] sm:%s3748_s22] }
 0x1ca   : > { %343 = vst [vmem:[%s2831_s4 + $0x590] sm:%s3748_s22] %v342_v5  ;;  %v346_v7 = vld [vmem:[%s2827_s28 + $0x888] sm:%s3748_s22] }
 0x1cb   : > { %345 = vst [vmem:[%s2831_s4 + $0x5a0] sm:%s3748_s22] %v344_v6  ;;  %v348_v8 = vld [vmem:[%s2827_s28 + $0x8a0] sm:%s3748_s22] }
 0x1cc   : > { %347 = vst [vmem:[%s2831_s4 + $0x5b0] sm:%s3748_s22] %v346_v7  ;;  %v350_v9 = vld [vmem:[%s2827_s28 + $0x8b8] sm:%s3748_s22] }
 0x1cd   : > { %349 = vst [vmem:[%s2831_s4 + $0x5c0] sm:%s3748_s22] %v348_v8  ;;  %v352_v10 = vld [vmem:[%s2827_s28 + $0x8d0] sm:%s3748_s22] }
 0x1ce   : > { %351 = vst [vmem:[%s2831_s4 + $0x5d0] sm:%s3748_s22] %v350_v9  ;;  %v354_v11 = vld [vmem:[%s2827_s28 + $0x8e8] sm:%s3748_s22] }
 0x1cf   : > { %353 = vst [vmem:[%s2831_s4 + $0x5e0] sm:%s3748_s22] %v352_v10  ;;  %v356_v12 = vld [vmem:[%s2827_s28 + $0x900] sm:%s3748_s22] }
 0x1d0   : > { %355 = vst [vmem:[%s2831_s4 + $0x5f0] sm:%s3748_s22] %v354_v11  ;;  %v358_v13 = vld [vmem:[%s2827_s28 + $0x918] sm:%s3748_s22] }
 0x1d1   : > { %357 = vst [vmem:[%s2831_s4 + $0x600] sm:%s3748_s22] %v356_v12  ;;  %v360_v14 = vld [vmem:[%s2827_s28 + $0x930] sm:%s3748_s22] }
 0x1d2   : > { %359 = vst [vmem:[%s2831_s4 + $0x610] sm:%s3748_s22] %v358_v13  ;;  %v362_v15 = vld [vmem:[%s2827_s28 + $0x948] sm:%s3748_s22] }
 0x1d3   : > { %361 = vst [vmem:[%s2831_s4 + $0x620] sm:%s3748_s22] %v360_v14 }
 0x1d4   : > { %363 = vst [vmem:[%s2831_s4 + $0x630] sm:%s3748_s22] %v362_v15 }
 0x1d5 PF: > { %p2115_p6 = scmp.ge.s32.totalorder %s2662_s14, 1  ;;  %p1023_p7 = scmp.lt.s32.totalorder %s2662_s14, 3 }
 0x1d7   : > { %p1024_p8 = pnand %p2115_p6, %p1023_p7 }
 0x1d8   : > { %s1030_s30 = sand.u32 (!%p1024_p8), 1, %s2654_s12  }
 0x1d9   : > { %1027 = sbr.rel (%p1024_p8) target bundleno = 876 (0x36c), region = 80  ;;  %s2116_s29 = sshll.u32 (!%p1024_p8), %s1030_s30, 4 }
 0x1da   : > { %s2321_s23 = smul.u32 (!%p1024_p8), 1600, %s1030_s30  ;;  %s4404_s6 = scalar_lea.vmem (!%p1024_p8), [#allocation3], %s2116_s29  }
 0x1dc   : > { %s4155_s24 = scalar_lea.vmem (!%p1024_p8), [#allocation2], %s2321_s23 }
 0x1de   : > { %vm1118_vm0 = vcmask 1043456   ;;  %v1094_v16 = vld [vmem:[%s4155_s24 + $0xf0] sm:$0xff]  ;;  %v1095_v17 = vld [vmem:[%s4155_s24 + $0xf8] sm:$0xff]  ;;  %v1113_v18 = vld [vmem:[%s4155_s24 + $0x188] sm:$0xf]  ;;  %vm1114_vm1 = vcmask 556032  }
 0x1df   : > { %1125 = vmatpush.msra.mxu0 %v1094_v16  ;;  %1165 = vmatpush.msra.mxu2 %v1095_v17  ;;  %v1092_v19 = vld [vmem:[%s4155_s24 + $0xe0] sm:$0xff]  ;;  %v1093_v20 = vld [vmem:[%s4155_s24 + $0xe8] sm:$0xff]  ;;  %v1111_v21 = vld [vmem:[%s4155_s24 + $0x178] sm:$0xff]  ;;  %s2284_s7 = sshll.u32 (%p2816_p5), %s2801_s15, 1  ;;  %s2315_s12 = sshll.u32 (%p2816_p5), %s2801_s15, 4 }
 0x1e0   : > { %2119 = vmatpush.msk.msra.mxu3 %vm1118_vm0, %v1113_v18  ;;  %v1090_v22 = vld [vmem:[%s4155_s24 + $0xd0] sm:$0xff]  ;;  %v1091_v23 = vld [vmem:[%s4155_s24 + $0xd8] sm:$0xff]  ;;  %v1109_v24 = vld [vmem:[%s4155_s24 + $0x168] sm:$0xff]  ;;  %s1642_s8 = ssub.s32 (%p2816_p5), 3, %s2284_s7  ;;  %s4415_s11 = scalar_lea.vmem (%p2816_p5), %s4706_s3, %s2315_s12  }
 0x1e1   : > { %1126 = vmatpush.msra.mxu0 %v1092_v19  ;;  %1166 = vmatpush.msra.mxu2 %v1093_v20  ;;  %v1088_v25 = vld [vmem:[%s4155_s24 + $0xc0] sm:$0xff]  ;;  %v1089_v26 = vld [vmem:[%s4155_s24 + $0xc8] sm:$0xff]  ;;  %v1107_v27 = vld [vmem:[%s4155_s24 + $0x158] sm:$0xff]  ;;  %p1643_p9 = scmp.lt.s32.totalorder (%p2816_p5), %s1642_s8, 2 }
 0x1e2   : > { %1193 = vmatpush.msra.mxu3 %v1111_v21  ;;  %v1112_v28 = vld [vmem:[%s4155_s24 + $0x180] sm:$0xf]  ;;  %v1086_v29 = vld [vmem:[%s4155_s24 + $0xb0] sm:$0xff]  ;;  %v1087_v30 = vld [vmem:[%s4155_s24 + $0xb8] sm:$0xff] }
 0x1e3   : > { %1127 = vmatpush.msra.mxu0 %v1090_v22  ;;  %1167 = vmatpush.msra.mxu2 %v1091_v23  ;;  %v1110_v31 = vld [vmem:[%s4155_s24 + $0x170] sm:$0xff]  ;;  %v1105_v32 = vld [vmem:[%s4155_s24 + $0x148] sm:$0xff]  ;;  %v1108_v33 = vld [vmem:[%s4155_s24 + $0x160] sm:$0xff] }
 0x1e4   : > { %1194 = vmatpush.msra.mxu3 %v1109_v24  ;;  %2117 = vmatpush.msk.msra.mxu1 %vm1118_vm0, %v1112_v28  ;;  %v1084_v34 = vld [vmem:[%s4155_s24 + $0xa0] sm:$0xff]  ;;  %v1085_v35 = vld [vmem:[%s4155_s24 + $0xa8] sm:$0xff]  ;;  %v1103_v36 = vld [vmem:[%s4155_s24 + $0x138] sm:$0xff] }
 0x1e5   : > { %1128 = vmatpush.msra.mxu0 %v1088_v25  ;;  %1168 = vmatpush.msra.mxu2 %v1089_v26  ;;  %v1106_v37 = vld [vmem:[%s4155_s24 + $0x150] sm:$0xff]  ;;  %v1083_v39 = vld [vmem:[%s4155_s24 + $0x98] sm:$0xff]  ;;  %v1101_v40 = vld [vmem:[%s4155_s24 + $0x128] sm:$0xff] }
 0x1e6   : > { %1195 = vmatpush.msra.mxu3 %v1107_v27  ;;  %1153 = vmatpush.msra.mxu1 %v1110_v31  ;;  %v1082_v38 = vld [vmem:[%s4155_s24 + $0x90] sm:$0xff]  ;;  %v1104_v41 = vld [vmem:[%s4155_s24 + $0x140] sm:$0xff]  ;;  %v1081_v43 = vld [vmem:[%s4155_s24 + $0x88] sm:$0xff] }
 0x1e7   : > { %1129 = vmatpush.msra.mxu0 %v1086_v29  ;;  %1169 = vmatpush.msra.mxu2 %v1087_v30  ;;  %v1080_v42 = vld [vmem:[%s4155_s24 + $0x80] sm:$0xff]  ;;  %v1099_v44 = vld [vmem:[%s4155_s24 + $0x118] sm:$0xff]  ;;  %v1102_v45 = vld [vmem:[%s4155_s24 + $0x130] sm:$0xff] }
 0x1e8   : > { %1196 = vmatpush.msra.mxu3 %v1105_v32  ;;  %1154 = vmatpush.msra.mxu1 %v1108_v33  ;;  %v1078_v46 = vld [vmem:[%s4155_s24 + $0x70] sm:$0xff]  ;;  %v1079_v47 = vld [vmem:[%s4155_s24 + $0x78] sm:$0xff]  ;;  %v1097_v48 = vld [vmem:[%s4155_s24 + $0x108] sm:$0xff] }
 0x1e9   : > { %1130 = vmatpush.msra.mxu0 %v1084_v34  ;;  %1170 = vmatpush.msra.mxu2 %v1085_v35  ;;  %v1100_v49 = vld [vmem:[%s4155_s24 + $0x120] sm:$0xff]  ;;  %v2169_v50 = vld [vmem:[%s4155_s24 + $0x310] sm:$0xf]  ;;  %v1077_v52 = vld [vmem:[%s4155_s24 + $0x68] sm:$0xff] }
 0x1ea   : > { %1197 = vmatpush.msra.mxu3 %v1103_v36  ;;  %1155 = vmatpush.msra.mxu1 %v1106_v37  ;;  %v1076_v51 = vld [vmem:[%s4155_s24 + $0x60] sm:$0xff]  ;;  %v1098_v53 = vld [vmem:[%s4155_s24 + $0x110] sm:$0xff]  ;;  %v1075_v56 = vld [vmem:[%s4155_s24 + $0x58] sm:$0xff] }
 0x1eb   : > { %1131 = vmatpush.msra.mxu0 %v1082_v38  ;;  %1171 = vmatpush.msra.mxu2 %v1083_v39  ;;  %v2167_v54 = vld [vmem:[%s4155_s24 + $0x300] sm:$0xff]  ;;  %v1074_v55 = vld [vmem:[%s4155_s24 + $0x50] sm:$0xff]  ;;  %v1073_v60 = vld [vmem:[%s4155_s24 + $0x48] sm:$0xff] }
 0x1ec   : > { %1198 = vmatpush.msra.mxu3 %v1101_v40  ;;  %1156 = vmatpush.msra.mxu1 %v1104_v41  ;;  %v1096_v57 = vld [vmem:[%s4155_s24 + $0x100] sm:$0xff]  ;;  %v2165_v58 = vld [vmem:[%s4155_s24 + $0x2f0] sm:$0xff]  ;;  %v1071_v0 = vld [vmem:[%s4155_s24 + $0x38] sm:$0xff] }
 0x1ed   : > { %1132 = vmatpush.msra.mxu0 %v1080_v42  ;;  %1172 = vmatpush.msra.mxu2 %v1081_v43  ;;  %v1072_v59 = vld [vmem:[%s4155_s24 + $0x40] sm:$0xff]  ;;  %v1070_v63 = vld [vmem:[%s4155_s24 + $0x30] sm:$0xff]  ;;  %v1069_v4 = vld [vmem:[%s4155_s24 + $0x28] sm:$0xff] }
 0x1ee   : > { %1199 = vmatpush.msra.mxu3 %v1099_v44  ;;  %1157 = vmatpush.msra.mxu1 %v1102_v45  ;;  %v2151_v61 = vld [vmem:[%s4155_s24 + $0x280] sm:$0xff]  ;;  %v2149_v1 = vld [vmem:[%s4155_s24 + $0x270] sm:$0xff]  ;;  %v1067_v8 = vld [vmem:[%s4155_s24 + $0x18] sm:$0xff] }
 0x1ef   : > { %1133 = vmatpush.msra.mxu0 %v1078_v46  ;;  %1173 = vmatpush.msra.mxu2 %v1079_v47  ;;  %v2163_v62 = vld [vmem:[%s4155_s24 + $0x2e0] sm:$0xff]  ;;  %v2161_v2 = vld [vmem:[%s4155_s24 + $0x2d0] sm:$0xff]  ;;  %v1065_v12 = vld [vmem:[%s4155_s24 + $0x8] sm:$0xff] }
 0x1f0   : > { %1200 = vmatpush.msra.mxu3 %v1097_v48  ;;  %1158 = vmatpush.msra.mxu1 %v1100_v49  ;;  %v1068_v3 = vld [vmem:[%s4155_s24 + $0x20] sm:$0xff]  ;;  %v1066_v7 = vld [vmem:[%s4155_s24 + $0x10] sm:$0xff]  ;;  %v2152_v13 = vld [vmem:[%s4155_s24 + $0x288] sm:$0xff] }
 0x1f1   : > { %1134 = vmatpush.msra.mxu0 %v1076_v51  ;;  %1174 = vmatpush.msra.mxu2 %v1077_v52  ;;  %v2147_v5 = vld [vmem:[%s4155_s24 + $0x260] sm:$0xff]  ;;  %v2145_v9 = vld [vmem:[%s4155_s24 + $0x250] sm:$0xff]  ;;  %v2170_v15 = vld [vmem:[%s4155_s24 + $0x318] sm:$0xf] }
 0x1f2   : > { %2171 = vmatpush.msk.msrb.mxu3 %vm1118_vm0, %v2169_v50  ;;  %1159 = vmatpush.msra.mxu1 %v1098_v53  ;;  %v2159_v6 = vld [vmem:[%s4155_s24 + $0x2c0] sm:$0xff]  ;;  %v2157_v10 = vld [vmem:[%s4155_s24 + $0x2b0] sm:$0xff]  ;;  %v2150_v16 = vld [vmem:[%s4155_s24 + $0x278] sm:$0xff] }
 0x1f3   : > { %1135 = vmatpush.msra.mxu0 %v1074_v55  ;;  %1175 = vmatpush.msra.mxu2 %v1075_v56  ;;  %v1064_v11 = vld [vmem:[%s4155_s24] sm:$0xff]  ;;  %v2153_v18 = vld [vmem:[%s4155_s24 + $0x290] sm:$0xff]  ;;  %v2168_v19 = vld [vmem:[%s4155_s24 + $0x308] sm:$0xff] }
 0x1f4   : > { %1290 = vmatpush.msrb.mxu3 %v2167_v54  ;;  %1160 = vmatpush.msra.mxu1 %v1096_v57  ;;  %v2155_v14 = vld [vmem:[%s4155_s24 + $0x2a0] sm:$0xff]  ;;  %v4236_v20 = vld [vmem:[%s4704_s1 + $0x8] sm:$0xff]  ;;  %v2205_v22 = vld [vmem:[%s4155_s24 + $0x410] sm:$0xff] }
 0x1f5   : > { %1136 = vmatpush.msra.mxu0 %v1072_v59  ;;  %1176 = vmatpush.msra.mxu2 %v1073_v60  ;;  %v4228_v17 = vld [vmem:[%s4704_s1] sm:$0xff]  ;;  %v2148_v23 = vld [vmem:[%s4155_s24 + $0x268] sm:$0xff]  ;;  %v2166_v24 = vld [vmem:[%s4155_s24 + $0x2f8] sm:$0xff] }
 0x1f6   : > { %1291 = vmatpush.msrb.mxu3 %v2165_v58  ;;  %1262 = vmatpush.msrb.mxu1 %v2151_v61  ;;  %v2143_v21 = vld [vmem:[%s4155_s24 + $0x240] sm:$0xff]  ;;  %v2141_v25 = vld [vmem:[%s4155_s24 + $0x230] sm:$0xff]  ;;  %v2146_v27 = vld [vmem:[%s4155_s24 + $0x258] sm:$0xff] }
 0x1f7   : > { %1137 = vmatpush.msra.mxu0 %v1070_v63  ;;  %1177 = vmatpush.msra.mxu2 %v1071_v0  ;;  %v2203_v26 = vld [vmem:[%s4155_s24 + $0x400] sm:$0xff]  ;;  %v2164_v28 = vld [vmem:[%s4155_s24 + $0x2e8] sm:$0xff]  ;;  %v2201_v30 = vld [vmem:[%s4155_s24 + $0x3f0] sm:$0xff] }
 0x1f8   : > { %1292 = vmatpush.msrb.mxu3 %v2163_v62  ;;  %1263 = vmatpush.msrb.mxu1 %v2149_v1  ;;  %v2139_v29 = vld [vmem:[%s4155_s24 + $0x220] sm:$0xff]  ;;  %v2144_v31 = vld [vmem:[%s4155_s24 + $0x248] sm:$0xff]  ;;  %v2162_v32 = vld [vmem:[%s4155_s24 + $0x2d8] sm:$0xff] }
 0x1f9   : > { %1138 = vmatpush.msra.mxu0 %v1068_v3  ;;  %1178 = vmatpush.msra.mxu2 %v1069_v4  ;;  %v2137_v33 = vld [vmem:[%s4155_s24 + $0x210] sm:$0xff]  ;;  %v2199_v34 = vld [vmem:[%s4155_s24 + $0x3e0] sm:$0xff]  ;;  %v2142_v35 = vld [vmem:[%s4155_s24 + $0x238] sm:$0xff] }
 0x1fa   : > { %1293 = vmatpush.msrb.mxu3 %v2161_v2  ;;  %1264 = vmatpush.msrb.mxu1 %v2147_v5  ;;  %v2160_v36 = vld [vmem:[%s4155_s24 + $0x2c8] sm:$0xff]  ;;  %v2135_v37 = vld [vmem:[%s4155_s24 + $0x200] sm:$0xff]  ;;  %v2197_v38 = vld [vmem:[%s4155_s24 + $0x3d0] sm:$0xff] }
 0x1fb   : > { %1139 = vmatpush.msra.mxu0 %v1066_v7  ;;  %1179 = vmatpush.msra.mxu2 %v1067_v8  ;;  %v2140_v39 = vld [vmem:[%s4155_s24 + $0x228] sm:$0xff]  ;;  %v2158_v40 = vld [vmem:[%s4155_s24 + $0x2b8] sm:$0xff]  ;;  %v2133_v41 = vld [vmem:[%s4155_s24 + $0x1f0] sm:$0xff] }
 0x1fc   : > { %1294 = vmatpush.msrb.mxu3 %v2159_v6  ;;  %1265 = vmatpush.msrb.mxu1 %v2145_v9  ;;  %v2195_v42 = vld [vmem:[%s4155_s24 + $0x3c0] sm:$0xff]  ;;  %v2138_v43 = vld [vmem:[%s4155_s24 + $0x218] sm:$0xff]  ;;  %v2156_v44 = vld [vmem:[%s4155_s24 + $0x2a8] sm:$0xff] }
 0x1fd   : > { %1140 = vmatpush.msra.mxu0 %v1064_v11  ;;  %1180 = vmatpush.msra.mxu2 %v1065_v12  ;;  %v2131_v45 = vld [vmem:[%s4155_s24 + $0x1e0] sm:$0xff]  ;;  %v2193_v46 = vld [vmem:[%s4155_s24 + $0x3b0] sm:$0xff]  ;;  %v2136_v47 = vld [vmem:[%s4155_s24 + $0x208] sm:$0xff] }
 0x1fe   : > { %1295 = vmatpush.msrb.mxu3 %v2157_v10  ;;  %1181 = vmatmul.f32.vlgmr.msra.gmra.mxu2 %v4228_v17  ;;  %v2154_v48 = vld [vmem:[%s4155_s24 + $0x298] sm:$0xff]  ;;  %v2129_v49 = vld [vmem:[%s4155_s24 + $0x1d0] sm:$0xff]  ;;  %v2191_v50 = vld [vmem:[%s4155_s24 + $0x3a0] sm:$0xff] }
 0x1ff   : > { %1302 = vmatpush.msrb.mxu0 %v2152_v13  ;;  %2173 = vmatpush.msk.msrb.mxu2 %vm1118_vm0, %v2170_v15  ;;  %v2206_v51 = vld [vmem:[%s4155_s24 + $0x418] sm:$0xff]  ;;  %v2127_v53 = vld [vmem:[%s4155_s24 + $0x1c0] sm:$0xff]  ;;  %v2189_v54 = vld [vmem:[%s4155_s24 + $0x390] sm:$0xff] }
 0x200   : > { %1296 = vmatpush.msrb.mxu3 %v2155_v14  ;;  %1266 = vmatpush.msrb.mxu1 %v2143_v21  ;;  %v2134_v52 = vld [vmem:[%s4155_s24 + $0x1f8] sm:$0xff]  ;;  %v2204_v55 = vld [vmem:[%s4155_s24 + $0x408] sm:$0xff]  ;;  %v2125_v57 = vld [vmem:[%s4155_s24 + $0x1b0] sm:$0xff] }
 0x201   : > { %1303 = vmatpush.msrb.mxu0 %v2150_v16  ;;  %1330 = vmatpush.msrb.mxu2 %v2168_v19  ;;  %v2132_v56 = vld [vmem:[%s4155_s24 + $0x1e8] sm:$0xff]  ;;  %v2187_v58 = vld [vmem:[%s4155_s24 + $0x380] sm:$0xff]  ;;  %v2202_v59 = vld [vmem:[%s4155_s24 + $0x3f8] sm:$0xff] }
 0x202   : > { %1297 = vmatpush.msrb.mxu3 %v2153_v18  ;;  %1267 = vmatpush.msrb.mxu1 %v2141_v25  ;;  %v2130_v60 = vld [vmem:[%s4155_s24 + $0x1d8] sm:$0xff]  ;;  %v2123_v61 = vld [vmem:[%s4155_s24 + $0x1a0] sm:$0xff]  ;;  %v2185_v62 = vld [vmem:[%s4155_s24 + $0x370] sm:$0xff] }
 0x203   : > { %2120 = vmatmul.msk.f32.vlgmr.msra.gmra.mxu3 %vm1114_vm1, %v4236_v20  ;;  %1304 = vmatpush.msrb.mxu0 %v2148_v23  ;;  %v2200_v63 = vld [vmem:[%s4155_s24 + $0x3e8] sm:$0xff]  ;;  %v2121_v1 = vld [vmem:[%s4155_s24 + $0x190] sm:$0xff]  ;;  %v2183_v2 = vld [vmem:[%s4155_s24 + $0x360] sm:$0xff] }
 0x204   : > { %1399 = vmatpush.msra.mxu3 %v2205_v22  ;;  %1331 = vmatpush.msrb.mxu2 %v2166_v24  ;;  %v2128_v0 = vld [vmem:[%s4155_s24 + $0x1c8] sm:$0xff]  ;;  %v2198_v3 = vld [vmem:[%s4155_s24 + $0x3d8] sm:$0xff]  ;;  %v2223_v5 = vld [vmem:[%s4155_s24 + $0x4a0] sm:$0xf] }
 0x205   : > { %1305 = vmatpush.msrb.mxu0 %v2146_v27  ;;  %1268 = vmatpush.msrb.mxu1 %v2139_v29  ;;  %v2126_v4 = vld [vmem:[%s4155_s24 + $0x1b8] sm:$0xff]  ;;  %v2181_v6 = vld [vmem:[%s4155_s24 + $0x350] sm:$0xff]  ;;  %v2196_v7 = vld [vmem:[%s4155_s24 + $0x3c8] sm:$0xff] }
 0x206   : > { %1400 = vmatpush.msra.mxu3 %v2203_v26  ;;  %1332 = vmatpush.msrb.mxu2 %v2164_v28  ;;  %v2124_v8 = vld [vmem:[%s4155_s24 + $0x1a8] sm:$0xff]  ;;  %v2221_v9 = vld [vmem:[%s4155_s24 + $0x490] sm:$0xff]  ;;  %v2179_v10 = vld [vmem:[%s4155_s24 + $0x340] sm:$0xff] }
 0x207   : > { %1306 = vmatpush.msrb.mxu0 %v2144_v31  ;;  %1269 = vmatpush.msrb.mxu1 %v2137_v33  ;;  %v2194_v11 = vld [vmem:[%s4155_s24 + $0x3b8] sm:$0xff]  ;;  %v2219_v13 = vld [vmem:[%s4155_s24 + $0x480] sm:$0xff]  ;;  %v2177_v14 = vld [vmem:[%s4155_s24 + $0x330] sm:$0xff] }
 0x208   : > { %1401 = vmatpush.msra.mxu3 %v2201_v30  ;;  %1333 = vmatpush.msrb.mxu2 %v2162_v32  ;;  %v2122_v12 = vld [vmem:[%s4155_s24 + $0x198] sm:$0xff]  ;;  %v2192_v15 = vld [vmem:[%s4155_s24 + $0x3a8] sm:$0xff]  ;;  %v2217_v16 = vld [vmem:[%s4155_s24 + $0x470] sm:$0xff] }
 0x209   : > { %1307 = vmatpush.msrb.mxu0 %v2142_v35  ;;  %1270 = vmatpush.msrb.mxu1 %v2135_v37  ;;  %v2260_v18 = vld [vmem:[%s4155_s24 + $0x5a8] sm:$0xff]  ;;  %v2175_v19 = vld [vmem:[%s4155_s24 + $0x320] sm:$0xff]  ;;  %v2190_v21 = vld [vmem:[%s4155_s24 + $0x398] sm:$0xff] }
 0x20a   : > { %1402 = vmatpush.msra.mxu3 %v2199_v34  ;;  %1334 = vmatpush.msrb.mxu2 %v2160_v36  ;;  %v2215_v22 = vld [vmem:[%s4155_s24 + $0x460] sm:$0xff]  ;;  %v2224_v23 = vld [vmem:[%s4155_s24 + $0x4a8] sm:$0xf]  ;;  %v2258_v25 = vld [vmem:[%s4155_s24 + $0x598] sm:$0xff] }
 0x20b   : > { %1308 = vmatpush.msrb.mxu0 %v2140_v39  ;;  %1271 = vmatpush.msrb.mxu1 %v2133_v41  ;;  %v2188_v24 = vld [vmem:[%s4155_s24 + $0x388] sm:$0xff]  ;;  %v2213_v26 = vld [vmem:[%s4155_s24 + $0x450] sm:$0xff]  ;;  %v2222_v27 = vld [vmem:[%s4155_s24 + $0x498] sm:$0xff] }
 0x20c   : > { %1403 = vmatpush.msra.mxu3 %v2197_v38  ;;  %1335 = vmatpush.msrb.mxu2 %v2158_v40  ;;  %v2186_v28 = vld [vmem:[%s4155_s24 + $0x378] sm:$0xff]  ;;  %v2256_v29 = vld [vmem:[%s4155_s24 + $0x588] sm:$0xff]  ;;  %v2211_v30 = vld [vmem:[%s4155_s24 + $0x440] sm:$0xff] }
 0x20d   : > { %1309 = vmatpush.msrb.mxu0 %v2138_v43  ;;  %1272 = vmatpush.msrb.mxu1 %v2131_v45  ;;  %v2220_v31 = vld [vmem:[%s4155_s24 + $0x488] sm:$0xff]  ;;  %v2254_v33 = vld [vmem:[%s4155_s24 + $0x578] sm:$0xff]  ;;  %v2209_v34 = vld [vmem:[%s4155_s24 + $0x430] sm:$0xff] }
 0x20e   : > { %1404 = vmatpush.msra.mxu3 %v2195_v42  ;;  %1336 = vmatpush.msrb.mxu2 %v2156_v44  ;;  %v2184_v32 = vld [vmem:[%s4155_s24 + $0x368] sm:$0xff]  ;;  %v2218_v35 = vld [vmem:[%s4155_s24 + $0x478] sm:$0xff]  ;;  %v2207_v38 = vld [vmem:[%s4155_s24 + $0x420] sm:$0xff] }
 0x20f   : > { %1310 = vmatpush.msrb.mxu0 %v2136_v47  ;;  %1273 = vmatpush.msrb.mxu1 %v2129_v49  ;;  %v2182_v36 = vld [vmem:[%s4155_s24 + $0x358] sm:$0xff]  ;;  %v2252_v37 = vld [vmem:[%s4155_s24 + $0x568] sm:$0xff]  ;;  %v2259_v41 = vld [vmem:[%s4155_s24 + $0x5a0] sm:$0xff] }
 0x210   : > { %1405 = vmatpush.msra.mxu3 %v2193_v46  ;;  %1337 = vmatpush.msrb.mxu2 %v2154_v48  ;;  %v2216_v39 = vld [vmem:[%s4155_s24 + $0x468] sm:$0xff]  ;;  %v2214_v42 = vld [vmem:[%s4155_s24 + $0x458] sm:$0xff]  ;;  %v2257_v45 = vld [vmem:[%s4155_s24 + $0x590] sm:$0xff] }
 0x211   : > { %2118 = vmatmul.msk.f32.vlgmr.msra.gmra.mxu1 %vm1114_vm1, %v4236_v20  ;;  %1311 = vmatpush.msrb.mxu0 %v2134_v52  ;;  %v2180_v40 = vld [vmem:[%s4155_s24 + $0x348] sm:$0xff]  ;;  %v2250_v43 = vld [vmem:[%s4155_s24 + $0x558] sm:$0xff]  ;;  %v2255_v49 = vld [vmem:[%s4155_s24 + $0x580] sm:$0xff] }
 0x212   : > { %1406 = vmatpush.msra.mxu3 %v2191_v50  ;;  %1439 = vmatpush.msra.mxu2 %v2206_v51  ;;  %v2178_v44 = vld [vmem:[%s4155_s24 + $0x338] sm:$0xff]  ;;  %v2212_v46 = vld [vmem:[%s4155_s24 + $0x448] sm:$0xff]  ;;  %v2253_v52 = vld [vmem:[%s4155_s24 + $0x570] sm:$0xff] }
 0x213   : > { %1274 = vmatpush.msrb.mxu1 %v2127_v53  ;;  %2172 = vmatmul.msk.f32.vlgmr.msrb.gmra.mxu3 %vm1114_vm1, %v4236_v20  ;;  %v2248_v47 = vld [vmem:[%s4155_s24 + $0x548] sm:$0xff]  ;;  %v2210_v50 = vld [vmem:[%s4155_s24 + $0x438] sm:$0xff] }
 0x214   : > { %1407 = vmatpush.msra.mxu3 %v2189_v54  ;;  %1440 = vmatpush.msra.mxu2 %v2204_v55  ;;  %v2176_v48 = vld [vmem:[%s4155_s24 + $0x328] sm:$0xff]  ;;  %v2278_v51 = vld [vmem:[%s4155_s24 + $0x638] sm:$0xf]  ;;  %v2251_v55 = vld [vmem:[%s4155_s24 + $0x560] sm:$0xff] }
 0x215   : > { %1312 = vmatpush.msrb.mxu0 %v2132_v56  ;;  %1275 = vmatpush.msrb.mxu1 %v2125_v57  ;;  %v2208_v53 = vld [vmem:[%s4155_s24 + $0x428] sm:$0xff]  ;;  %v2277_v56 = vld [vmem:[%s4155_s24 + $0x630] sm:$0xf]  ;;  %v2274_v57 = vld [vmem:[%s4155_s24 + $0x618] sm:$0xff] }
 0x216   : > { %1408 = vmatpush.msra.mxu3 %v2187_v58  ;;  %1441 = vmatpush.msra.mxu2 %v2202_v59  ;;  %v2276_v54 = vld [vmem:[%s4155_s24 + $0x628] sm:$0xff]  ;;  %v2246_v58 = vld [vmem:[%s4155_s24 + $0x538] sm:$0xff]  ;;  %v2249_v59 = vld [vmem:[%s4155_s24 + $0x550] sm:$0xff] }
 0x217   : > { %1313 = vmatpush.msrb.mxu0 %v2130_v60  ;;  %1276 = vmatpush.msrb.mxu1 %v2123_v61  ;;  %v2275_v60 = vld [vmem:[%s4155_s24 + $0x620] sm:$0xff]  ;;  %v2272_v61 = vld [vmem:[%s4155_s24 + $0x608] sm:$0xff] }
 0x218   : > { %1141 = vmatmul.f32.vlgmr.msra.gmra.mxu0 %v4228_v17  ;;  %1409 = vmatpush.msra.mxu3 %v2185_v62  ;;  %v2244_v62 = vld [vmem:[%s4155_s24 + $0x528] sm:$0xff] }
 0x219   : > { %1442 = vmatpush.msra.mxu2 %v2200_v63  ;;  %1314 = vmatpush.msrb.mxu0 %v2128_v0  ;;  %v2247_v63 = vld [vmem:[%s4155_s24 + $0x540] sm:$0xff]  ;;  %v2273_v0 = vld [vmem:[%s4155_s24 + $0x610] sm:$0xff] }
 0x21a   : > { %1277 = vmatpush.msrb.mxu1 %v2121_v1  ;;  %2174 = vmatmul.msk.f32.vlgmr.msrb.gmra.mxu2 %vm1114_vm1, %v4236_v20  ;;  %v2270_v1 = vld [vmem:[%s4155_s24 + $0x5f8] sm:$0xff] }
 0x21b   : > { %1410 = vmatpush.msra.mxu3 %v2183_v2  ;;  %1443 = vmatpush.msra.mxu2 %v2198_v3  ;;  %v2245_v2 = vld [vmem:[%s4155_s24 + $0x530] sm:$0xff]  ;;  %v2271_v3 = vld [vmem:[%s4155_s24 + $0x600] sm:$0xff] }
 0x21c   : > { %1278 = vmatmul.f32.vlgmr.msrb.gmra.mxu1 %v4228_v17  ;;  %1315 = vmatpush.msrb.mxu0 %v2126_v4  ;;  %v2242_v4 = vld [vmem:[%s4155_s24 + $0x518] sm:$0xff] }
 0x21d   : > { %2225 = vmatpush.msk.msra.mxu1 %vm1118_vm0, %v2223_v5  ;;  %1411 = vmatpush.msra.mxu3 %v2181_v6  ;;  %v2268_v5 = vld [vmem:[%s4155_s24 + $0x5e8] sm:$0xff]  ;;  %v2243_v6 = vld [vmem:[%s4155_s24 + $0x520] sm:$0xff] }
 0x21e   : > { %1444 = vmatpush.msra.mxu2 %v2196_v7  ;;  %1316 = vmatpush.msrb.mxu0 %v2124_v8  ;;  %v2269_v7 = vld [vmem:[%s4155_s24 + $0x5f0] sm:$0xff]  ;;  %v2240_v8 = vld [vmem:[%s4155_s24 + $0x508] sm:$0xff] }
 0x21f   : > { %1427 = vmatpush.msra.mxu1 %v2221_v9  ;;  %1412 = vmatpush.msra.mxu3 %v2179_v10  ;;  %v2266_v9 = vld [vmem:[%s4155_s24 + $0x5d8] sm:$0xff]  ;;  %v2241_v10 = vld [vmem:[%s4155_s24 + $0x510] sm:$0xff] }
 0x220   : > { %1445 = vmatpush.msra.mxu2 %v2194_v11  ;;  %1317 = vmatpush.msrb.mxu0 %v2122_v12  ;;  %v2267_v11 = vld [vmem:[%s4155_s24 + $0x5e0] sm:$0xff]  ;;  %v2238_v12 = vld [vmem:[%s4155_s24 + $0x4f8] sm:$0xff] }
 0x221   : > { %1428 = vmatpush.msra.mxu1 %v2219_v13  ;;  %1318 = vmatmul.f32.vlgmr.msrb.gmra.mxu0 %v4228_v17  ;;  %v2264_v13 = vld [vmem:[%s4155_s24 + $0x5c8] sm:$0xff] }
 0x222   : > { %1413 = vmatpush.msra.mxu3 %v2177_v14  ;;  %1446 = vmatpush.msra.mxu2 %v2192_v15  ;;  %v2239_v14 = vld [vmem:[%s4155_s24 + $0x500] sm:$0xff]  ;;  %v2265_v15 = vld [vmem:[%s4155_s24 + $0x5d0] sm:$0xff] }
 0x223   : > { %1429 = vmatpush.msra.mxu1 %v2217_v16  ;;  %1576 = vmatpush.msra.mxu0 %v2260_v18  ;;  %v2236_v16 = vld [vmem:[%s4155_s24 + $0x4e8] sm:$0xff]  ;;  %v2262_v18 = vld [vmem:[%s4155_s24 + $0x5b8] sm:$0xff] }
 0x224   : > { %1414 = vmatpush.msra.mxu3 %v2175_v19  ;;  %1447 = vmatpush.msra.mxu2 %v2190_v21  ;;  %v2237_v19 = vld [vmem:[%s4155_s24 + $0x4f0] sm:$0xff]  ;;  %v2263_v21 = vld [vmem:[%s4155_s24 + $0x5c0] sm:$0xff] }
 0x225   : > { %1430 = vmatpush.msra.mxu1 %v2215_v22  ;;  %1577 = vmatpush.msra.mxu0 %v2258_v25  ;;  %v2234_v22 = vld [vmem:[%s4155_s24 + $0x4d8] sm:$0xff]  ;;  %v2232_v25 = vld [vmem:[%s4155_s24 + $0x4c8] sm:$0xff] }
 0x226   : > { %2227 = vmatpush.msk.msrb.mxu3 %vm1118_vm0, %v2224_v23  ;;  %1448 = vmatpush.msra.mxu2 %v2188_v24  ;;  %v2235_v23 = vld [vmem:[%s4155_s24 + $0x4e0] sm:$0xff]  ;;  %v2261_v24 = vld [vmem:[%s4155_s24 + $0x5b0] sm:$0xff] }
 0x227   : > { %1431 = vmatpush.msra.mxu1 %v2213_v26  ;;  %1578 = vmatpush.msra.mxu0 %v2256_v29  ;;  %v2233_v26 = vld [vmem:[%s4155_s24 + $0x4d0] sm:$0xff]  ;;  %v2231_v29 = vld [vmem:[%s4155_s24 + $0x4c0] sm:$0xff] }
 0x228   : > { %1467 = vmatpush.msrb.mxu3 %v2222_v27  ;;  %1449 = vmatpush.msra.mxu2 %v2186_v28  ;;  %v2230_v27 = vld [vmem:[%s4155_s24 + $0x4b8] sm:$0xff]  ;;  %v1622_v28 = vld [vmem:[%s4705_s2] sm:$0xff] }
 0x229   : > { %1432 = vmatpush.msra.mxu1 %v2211_v30  ;;  %1579 = vmatpush.msra.mxu0 %v2254_v33  ;;  %v2762_v30 = vmov 0  }
 0x22a   : > { %1468 = vmatpush.msrb.mxu3 %v2220_v31  ;;  %1450 = vmatpush.msra.mxu2 %v2184_v32  ;;  %v2229_v31 = vld [vmem:[%s4155_s24 + $0x4b0] sm:$0xff] }
 0x22b   : > { %1433 = vmatpush.msra.mxu1 %v2209_v34  ;;  %1580 = vmatpush.msra.mxu0 %v2252_v37 }
 0x22c   : > { %1469 = vmatpush.msrb.mxu3 %v2218_v35  ;;  %1451 = vmatpush.msra.mxu2 %v2182_v36 }
 0x22d   : > { %1434 = vmatpush.msra.mxu1 %v2207_v38  ;;  %1581 = vmatpush.msra.mxu0 %v2250_v43 }
 0x22e   : > { %1470 = vmatpush.msrb.mxu3 %v2216_v39  ;;  %1452 = vmatpush.msra.mxu2 %v2180_v40 }
 0x22f   : > { %1536 = vmatpush.msrb.mxu1 %v2259_v41  ;;  %1582 = vmatpush.msra.mxu0 %v2248_v47 }
 0x230   : > { %1471 = vmatpush.msrb.mxu3 %v2214_v42  ;;  %1453 = vmatpush.msra.mxu2 %v2178_v44 }
 0x231   : > { %1537 = vmatpush.msrb.mxu1 %v2257_v45  ;;  %1415 = vmatmul.f32.vlgmr.msra.gmra.mxu3 %v4228_v17 }
 0x232   : > { %1472 = vmatpush.msrb.mxu3 %v2212_v46  ;;  %1454 = vmatpush.msra.mxu2 %v2176_v48 }
 0x233   : > { %1538 = vmatpush.msrb.mxu1 %v2255_v49  ;;  %1583 = vmatpush.msra.mxu0 %v2246_v58 }
 0x234   : > { %1473 = vmatpush.msrb.mxu3 %v2210_v50  ;;  %2281 = vmatpush.msk.msrb.mxu2 %vm1118_vm0, %v2278_v51 }
 0x235   : > { %1539 = vmatpush.msrb.mxu1 %v2253_v52  ;;  %1584 = vmatpush.msra.mxu0 %v2244_v62 }
 0x236   : > { %1474 = vmatpush.msrb.mxu3 %v2208_v53  ;;  %1604 = vmatpush.msrb.mxu2 %v2276_v54 }
 0x237   : > { %1540 = vmatpush.msrb.mxu1 %v2251_v55  ;;  %1455 = vmatmul.f32.vlgmr.msra.gmra.mxu2 %v4228_v17 }
 0x238   : > { %2279 = vmatpush.msk.msra.mxu3 %vm1118_vm0, %v2277_v56  ;;  %1605 = vmatpush.msrb.mxu2 %v2274_v57 }
 0x239   : > { %1541 = vmatpush.msrb.mxu1 %v2249_v59  ;;  %1585 = vmatpush.msra.mxu0 %v2242_v4 }
 0x23a   : > { %1564 = vmatpush.msra.mxu3 %v2275_v60  ;;  %1606 = vmatpush.msrb.mxu2 %v2272_v61 }
 0x23b   : > { %1542 = vmatpush.msrb.mxu1 %v2247_v63  ;;  %1586 = vmatpush.msra.mxu0 %v2240_v8 }
 0x23c   : > { %1565 = vmatpush.msra.mxu3 %v2273_v0  ;;  %1607 = vmatpush.msrb.mxu2 %v2270_v1 }
 0x23d   : > { %2226 = vmatmul.msk.f32.vlgmr.msra.gmra.mxu1 %vm1114_vm1, %v4236_v20  ;;  %2228 = vmatmul.msk.f32.vlgmr.msrb.gmra.mxu3 %vm1114_vm1, %v4236_v20 }
 0x23e   : > { %1543 = vmatpush.msrb.mxu1 %v2245_v2  ;;  %1566 = vmatpush.msra.mxu3 %v2271_v3 }
 0x23f   : > { %1608 = vmatpush.msrb.mxu2 %v2268_v5  ;;  %1587 = vmatpush.msra.mxu0 %v2238_v12 }
 0x240   : > { %1544 = vmatpush.msrb.mxu1 %v2243_v6  ;;  %1567 = vmatpush.msra.mxu3 %v2269_v7 }
 0x241   : > { %1609 = vmatpush.msrb.mxu2 %v2266_v9  ;;  %1588 = vmatpush.msra.mxu0 %v2236_v16 }
 0x242   : > { %1545 = vmatpush.msrb.mxu1 %v2241_v10  ;;  %1568 = vmatpush.msra.mxu3 %v2267_v11 }
 0x243   : > { %1610 = vmatpush.msrb.mxu2 %v2264_v13  ;;  %1589 = vmatpush.msra.mxu0 %v2234_v22 }
 0x244   : > { %1546 = vmatpush.msrb.mxu1 %v2239_v14  ;;  %1569 = vmatpush.msra.mxu3 %v2265_v15 }
 0x245   : > { %1611 = vmatpush.msrb.mxu2 %v2262_v18  ;;  %1590 = vmatpush.msra.mxu0 %v2232_v25 }
 0x246   : > { %1547 = vmatpush.msrb.mxu1 %v2237_v19  ;;  %1570 = vmatpush.msra.mxu3 %v2263_v21 }
 0x247   : > { %2282 = vmatmul.msk.f32.vlgmr.msrb.gmra.mxu2 %vm1114_vm1, %v4236_v20  ;;  %2543 = vset.pattern.permute.xlu0 %v2762_v30 }
 0x248   : > { %1548 = vmatpush.msrb.mxu1 %v2235_v23  ;;  %1571 = vmatpush.msra.mxu3 %v2261_v24 }
 0x249   : > { %2280 = vmatmul.msk.f32.vlgmr.msra.gmra.mxu3 %vm1114_vm1, %v4236_v20  ;;  %1591 = vmatpush.msra.mxu0 %v2230_v27 }
 0x24a   : > { %1549 = vmatpush.msrb.mxu1 %v2233_v26  ;;  %1625 = vperm.xlu0 %2543, %v1622_v28  }
 0x24b   : > { %1592 = vmatmul.f32.vlgmr.msra.gmra.mxu0 %v4228_v17 }
 0x24c   : > { %1550 = vmatpush.msrb.mxu1 %v2231_v29 }
 0x24e   : > { %1551 = vmatpush.msrb.mxu1 %v2229_v31 }
 0x24f   : > { %1552 = vmatmul.f32.vlgmr.msrb.gmra.mxu1 %v4228_v17 }
 0x281   : > { %v1182_v33 = vpop.f32.mrf.mxu2 }
 0x286   : > { %v1202_v32 = vpop.f32.mrf.mxu3 }
 0x287   : > { %v1203_v45 = vadd.f32 %v1202_v32, %v1182_v33 }
 0x28e   : > { %v1162_v34 = vpop.f32.mrf.mxu1 }
 0x295   : > { %v1142_v36 = vpop.f32.mrf.mxu0 }
 0x296   : > { %v1299_v35 = vpop.f32.mrf.mxu3  ;;  %v1163_v47 = vadd.f32 %v1162_v34, %v1142_v36 }
 0x299   : > { %v1279_v38 = vpop.f32.mrf.mxu1 }
 0x29a   : > { %v1300_v48 = vadd.f32 %v1299_v35, %v1279_v38 }
 0x29c   : > { %v1616_v57 = vmax.f32 %v1163_v47, %v1300_v48 }
 0x29d   : > { %v1339_v20 = vpop.f32.mrf.mxu2 }
 0x29e   : > { %v1319_v40 = vpop.f32.mrf.mxu0 }
 0x29f   : > { %v1340_v43 = vadd.f32 %v1339_v20, %v1319_v40 }
 0x2a1   : > { %v1617_v52 = vmax.f32 %v1203_v45, %v1340_v43 }
 0x2b4   : > { %v1416_v37 = vpop.f32.mrf.mxu3 }
 0x2ba   : > { %v1456_v39 = vpop.f32.mrf.mxu2  ;;  %v1436_v41 = vpop.f32.mrf.mxu1 }
 0x2bb   : > { %v1437_v53 = vadd.f32 %v1436_v41, %v1416_v37 }
 0x2bc   : > { %v1626_v56 = vpop.permute.xlu0 %1625 }
 0x2c0   : > { %v1476_v42 = vpop.f32.mrf.mxu3 }
 0x2c1   : > { %v1477_v17 = vadd.f32 %v1476_v42, %v1456_v39 }
 0x2c8   : > { %v1593_v44 = vpop.f32.mrf.mxu0 }
 0x2ca   : > { %v1613_v46 = vpop.f32.mrf.mxu2 }
 0x2cb   : > { %v1614_v49 = vadd.f32 %v1613_v46, %v1593_v44 }
 0x2cc   : > { %v1553_v50 = vpop.f32.mrf.mxu1  ;;  %v1573_v51 = vpop.f32.mrf.mxu3 }
 0x2cd   : > { %v1619_v54 = vmax.f32 %v1477_v17, %v1614_v49  ;;  %v1574_v55 = vadd.f32 %v1573_v51, %v1553_v50 }
 0x2cf   : > { %v1618_v58 = vmax.f32 %v1437_v53, %v1574_v55  ;;  %v1621_v59 = vmax.f32 %v1617_v52, %v1619_v54 }
 0x2d1   : > { %v1620_v60 = vmax.f32 %v1616_v57, %v1618_v58  ;;  %v1629_v61 = vadd.f32 %v1626_v56, %v1621_v59 }
 0x2d3   : > { %v1628_v62 = vadd.f32 %v1626_v56, %v1620_v60  ;;  %v1631_v63 = vmax.f32 %v1629_v61, 0.0  ;;  %1640 = sbr.rel (!%p2816_p5) target bundleno = 876 (0x36c), region = 88 }
 0x2d5   : > { %v1630_v0 = vmax.f32 %v1628_v62, 0.0  ;;  %1633 = vst [vmem:[%s4404_s6 + $0x8] sm:$0xff] %v1631_v63 }
 0x2d7   : > { %1632 = vst [vmem:[%s4404_s6] sm:$0xff] %v1630_v0 }
 0x2d8   : > { %s4738_s8 = smov (!%p1643_p9, %s1642_s8), 2 }
 0x2d9   : > { %s4417_s17 = sshll.u32 %s4738_s8, 3 }
 0x2da   : > { %p2289_p10 = scmp.eq.s32.totalorder %s4417_s17, 0 }
 0x2db   : > { %p1653_p11 = scmp.lt.u32.totalorder (!%p2289_p10), %s4417_s17, 8 }
 0x2dc   : > { %1652 = sbr.rel (%p2289_p10) target bundleno = 876 (0x36c), region = 92 }
 0x2e1   : > { %1656 = sbr.rel (%p1653_p11) target bundleno = 867 (0x363), region = 96  ;;  %s4422_s20 = sand.u32 (!%p1653_p11), 7, %s4417_s17  }
 0x2e2   : > { %p1673_p5 = scmp.eq.s32.totalorder (!%p1653_p11), %s4422_s20, 0  ;;  %p2290_p12 = scmp.ne.s32.totalorder (!%p1653_p11), %s4422_s20, 0 }
 0x2e6   : > { %1676 = sbr.rel (%p2290_p12) target bundleno = 802 (0x322), region = 111  ;;  %s1677_s15 = sshrl.u32 (!%p2290_p12), %s4417_s17, 3 }
 0x2e7   : > { %s4429_s18 = sshrl.u32 (!%p2290_p12), %s1677_s15, 5 }
 0x2e8   : > { %p2291_p13 = scmp.le.s32.totalorder (!%p2290_p12), %s4429_s18, 0 }
 0x2eb   : > { %2025 = sbr.rel (%p2291_p13) target bundleno = 785 (0x311), region = 232  ;;  %s4718_s5 = smov (!%p2291_p13), %s4415_s11 }
 0x2ec   : > { %s4719_s21 = smov (!%p2291_p13), %s4404_s6  ;;  %s4438_s22 = smov (!%p2291_p13), 0  }
 0x2ed   : > { %s4440_s30 = smov (!%p2291_p13), 0  }
 0x2f0 LB: >> { %v1688_v1 = vld [vmem:[%s2702_s21] sm:$0xff]  ;;  %v1690_v2 = vld [vmem:[%s2702_s21 + $0x8] sm:$0xff]  ;;  %v1692_v3 = vld [vmem:[%s2702_s21 + $0x10] sm:$0xff]  ;;  %s1752_s23 = sadd.s32 1, %s2706_s22  ;;  %s1682_s30 = sadd.s32 1, %s2710_s30   ;;  %s2710_s30 = sphi %s4440_s30, %s1682_s30   ;;  %s2706_s22 = sphi %s4438_s22, %s4722_s22   ;;  %s2702_s21 = sphi %s4719_s21, %s4721_s21   ;;  %s2698_s5 = sphi %s4718_s5, %s4720_s5  }
 0x2f1   : >> { %1689 = vst [vmem:[%s2698_s5] sm:$0xff] %v1688_v1  ;;  %v1694_v4 = vld [vmem:[%s2702_s21 + $0x18] sm:$0xff]  ;;  %p1753_p0 = scmp.ge.s32.totalorder %s1752_s23, %s4429_s18  ;;  %v1696_v5 = vld [vmem:[%s2702_s21 + $0x20] sm:$0xff]  ;;  %v1698_v6 = vld [vmem:[%s2702_s21 + $0x28] sm:$0xff]  ;;  %p1681_p1 = scmp.ge.s32.totalorder %s1682_s30, %s4429_s18 }
 0x2f2   : >> { %1691 = vst [vmem:[%s2698_s5 + $0x8] sm:$0xff] %v1690_v2  ;;  %v1700_v7 = vld [vmem:[%s2702_s21 + $0x30] sm:$0xff]  ;;  %v1702_v8 = vld [vmem:[%s2702_s21 + $0x38] sm:$0xff]  ;;  %v1704_v9 = vld [vmem:[%s2702_s21 + $0x40] sm:$0xff] }
 0x2f3   : >> { %1693 = vst [vmem:[%s2698_s5 + $0x10] sm:$0xff] %v1692_v3  ;;  %s4740_s23 = smov (%p1753_p0, %s1752_s23), 0  ;;  %v1706_v10 = vld [vmem:[%s2702_s21 + $0x48] sm:$0xff]  ;;  %v1708_v11 = vld [vmem:[%s2702_s21 + $0x50] sm:$0xff]  ;;  %v1710_v12 = vld [vmem:[%s2702_s21 + $0x58] sm:$0xff] }
 0x2f4   : >> { %1695 = vst [vmem:[%s2698_s5 + $0x18] sm:$0xff] %v1694_v4  ;;  %s2292_s24 = sshll.u32 %s4740_s23, 8  ;;  %v1712_v13 = vld [vmem:[%s2702_s21 + $0x60] sm:$0xff]  ;;  %v1714_v14 = vld [vmem:[%s2702_s21 + $0x68] sm:$0xff]  ;;  %v1716_v15 = vld [vmem:[%s2702_s21 + $0x70] sm:$0xff]  ;;  %s4722_s22 = smov %s4740_s23 }
 0x2f5   : >> { %1697 = vst [vmem:[%s2698_s5 + $0x20] sm:$0xff] %v1696_v5  ;;  %s4472_s14 = scalar_lea.vmem %s4404_s6, %s2292_s24 [#allocation3]   ;;  %s4475_s28 = scalar_lea.vmem %s4415_s11, %s2292_s24   ;;  %v1718_v16 = vld [vmem:[%s2702_s21 + $0x78] sm:$0xff]  ;;  %v1720_v18 = vld [vmem:[%s2702_s21 + $0x80] sm:$0xff]  ;;  %v1722_v19 = vld [vmem:[%s2702_s21 + $0x88] sm:$0xff] }
 0x2f6   : >> { %1699 = vst [vmem:[%s2698_s5 + $0x28] sm:$0xff] %v1698_v6  ;;  %v1724_v21 = vld [vmem:[%s2702_s21 + $0x90] sm:$0xff]  ;;  %v1726_v22 = vld [vmem:[%s2702_s21 + $0x98] sm:$0xff]  ;;  %v1728_v23 = vld [vmem:[%s2702_s21 + $0xa0] sm:$0xff] }
 0x2f7   : >> { %1701 = vst [vmem:[%s2698_s5 + $0x30] sm:$0xff] %v1700_v7  ;;  %v1730_v24 = vld [vmem:[%s2702_s21 + $0xa8] sm:$0xff]  ;;  %v1732_v25 = vld [vmem:[%s2702_s21 + $0xb0] sm:$0xff]  ;;  %v1734_v26 = vld [vmem:[%s2702_s21 + $0xb8] sm:$0xff] }
 0x2f8   : >> { %1703 = vst [vmem:[%s2698_s5 + $0x38] sm:$0xff] %v1702_v8  ;;  %v1736_v27 = vld [vmem:[%s2702_s21 + $0xc0] sm:$0xff]  ;;  %v1738_v28 = vld [vmem:[%s2702_s21 + $0xc8] sm:$0xff]  ;;  %v1740_v29 = vld [vmem:[%s2702_s21 + $0xd0] sm:$0xff] }
 0x2f9   : >> { %1705 = vst [vmem:[%s2698_s5 + $0x40] sm:$0xff] %v1704_v9  ;;  %v1742_v30 = vld [vmem:[%s2702_s21 + $0xd8] sm:$0xff]  ;;  %v1744_v31 = vld [vmem:[%s2702_s21 + $0xe0] sm:$0xff]  ;;  %v1746_v32 = vld [vmem:[%s2702_s21 + $0xe8] sm:$0xff] }
 0x2fa   : >> { %1707 = vst [vmem:[%s2698_s5 + $0x48] sm:$0xff] %v1706_v10  ;;  %v1748_v33 = vld [vmem:[%s2702_s21 + $0xf0] sm:$0xff]  ;;  %v1750_v34 = vld [vmem:[%s2702_s21 + $0xf8] sm:$0xff]  ;;  %s4721_s21 = smov %s4472_s14 }
 0x2fb   : >> { %1709 = vst [vmem:[%s2698_s5 + $0x50] sm:$0xff] %v1708_v11 }
 0x2fc   : >> { %1711 = vst [vmem:[%s2698_s5 + $0x58] sm:$0xff] %v1710_v12 }
 0x2fd   : >> { %1713 = vst [vmem:[%s2698_s5 + $0x60] sm:$0xff] %v1712_v13 }
 0x2fe   : >> { %1715 = vst [vmem:[%s2698_s5 + $0x68] sm:$0xff] %v1714_v14 }
 0x2ff   : >> { %1717 = vst [vmem:[%s2698_s5 + $0x70] sm:$0xff] %v1716_v15 }
 0x300   : >> { %1719 = vst [vmem:[%s2698_s5 + $0x78] sm:$0xff] %v1718_v16 }
 0x301   : >> { %1721 = vst [vmem:[%s2698_s5 + $0x80] sm:$0xff] %v1720_v18 }
 0x302   : >> { %1723 = vst [vmem:[%s2698_s5 + $0x88] sm:$0xff] %v1722_v19 }
 0x303   : >> { %1725 = vst [vmem:[%s2698_s5 + $0x90] sm:$0xff] %v1724_v21 }
 0x304   : >> { %1727 = vst [vmem:[%s2698_s5 + $0x98] sm:$0xff] %v1726_v22 }
 0x305   : >> { %1729 = vst [vmem:[%s2698_s5 + $0xa0] sm:$0xff] %v1728_v23 }
 0x306   : >> { %1731 = vst [vmem:[%s2698_s5 + $0xa8] sm:$0xff] %v1730_v24 }
 0x307   : >> { %1733 = vst [vmem:[%s2698_s5 + $0xb0] sm:$0xff] %v1732_v25 }
 0x308   : >> { %1735 = vst [vmem:[%s2698_s5 + $0xb8] sm:$0xff] %v1734_v26 }
 0x309   : >> { %1737 = vst [vmem:[%s2698_s5 + $0xc0] sm:$0xff] %v1736_v27 }
 0x30a   : >> { %1739 = vst [vmem:[%s2698_s5 + $0xc8] sm:$0xff] %v1738_v28 }
 0x30b   : >> { %1741 = vst [vmem:[%s2698_s5 + $0xd0] sm:$0xff] %v1740_v29 }
 0x30c   : >> { %1743 = vst [vmem:[%s2698_s5 + $0xd8] sm:$0xff] %v1742_v30  ;;  %1684 = sbr.rel (!%p1681_p1) target bundleno = 752 (0x2f0), region = 238 }
 0x30d   : >> { %1745 = vst [vmem:[%s2698_s5 + $0xe0] sm:$0xff] %v1744_v31 }
 0x30e   : >> { %1747 = vst [vmem:[%s2698_s5 + $0xe8] sm:$0xff] %v1746_v32 }
 0x30f   : >> { %1749 = vst [vmem:[%s2698_s5 + $0xf0] sm:$0xff] %v1748_v33 }
 0x310   : >> { %1751 = vst [vmem:[%s2698_s5 + $0xf8] sm:$0xff] %v1750_v34  ;;  %s4720_s5 = smov %s4475_s28 }
 0x311 PF: > { %s4541_s4 = sand.u32 31, %s1677_s15   ;;  %s2316_s25 = sshll.u32 %s4429_s18, 8 }
 0x312   : > { %s1763_s26 = scalar_lea.vmem %s4404_s6, %s2316_s25 [#allocation3]   ;;  %s1765_s27 = scalar_lea.vmem %s4415_s11, %s2316_s25  }
 0x313   : > { %p2297_p2 = scmp.le.s32.totalorder %s4541_s4, 0 }
 0x314   : > { %s2712_s29 = smov (!%p2297_p2), %s1765_s27   ;;  %s2716_s7 = smov (!%p2297_p2), %s1763_s26  }
 0x315   : > { %2039 = sbr.rel (%p2297_p2) target bundleno = 802 (0x322), region = 243  ;;  %s2720_s12 = smov (!%p2297_p2), 0  }
 0x316   : > { %s2724_s8 = smov (!%p2297_p2), 0  }
 0x31a LB: >> { %v1775_v35 = vld [vmem:[%s2718_s7] sm:$0xff]  ;;  %s1777_s9 = sadd.s32 1, %s2722_s12  ;;  %s1769_s8 = sadd.s32 1, %s2726_s8   ;;  %s2726_s8 = sphi %s2724_s8, %s1769_s8   ;;  %s2722_s12 = sphi %s2720_s12, %s2721_s12   ;;  %s2718_s7 = sphi %s2716_s7, %s1782_s7   ;;  %s2714_s29 = sphi %s2712_s29, %s1783_s29  }
 0x31b   : >> { %1776 = vst [vmem:[%s2714_s29] sm:$0xff] %v1775_v35  ;;  %p1778_p3 = scmp.ge.s32.totalorder %s1777_s9, %s4541_s4  ;;  %p1768_p4 = scmp.ge.s32.totalorder %s1769_s8, %s4541_s4 }
 0x31d   : >> { %s4742_s9 = smov (%p1778_p3, %s1777_s9), 0  ;;  %1771 = sbr.rel (!%p1768_p4) target bundleno = 794 (0x31a), region = 249 }
 0x31e   : >> { %s2298_s10 = sshll.u32 %s4742_s9, 3  ;;  %s2721_s12 = smov %s4742_s9  }
 0x31f   : >> { %s1782_s7 = scalar_lea.vmem %s1763_s26, %s2298_s10 [#allocation3]   ;;  %s1783_s29 = scalar_lea.vmem %s1765_s27, %s2298_s10  }
 0x322 PF: > { %1786 = sbr.rel (%p1673_p5) target bundleno = 867 (0x363), region = 129  ;;  %s4553_s15 = ssub.s32 (!%p1673_p5), %s4417_s17, %s4422_s20 }
 0x323   : > { %s1792_s18 = sshrl.u32 (!%p1673_p5), %s4417_s17, 3  ;;  %s1789_s5 = scalar_lea.vmem (!%p1673_p5), %s4404_s6, %s4553_s15 [#allocation3] }
 0x324   : > { %s1791_s21 = scalar_lea.vmem (!%p1673_p5), %s4415_s11, %s4553_s15  ;;  %s4562_s22 = sshrl.u32 (!%p1673_p5), %s1792_s18, 5 }
 0x325   : > { %p2300_p6 = scmp.le.s32.totalorder (!%p1673_p5), %s4562_s22, 0 }
 0x327   : > { %2053 = sbr.rel (%p2300_p6) target bundleno = 845 (0x34d), region = 254  ;;  %s4723_s30 = smov (!%p2300_p6), %s4415_s11 }
 0x328   : > { %s4724_s23 = smov (!%p2300_p6), %s4404_s6  ;;  %s4571_s24 = smov (!%p2300_p6), 0  }
 0x329   : > { %s4573_s14 = smov (!%p2300_p6), 0  }
 0x32c LB: >> { %v1803_v36 = vld [vmem:[%s2734_s23] sm:$0xff]  ;;  %v1805_v20 = vld [vmem:[%s2734_s23 + $0x8] sm:$0xff]  ;;  %v1807_v37 = vld [vmem:[%s2734_s23 + $0x10] sm:$0xff]  ;;  %s1867_s28 = sadd.s32 1, %s2738_s24  ;;  %s1797_s14 = sadd.s32 1, %s2742_s14   ;;  %s2742_s14 = sphi %s4573_s14, %s1797_s14   ;;  %s2738_s24 = sphi %s4571_s24, %s4727_s24   ;;  %s2734_s23 = sphi %s4724_s23, %s4726_s23   ;;  %s2730_s30 = sphi %s4723_s30, %s4725_s30  }
 0x32d   : >> { %1804 = vst [vmem:[%s2730_s30] sm:$0xff] %v1803_v36  ;;  %v1809_v38 = vld [vmem:[%s2734_s23 + $0x18] sm:$0xff]  ;;  %p1868_p7 = scmp.ge.s32.totalorder %s1867_s28, %s4562_s22  ;;  %v1811_v39 = vld [vmem:[%s2734_s23 + $0x20] sm:$0xff]  ;;  %v1813_v40 = vld [vmem:[%s2734_s23 + $0x28] sm:$0xff]  ;;  %p1796_p8 = scmp.ge.s32.totalorder %s1797_s14, %s4562_s22 }
 0x32e   : >> { %1806 = vst [vmem:[%s2730_s30 + $0x8] sm:$0xff] %v1805_v20  ;;  %v1815_v41 = vld [vmem:[%s2734_s23 + $0x30] sm:$0xff]  ;;  %v1817_v42 = vld [vmem:[%s2734_s23 + $0x38] sm:$0xff]  ;;  %v1819_v43 = vld [vmem:[%s2734_s23 + $0x40] sm:$0xff] }
 0x32f   : >> { %1808 = vst [vmem:[%s2730_s30 + $0x10] sm:$0xff] %v1807_v37  ;;  %s4744_s28 = smov (%p1868_p7, %s1867_s28), 0  ;;  %v1821_v44 = vld [vmem:[%s2734_s23 + $0x48] sm:$0xff]  ;;  %v1823_v45 = vld [vmem:[%s2734_s23 + $0x50] sm:$0xff]  ;;  %v1825_v46 = vld [vmem:[%s2734_s23 + $0x58] sm:$0xff] }
 0x330   : >> { %1810 = vst [vmem:[%s2730_s30 + $0x18] sm:$0xff] %v1809_v38  ;;  %s2301_s4 = sshll.u32 %s4744_s28, 8  ;;  %v1827_v47 = vld [vmem:[%s2734_s23 + $0x60] sm:$0xff]  ;;  %v1829_v48 = vld [vmem:[%s2734_s23 + $0x68] sm:$0xff]  ;;  %v1831_v17 = vld [vmem:[%s2734_s23 + $0x70] sm:$0xff]  ;;  %s4727_s24 = smov %s4744_s28 }
 0x331   : >> { %1812 = vst [vmem:[%s2730_s30 + $0x20] sm:$0xff] %v1811_v39  ;;  %s4605_s25 = scalar_lea.vmem %s4404_s6, %s2301_s4 [#allocation3]   ;;  %s4608_s26 = scalar_lea.vmem %s4415_s11, %s2301_s4   ;;  %v1833_v49 = vld [vmem:[%s2734_s23 + $0x78] sm:$0xff]  ;;  %v1835_v50 = vld [vmem:[%s2734_s23 + $0x80] sm:$0xff]  ;;  %v1837_v51 = vld [vmem:[%s2734_s23 + $0x88] sm:$0xff] }
 0x332   : >> { %1814 = vst [vmem:[%s2730_s30 + $0x28] sm:$0xff] %v1813_v40  ;;  %v1839_v52 = vld [vmem:[%s2734_s23 + $0x90] sm:$0xff]  ;;  %v1841_v53 = vld [vmem:[%s2734_s23 + $0x98] sm:$0xff]  ;;  %v1843_v54 = vld [vmem:[%s2734_s23 + $0xa0] sm:$0xff] }
 0x333   : >> { %1816 = vst [vmem:[%s2730_s30 + $0x30] sm:$0xff] %v1815_v41  ;;  %v1845_v55 = vld [vmem:[%s2734_s23 + $0xa8] sm:$0xff]  ;;  %v1847_v56 = vld [vmem:[%s2734_s23 + $0xb0] sm:$0xff]  ;;  %v1849_v57 = vld [vmem:[%s2734_s23 + $0xb8] sm:$0xff] }
 0x334   : >> { %1818 = vst [vmem:[%s2730_s30 + $0x38] sm:$0xff] %v1817_v42  ;;  %v1851_v58 = vld [vmem:[%s2734_s23 + $0xc0] sm:$0xff]  ;;  %v1853_v59 = vld [vmem:[%s2734_s23 + $0xc8] sm:$0xff]  ;;  %v1855_v60 = vld [vmem:[%s2734_s23 + $0xd0] sm:$0xff] }
 0x335   : >> { %1820 = vst [vmem:[%s2730_s30 + $0x40] sm:$0xff] %v1819_v43  ;;  %v1857_v61 = vld [vmem:[%s2734_s23 + $0xd8] sm:$0xff]  ;;  %v1859_v62 = vld [vmem:[%s2734_s23 + $0xe0] sm:$0xff]  ;;  %v1861_v63 = vld [vmem:[%s2734_s23 + $0xe8] sm:$0xff] }
 0x336   : >> { %1822 = vst [vmem:[%s2730_s30 + $0x48] sm:$0xff] %v1821_v44  ;;  %v1863_v0 = vld [vmem:[%s2734_s23 + $0xf0] sm:$0xff]  ;;  %v1865_v1 = vld [vmem:[%s2734_s23 + $0xf8] sm:$0xff]  ;;  %s4726_s23 = smov %s4605_s25 }
 0x337   : >> { %1824 = vst [vmem:[%s2730_s30 + $0x50] sm:$0xff] %v1823_v45 }
 0x338   : >> { %1826 = vst [vmem:[%s2730_s30 + $0x58] sm:$0xff] %v1825_v46 }
 0x339   : >> { %1828 = vst [vmem:[%s2730_s30 + $0x60] sm:$0xff] %v1827_v47 }
 0x33a   : >> { %1830 = vst [vmem:[%s2730_s30 + $0x68] sm:$0xff] %v1829_v48 }
 0x33b   : >> { %1832 = vst [vmem:[%s2730_s30 + $0x70] sm:$0xff] %v1831_v17 }
 0x33c   : >> { %1834 = vst [vmem:[%s2730_s30 + $0x78] sm:$0xff] %v1833_v49 }
 0x33d   : >> { %1836 = vst [vmem:[%s2730_s30 + $0x80] sm:$0xff] %v1835_v50 }
 0x33e   : >> { %1838 = vst [vmem:[%s2730_s30 + $0x88] sm:$0xff] %v1837_v51 }
 0x33f   : >> { %1840 = vst [vmem:[%s2730_s30 + $0x90] sm:$0xff] %v1839_v52 }
 0x340   : >> { %1842 = vst [vmem:[%s2730_s30 + $0x98] sm:$0xff] %v1841_v53 }
 0x341   : >> { %1844 = vst [vmem:[%s2730_s30 + $0xa0] sm:$0xff] %v1843_v54 }
 0x342   : >> { %1846 = vst [vmem:[%s2730_s30 + $0xa8] sm:$0xff] %v1845_v55 }
 0x343   : >> { %1848 = vst [vmem:[%s2730_s30 + $0xb0] sm:$0xff] %v1847_v56 }
 0x344   : >> { %1850 = vst [vmem:[%s2730_s30 + $0xb8] sm:$0xff] %v1849_v57 }
 0x345   : >> { %1852 = vst [vmem:[%s2730_s30 + $0xc0] sm:$0xff] %v1851_v58 }
 0x346   : >> { %1854 = vst [vmem:[%s2730_s30 + $0xc8] sm:$0xff] %v1853_v59 }
 0x347   : >> { %1856 = vst [vmem:[%s2730_s30 + $0xd0] sm:$0xff] %v1855_v60 }
 0x348   : >> { %1858 = vst [vmem:[%s2730_s30 + $0xd8] sm:$0xff] %v1857_v61  ;;  %1799 = sbr.rel (!%p1796_p8) target bundleno = 812 (0x32c), region = 260 }
 0x349   : >> { %1860 = vst [vmem:[%s2730_s30 + $0xe0] sm:$0xff] %v1859_v62 }
 0x34a   : >> { %1862 = vst [vmem:[%s2730_s30 + $0xe8] sm:$0xff] %v1861_v63 }
 0x34b   : >> { %1864 = vst [vmem:[%s2730_s30 + $0xf0] sm:$0xff] %v1863_v0 }
 0x34c   : >> { %1866 = vst [vmem:[%s2730_s30 + $0xf8] sm:$0xff] %v1865_v1  ;;  %s4725_s30 = smov %s4608_s26 }
 0x34d PF: > { %s4674_s27 = sand.u32 31, %s1792_s18   ;;  %s2318_s29 = sshll.u32 %s4562_s22, 8 }
 0x34e   : > { %s1878_s7 = scalar_lea.vmem %s4404_s6, %s2318_s29 [#allocation3]   ;;  %s1880_s12 = scalar_lea.vmem %s4415_s11, %s2318_s29  }
 0x34f   : > { %p2306_p9 = scmp.le.s32.totalorder %s4674_s27, 0 }
 0x350   : > { %s2744_s8 = smov (!%p2306_p9), %s1880_s12   ;;  %s2748_s9 = smov (!%p2306_p9), %s1878_s7  }
 0x351   : > { %2067 = sbr.rel (%p2306_p9) target bundleno = 862 (0x35e), region = 265  ;;  %s2752_s10 = smov (!%p2306_p9), 0  }
 0x352   : > { %s2756_s28 = smov (!%p2306_p9), 0  }
 0x356 LB: >> { %v1890_v2 = vld [vmem:[%s2750_s9] sm:$0xff]  ;;  %s1892_s18 = sadd.s32 1, %s2754_s10  ;;  %s1884_s28 = sadd.s32 1, %s2758_s28   ;;  %s2758_s28 = sphi %s2756_s28, %s1884_s28   ;;  %s2754_s10 = sphi %s2752_s10, %s2753_s10   ;;  %s2750_s9 = sphi %s2748_s9, %s1897_s9   ;;  %s2746_s8 = sphi %s2744_s8, %s1898_s8  }
 0x357   : >> { %1891 = vst [vmem:[%s2746_s8] sm:$0xff] %v1890_v2  ;;  %p1893_p10 = scmp.ge.s32.totalorder %s1892_s18, %s4674_s27  ;;  %p1883_p11 = scmp.ge.s32.totalorder %s1884_s28, %s4674_s27 }
 0x359   : >> { %s4746_s18 = smov (%p1893_p10, %s1892_s18), 0  ;;  %1886 = sbr.rel (!%p1883_p11) target bundleno = 854 (0x356), region = 271 }
 0x35a   : >> { %s2307_s22 = sshll.u32 %s4746_s18, 3  ;;  %s2753_s10 = smov %s4746_s18  }
 0x35b   : >> { %s1897_s9 = scalar_lea.vmem %s1878_s7, %s2307_s22 [#allocation3]   ;;  %s1898_s8 = scalar_lea.vmem %s1880_s12, %s2307_s22  }
 0x35e PF: > { %s2763_s30 = smov 1  }
 0x35f   : > { %s1899_s23 = sshll.u32 %s2763_s30, %s4422_s20 }
 0x360   : > { %s2309_s24 = sadd.s32 4294967295, %s1899_s23 }
 0x361   : > { %v1909_v3 = vld [vmem:[%s1789_s5] sm:%s2309_s24] }
 0x362   : > { %1910 = vst [vmem:[%s1791_s21] sm:%s2309_s24] %v1909_v3 }
 0x363 PF: > { %p2310_p5 = scmp.ge.u32.totalorder %s4417_s17, 8 }
 0x364   : > { %s2764_s14 = smov (!%p2310_p5), 1  }
 0x365   : > { %1659 = sbr.rel (%p2310_p5) target bundleno = 876 (0x36c), region = 100  ;;  %s1660_s4 = sshll.u32 (!%p2310_p5), %s2764_s14, %s4417_s17 }
 0x366   : > { %s2311_s25 = sadd.s32 (!%p2310_p5), 4294967295, %s1660_s4 }
 0x36a   : > { %v1670_v4 = vld [vmem:[%s4404_s6] sm:%s2311_s25] }
 0x36b   : > { %1671 = vst [vmem:[%s4415_s11] sm:%s2311_s25] %v1670_v4 }
 0x36c PF: > { %p10_p12 = scmp.ge.s32.totalorder %s2804_s16, 4   ;;  %s4728_s12 = smov %s2658_s13 }
 0x36d   : > { %s4729_s13 = smov %s2814_s19  ;;  %s4730_s14 = smov %s2804_s16 }
 0x36e   :  { %12 = sbr.rel (!%p10_p12) target bundleno = 2 (0x2), region = 282 }

// kernel: stn_forward.4
= control target key start
LH: loop header
LB: loop body
LE: loop exit
PB: predicated region body
PF: predicated region fallthrough
CT: control target
= control target key end

     0   :  { %vm43_vm0 = vcmask 588800   ;;  %vm334_vm1 = vcmask 261120   ;;  %vm336_vm2 = vcmask 254976   ;;  %s820_s0 = inlined_call_operand.vmem [shape: f32[4,200,32], index: 0, kind: input, shape index: {}]   ;;  %s821_s1 = inlined_call_operand.vmem [shape: f32[10,200], index: 1, kind: input, shape index: {}]   ;;  %s822_s2 = inlined_call_operand.vmem [shape: f32[10,1], index: 2, kind: input, shape index: {}]   ;;  %s823_s3 = inlined_call_operand.vmem [shape: f32[10,32], index: 3, kind: output, shape index: {}]  }
   0x1   :  { %v33_v0 = vld [vmem:[%s820_s0 + $0x78] sm:$0xff]  ;;  %v368_v1 = vld [vmem:[%s820_s0 + $0x188] sm:$0xff]  ;;  %v32_v2 = vld [vmem:[%s820_s0 + $0x70] sm:$0xff] }
   0x2   :  { %50 = vmatpush.msra.mxu0 %v33_v0  ;;  %152 = vmatpush.msra.mxu3 %v368_v1  ;;  %v359_v3 = vld [vmem:[%s820_s0 + $0x140] sm:$0xff]  ;;  %v31_v5 = vld [vmem:[%s820_s0 + $0x68] sm:$0xff]  ;;  %v358_v6 = vld [vmem:[%s820_s0 + $0x138] sm:$0xff] }
   0x3   :  { %v367_v4 = vld [vmem:[%s820_s0 + $0x180] sm:$0xff]  ;;  %122 = vmatpush.msra.mxu2 %v359_v3  ;;  %v366_v7 = vld [vmem:[%s820_s0 + $0x178] sm:$0xff]  ;;  %v357_v8 = vld [vmem:[%s820_s0 + $0x130] sm:$0xff] }
   0x4   :  { %51 = vmatpush.msra.mxu0 %v32_v2  ;;  %153 = vmatpush.msra.mxu3 %v367_v4  ;;  %v42_v9 = vld [vmem:[%s820_s0 + $0xc0] sm:$0xff]  ;;  %v365_v11 = vld [vmem:[%s820_s0 + $0x170] sm:$0xff]  ;;  %v356_v12 = vld [vmem:[%s820_s0 + $0x128] sm:$0xff] }
   0x5   :  { %123 = vmatpush.msra.mxu2 %v358_v6  ;;  %v30_v10 = vld [vmem:[%s820_s0 + $0x60] sm:$0xff]  ;;  %80 = vmatpush.msra.mxu1 %v42_v9  ;;  %v41_v13 = vld [vmem:[%s820_s0 + $0xb8] sm:$0xff]  ;;  %v364_v15 = vld [vmem:[%s820_s0 + $0x168] sm:$0xff] }
   0x6   :  { %52 = vmatpush.msra.mxu0 %v31_v5  ;;  %154 = vmatpush.msra.mxu3 %v366_v7  ;;  %v29_v14 = vld [vmem:[%s820_s0 + $0x58] sm:$0xff]  ;;  %v40_v16 = vld [vmem:[%s820_s0 + $0xb0] sm:$0xff]  ;;  %v355_v17 = vld [vmem:[%s820_s0 + $0x120] sm:$0xff] }
   0x7   :  { %124 = vmatpush.msra.mxu2 %v357_v8  ;;  %81 = vmatpush.msra.mxu1 %v41_v13  ;;  %v39_v18 = vld [vmem:[%s820_s0 + $0xa8] sm:$0xff]  ;;  %v28_v19 = vld [vmem:[%s820_s0 + $0x50] sm:$0xff]  ;;  %v363_v20 = vld [vmem:[%s820_s0 + $0x160] sm:$0xff] }
   0x8   :  { %53 = vmatpush.msra.mxu0 %v30_v10  ;;  %155 = vmatpush.msra.mxu3 %v365_v11  ;;  %v354_v21 = vld [vmem:[%s820_s0 + $0x118] sm:$0xff]  ;;  %v38_v22 = vld [vmem:[%s820_s0 + $0xa0] sm:$0xff]  ;;  %v27_v23 = vld [vmem:[%s820_s0 + $0x48] sm:$0xff] }
   0x9   :  { %125 = vmatpush.msra.mxu2 %v356_v12  ;;  %82 = vmatpush.msra.mxu1 %v40_v16  ;;  %v362_v24 = vld [vmem:[%s820_s0 + $0x158] sm:$0xff]  ;;  %v353_v25 = vld [vmem:[%s820_s0 + $0x110] sm:$0xff]  ;;  %v26_v27 = vld [vmem:[%s820_s0 + $0x40] sm:$0xff] }
   0xa   :  { %54 = vmatpush.msra.mxu0 %v29_v14  ;;  %156 = vmatpush.msra.mxu3 %v364_v15  ;;  %v37_v26 = vld [vmem:[%s820_s0 + $0x98] sm:$0xff]  ;;  %v361_v28 = vld [vmem:[%s820_s0 + $0x150] sm:$0xff]  ;;  %v352_v29 = vld [vmem:[%s820_s0 + $0x108] sm:$0xff] }
   0xb   :  { %126 = vmatpush.msra.mxu2 %v355_v17  ;;  %83 = vmatpush.msra.mxu1 %v39_v18  ;;  %v36_v30 = vld [vmem:[%s820_s0 + $0x90] sm:$0xff]  ;;  %v25_v31 = vld [vmem:[%s820_s0 + $0x38] sm:$0xff]  ;;  %v360_v32 = vld [vmem:[%s820_s0 + $0x148] sm:$0xff] }
   0xc   :  { %55 = vmatpush.msra.mxu0 %v28_v19  ;;  %157 = vmatpush.msra.mxu3 %v363_v20  ;;  %v395_v33 = vld [vmem:[%s820_s0 + $0x250] sm:$0xff]  ;;  %v351_v34 = vld [vmem:[%s820_s0 + $0x100] sm:$0xff]  ;;  %v35_v36 = vld [vmem:[%s820_s0 + $0x88] sm:$0xff] }
   0xd   :  { %127 = vmatpush.msra.mxu2 %v354_v21  ;;  %84 = vmatpush.msra.mxu1 %v38_v22  ;;  %v24_v35 = vld [vmem:[%s820_s0 + $0x30] sm:$0xff]  ;;  %v394_v37 = vld [vmem:[%s820_s0 + $0x248] sm:$0xff]  ;;  %v350_v38 = vld [vmem:[%s820_s0 + $0xf8] sm:$0xff] }
   0xe   :  { %56 = vmatpush.msra.mxu0 %v27_v23  ;;  %158 = vmatpush.msra.mxu3 %v362_v24  ;;  %v23_v39 = vld [vmem:[%s820_s0 + $0x28] sm:$0xff]  ;;  %v34_v40 = vld [vmem:[%s820_s0 + $0x80] sm:$0xff]  ;;  %v349_v42 = vld [vmem:[%s820_s0 + $0xf0] sm:$0xff] }
   0xf   :  { %128 = vmatpush.msra.mxu2 %v353_v25  ;;  %85 = vmatpush.msra.mxu1 %v37_v26  ;;  %v393_v41 = vld [vmem:[%s820_s0 + $0x240] sm:$0xff]  ;;  %v386_v44 = vld [vmem:[%s820_s0 + $0x208] sm:$0xff]  ;;  %v392_v45 = vld [vmem:[%s820_s0 + $0x238] sm:$0xff] }
  0x10   :  { %57 = vmatpush.msra.mxu0 %v26_v27  ;;  %159 = vmatpush.msra.mxu3 %v361_v28  ;;  %v22_v43 = vld [vmem:[%s820_s0 + $0x20] sm:$0xff]  ;;  %v348_v46 = vld [vmem:[%s820_s0 + $0xe8] sm:$0xff]  ;;  %v21_v47 = vld [vmem:[%s820_s0 + $0x18] sm:$0xff] }
  0x11   :  { %129 = vmatpush.msra.mxu2 %v352_v29  ;;  %86 = vmatpush.msra.mxu1 %v36_v30  ;;  %v385_v48 = vld [vmem:[%s820_s0 + $0x200] sm:$0xff]  ;;  %v391_v49 = vld [vmem:[%s820_s0 + $0x230] sm:$0xff]  ;;  %v384_v52 = vld [vmem:[%s820_s0 + $0x1f8] sm:$0xff] }
  0x12   :  { %58 = vmatpush.msra.mxu0 %v25_v31  ;;  %160 = vmatpush.msra.mxu3 %v360_v32  ;;  %v347_v50 = vld [vmem:[%s820_s0 + $0xe0] sm:$0xff]  ;;  %v20_v51 = vld [vmem:[%s820_s0 + $0x10] sm:$0xff]  ;;  %v390_v53 = vld [vmem:[%s820_s0 + $0x228] sm:$0xff] }
  0x13   :  { %130 = vmatpush.msra.mxu2 %v351_v34  ;;  %87 = vmatpush.msra.mxu1 %v35_v36  ;;  %v346_v54 = vld [vmem:[%s820_s0 + $0xd8] sm:$0xff]  ;;  %v19_v55 = vld [vmem:[%s820_s0 + $0x8] sm:$0xff]  ;;  %v383_v56 = vld [vmem:[%s820_s0 + $0x1f0] sm:$0xff] }
  0x14   :  { %224 = vmatpush.msrb.mxu3 %v395_v33  ;;  %59 = vmatpush.msra.mxu0 %v24_v35  ;;  %v389_v57 = vld [vmem:[%s820_s0 + $0x220] sm:$0xff]  ;;  %v345_v58 = vld [vmem:[%s820_s0 + $0xd0] sm:$0xff]  ;;  %v382_v60 = vld [vmem:[%s820_s0 + $0x1e8] sm:$0xff] }
  0x15   :  { %131 = vmatpush.msra.mxu2 %v350_v38  ;;  %88 = vmatpush.msra.mxu1 %v34_v40  ;;  %v18_v59 = vld [vmem:[%s820_s0] sm:$0xff]  ;;  %v388_v61 = vld [vmem:[%s820_s0 + $0x218] sm:$0xff]  ;;  %v413_v62 = vld [vmem:[%s820_s0 + $0x2d0] sm:$0xff] }
  0x16   :  { %225 = vmatpush.msrb.mxu3 %v394_v37  ;;  %60 = vmatpush.msra.mxu0 %v23_v39  ;;  %v344_v63 = vld [vmem:[%s820_s0 + $0xc8] sm:$0xff]  ;;  %v664_v1 = vld [vmem:[%s821_s1] sm:$0xff]  ;;  %v387_v2 = vld [vmem:[%s820_s0 + $0x210] sm:$0xff] }
  0x17   :  { %132 = vmatpush.msra.mxu2 %v349_v42  ;;  %194 = vmatpush.msrb.mxu1 %v386_v44  ;;  %v659_v0 = vld [vmem:[%s821_s1 + $0x8] sm:$0xff]  ;;  %v381_v4 = vld [vmem:[%s820_s0 + $0x1e0] sm:$0xff]  ;;  %v380_v6 = vld [vmem:[%s820_s0 + $0x1d8] sm:$0xff] }
  0x18   :  { %226 = vmatpush.msrb.mxu3 %v393_v41  ;;  %61 = vmatpush.msra.mxu0 %v22_v43  ;;  %v412_v3 = vld [vmem:[%s820_s0 + $0x2c8] sm:$0xff]  ;;  %v411_v5 = vld [vmem:[%s820_s0 + $0x2c0] sm:$0xff]  ;;  %v410_v7 = vld [vmem:[%s820_s0 + $0x2b8] sm:$0xff]  ;;  %v443_v41 = vmov 0  }
  0x19   :  { %133 = vmatpush.msra.mxu2 %v348_v46  ;;  %195 = vmatpush.msrb.mxu1 %v385_v48  ;;  %v379_v8 = vld [vmem:[%s820_s0 + $0x1d0] sm:$0xff]  ;;  %v422_v9 = vld [vmem:[%s820_s0 + $0x318] sm:$0xff]  ;;  %v378_v11 = vld [vmem:[%s820_s0 + $0x1c8] sm:$0xff] }
  0x1a   :  { %227 = vmatpush.msrb.mxu3 %v392_v45  ;;  %62 = vmatpush.msra.mxu0 %v21_v47  ;;  %v409_v10 = vld [vmem:[%s820_s0 + $0x2b0] sm:$0xff]  ;;  %v710_v13 = vld [vmem:[%s821_s1 + $0x18] sm:$0x3]  ;;  %v408_v14 = vld [vmem:[%s820_s0 + $0x2a8] sm:$0xff] }
  0x1b   :  { %134 = vmatpush.msra.mxu2 %v347_v50  ;;  %196 = vmatpush.msrb.mxu1 %v384_v52  ;;  %v705_v12 = vld [vmem:[%s821_s1 + $0x10] sm:$0x3]  ;;  %v377_v16 = vld [vmem:[%s820_s0 + $0x1c0] sm:$0xff]  ;;  %v420_v18 = vld [vmem:[%s820_s0 + $0x308] sm:$0xff] }
  0x1c   :  { %228 = vmatpush.msrb.mxu3 %v391_v49  ;;  %63 = vmatpush.msra.mxu0 %v20_v51  ;;  %v421_v15 = vld [vmem:[%s820_s0 + $0x310] sm:$0xff]  ;;  %v407_v17 = vld [vmem:[%s820_s0 + $0x2a0] sm:$0xff]  ;;  %v376_v19 = vld [vmem:[%s820_s0 + $0x1b8] sm:$0xff] }
  0x1d   :  { %135 = vmatpush.msra.mxu2 %v346_v54  ;;  %197 = vmatpush.msrb.mxu1 %v383_v56  ;;  %v406_v20 = vld [vmem:[%s820_s0 + $0x298] sm:$0xff]  ;;  %v419_v21 = vld [vmem:[%s820_s0 + $0x300] sm:$0xff]  ;;  %v375_v22 = vld [vmem:[%s820_s0 + $0x1b0] sm:$0xff] }
  0x1e   :  { %229 = vmatpush.msrb.mxu3 %v390_v53  ;;  %64 = vmatpush.msra.mxu0 %v19_v55  ;;  %v405_v23 = vld [vmem:[%s820_s0 + $0x290] sm:$0xff]  ;;  %v418_v24 = vld [vmem:[%s820_s0 + $0x2f8] sm:$0xff]  ;;  %v374_v25 = vld [vmem:[%s820_s0 + $0x1a8] sm:$0xff] }
  0x1f   :  { %136 = vmatpush.msra.mxu2 %v345_v58  ;;  %198 = vmatpush.msrb.mxu1 %v382_v60  ;;  %v404_v26 = vld [vmem:[%s820_s0 + $0x288] sm:$0xff]  ;;  %v417_v27 = vld [vmem:[%s820_s0 + $0x2f0] sm:$0xff]  ;;  %v373_v28 = vld [vmem:[%s820_s0 + $0x1a0] sm:$0xff] }
  0x20   :  { %230 = vmatpush.msrb.mxu3 %v389_v57  ;;  %65 = vmatpush.msra.mxu0 %v18_v59  ;;  %v403_v29 = vld [vmem:[%s820_s0 + $0x280] sm:$0xff]  ;;  %v416_v30 = vld [vmem:[%s820_s0 + $0x2e8] sm:$0xff]  ;;  %v372_v31 = vld [vmem:[%s820_s0 + $0x198] sm:$0xff] }
  0x21   :  { %137 = vmatpush.msra.mxu2 %v344_v63  ;;  %369 = vmatmul.msk.f32.vlgmr.msra.gmra.mxu3 %vm43_vm0, %v659_v0  ;;  %v402_v32 = vld [vmem:[%s820_s0 + $0x278] sm:$0xff]  ;;  %v415_v33 = vld [vmem:[%s820_s0 + $0x2e0] sm:$0xff]  ;;  %v371_v34 = vld [vmem:[%s820_s0 + $0x190] sm:$0xff] }
  0x22   :  { %231 = vmatpush.msrb.mxu3 %v388_v61  ;;  %266 = vmatpush.msrb.mxu0 %v413_v62  ;;  %v401_v35 = vld [vmem:[%s820_s0 + $0x270] sm:$0xff]  ;;  %v414_v36 = vld [vmem:[%s820_s0 + $0x2d8] sm:$0xff]  ;;  %v400_v37 = vld [vmem:[%s820_s0 + $0x268] sm:$0xff] }
  0x23   :  { %138 = vmatmul.f32.vlgmr.msra.gmra.mxu2 %v664_v1  ;;  %199 = vmatpush.msrb.mxu1 %v381_v4  ;;  %v399_v38 = vld [vmem:[%s820_s0 + $0x260] sm:$0xff]  ;;  %v398_v40 = vld [vmem:[%s820_s0 + $0x258] sm:$0xff]  ;;  %v319_v42 = vld [vmem:[%s822_s2 + $0x8] sm:$0x3] }
  0x24   :  { %232 = vmatpush.msrb.mxu3 %v387_v2  ;;  %267 = vmatpush.msrb.mxu0 %v412_v3  ;;  %v318_v39 = vld [vmem:[%s822_s2] sm:$0xff] }
  0x25   :  { %66 = vmatmul.f32.vlgmr.msra.gmra.mxu0 %v664_v1  ;;  %200 = vmatpush.msrb.mxu1 %v380_v6 }
  0x26   :  { %425 = vmatpush.msra.mxu3 %v413_v62  ;;  %268 = vmatpush.msrb.mxu0 %v411_v5 }
  0x27   :  { %342 = vmatmul.msk.f32.vlgmr.msra.gmra.mxu1 %vm43_vm0, %v659_v0  ;;  %296 = vmatpush.msrb.mxu2 %v422_v9 }
  0x28   :  { %426 = vmatpush.msra.mxu3 %v412_v3  ;;  %269 = vmatpush.msrb.mxu0 %v410_v7 }
  0x29   :  { %201 = vmatpush.msrb.mxu1 %v379_v8  ;;  %370 = vmatmul.msk.f32.gmra.mxu3 %vm43_vm0, %v710_v13 }
  0x2a   :  { %427 = vmatpush.msra.mxu3 %v411_v5  ;;  %270 = vmatpush.msrb.mxu0 %v409_v10 }
  0x2b   :  { %202 = vmatpush.msrb.mxu1 %v378_v11  ;;  %141 = vmatmul.f32.gmra.mxu2 %v705_v12 }
  0x2c   :  { %428 = vmatpush.msra.mxu3 %v410_v7  ;;  %271 = vmatpush.msrb.mxu0 %v408_v14 }
  0x2d   :  { %297 = vmatpush.msrb.mxu2 %v421_v15  ;;  %203 = vmatpush.msrb.mxu1 %v377_v16 }
  0x2e   :  { %429 = vmatpush.msra.mxu3 %v409_v10  ;;  %272 = vmatpush.msrb.mxu0 %v407_v17 }
  0x2f   :  { %298 = vmatpush.msrb.mxu2 %v420_v18  ;;  %204 = vmatpush.msrb.mxu1 %v376_v19 }
  0x30   :  { %430 = vmatpush.msra.mxu3 %v408_v14  ;;  %273 = vmatpush.msrb.mxu0 %v406_v20 }
  0x31   :  { %299 = vmatpush.msrb.mxu2 %v419_v21  ;;  %205 = vmatpush.msrb.mxu1 %v375_v22 }
  0x32   :  { %431 = vmatpush.msra.mxu3 %v407_v17  ;;  %69 = vmatmul.f32.gmra.mxu0 %v705_v12 }
  0x33   :  { %343 = vmatmul.msk.f32.gmra.mxu1 %vm43_vm0, %v710_v13  ;;  %274 = vmatpush.msrb.mxu0 %v405_v23 }
  0x34   :  { %300 = vmatpush.msrb.mxu2 %v418_v24  ;;  %206 = vmatpush.msrb.mxu1 %v374_v25 }
  0x35   :  { %432 = vmatpush.msra.mxu3 %v406_v20  ;;  %275 = vmatpush.msrb.mxu0 %v404_v26 }
  0x36   :  { %396 = vmatmul.msk.f32.vlgmr.msrb.gmra.mxu3 %vm43_vm0, %v659_v0  ;;  %301 = vmatpush.msrb.mxu2 %v417_v27 }
  0x37   :  { %207 = vmatpush.msrb.mxu1 %v373_v28  ;;  %433 = vmatpush.msra.mxu3 %v405_v23 }
  0x38   :  { %276 = vmatpush.msrb.mxu0 %v403_v29  ;;  %302 = vmatpush.msrb.mxu2 %v416_v30 }
  0x39   :  { %208 = vmatpush.msrb.mxu1 %v372_v31  ;;  %434 = vmatpush.msra.mxu3 %v404_v26 }
  0x3a   :  { %277 = vmatpush.msrb.mxu0 %v402_v32  ;;  %303 = vmatpush.msrb.mxu2 %v415_v33 }
  0x3b   :  { %209 = vmatpush.msrb.mxu1 %v371_v34  ;;  %435 = vmatpush.msra.mxu3 %v403_v29 }
  0x3c   :  { %210 = vmatmul.f32.vlgmr.msrb.gmra.mxu1 %v664_v1  ;;  %278 = vmatpush.msrb.mxu0 %v401_v35 }
  0x3d   :  { %304 = vmatpush.msrb.mxu2 %v414_v36  ;;  %436 = vmatpush.msra.mxu3 %v402_v32 }
  0x3e   :  { %423 = vmatmul.msk.f32.vlgmr.msrb.gmra.mxu2 %vm43_vm0, %v659_v0  ;;  %397 = vmatmul.msk.f32.gmra.mxu3 %vm43_vm0, %v710_v13 }
  0x3f   :  { %279 = vmatpush.msrb.mxu0 %v400_v37  ;;  %437 = vmatpush.msra.mxu3 %v401_v35 }
  0x40   :  { %442 = vset.pattern.permute.xlu0 %v443_v41 }
  0x41   :  { %280 = vmatpush.msrb.mxu0 %v399_v38  ;;  %438 = vmatpush.msra.mxu3 %v400_v37 }
  0x42   :  { %322 = vperm.xlu0 %442, %v318_v39  }
  0x43   :  { %281 = vmatpush.msrb.mxu0 %v398_v40  ;;  %439 = vmatpush.msra.mxu3 %v399_v38 }
  0x44   :  { %282 = vmatmul.f32.vlgmr.msrb.gmra.mxu0 %v664_v1  ;;  %213 = vmatmul.f32.gmra.mxu1 %v705_v12 }
  0x45   :  { %440 = vmatpush.msra.mxu3 %v398_v40 }
  0x46   :  { %285 = vmatmul.f32.vlgmr.msra.gmra.mxu3 %v705_v12  ;;  %424 = vmatmul.msk.f32.gmra.mxu2 %vm43_vm0, %v710_v13 }
  0x4a   :  { %327 = vperm.xlu0 %442, %v319_v42  }
  0xa2   :  { %v67_v46 = vpop.f32.mrf.mxu0 }
  0xa4   :  { %v162_v43 = vpop.f32.mrf.mxu3  ;;  %v90_v44 = vpop.f32.mrf.mxu1 }
  0xa5   :  { %v91_v53 = vadd.f32 %v90_v44, %v67_v46 }
  0xa6   :  { %v139_v45 = vpop.f32.mrf.mxu2 }
  0xa7   :  { %v163_v54 = vadd.f32 %v162_v43, %v139_v45 }
  0xa9   :  { %v312_v60 = vmax.f32 %v91_v53, %v163_v54 }
  0xac   :  { %v165_v47 = vpop.f32.mrf.mxu3 }
  0xae   :  { %v142_v49 = vpop.f32.mrf.mxu2 }
  0xaf   :  { %v70_v50 = vpop.f32.mrf.mxu0  ;;  %v166_v3 = vadd.f32 %v165_v47, %v142_v49 }
  0xb0   :  { %v93_v48 = vpop.f32.mrf.mxu1 }
  0xb1   :  { %v94_v2 = vadd.f32 %v93_v48, %v70_v50 }
  0xb3   :  { %v313_v9 = vmax.f32 %v94_v2, %v166_v3 }
  0xb4   :  { %v323_v62 = vpop.permute.xlu0 %322 }
  0xb9   :  { %v234_v51 = vpop.f32.mrf.mxu3  ;;  %v211_v52 = vpop.f32.mrf.mxu1 }
  0xba   :  { %v235_v57 = vadd.f32 %v234_v51, %v211_v52 }
  0xbc   :  { %v328_v12 = vpop.permute.xlu0 %327 }
  0xc1   :  { %v283_v55 = vpop.f32.mrf.mxu0  ;;  %v306_v56 = vpop.f32.mrf.mxu2 }
  0xc2   :  { %v307_v58 = vadd.f32 %v306_v56, %v283_v55  ;;  %v237_v59 = vpop.f32.mrf.mxu3  ;;  %v214_v1 = vpop.f32.mrf.mxu1 }
  0xc3   :  { %v238_v7 = vadd.f32 %v237_v59, %v214_v1 }
  0xc4   :  { %v314_v61 = vmax.f32 %v235_v57, %v307_v58 }
  0xc6   :  { %v316_v63 = vmax.f32 %v312_v60, %v314_v61 }
  0xc8   :  { %v330_v0 = vadd.f32 %v323_v62, %v316_v63 }
  0xc9   :  { %v309_v4 = vpop.f32.mrf.mxu2 }
  0xca   :  { %v332_v5 = vmax.f32 %v330_v0, 0.0  ;;  %v286_v6 = vpop.f32.mrf.mxu3 }
  0xcb   :  { %v310_v8 = vadd.f32 %v309_v4, %v286_v6 }
  0xcc   :  { %335 = vst.msk [vmem:[%s823_s3] sm:$0xff] %vm334_vm1, %v332_v5 }
  0xcd   :  { %v315_v10 = vmax.f32 %v238_v7, %v310_v8 }
  0xcf   :  { %v317_v11 = vmax.f32 %v313_v9, %v315_v10 }
  0xd1   :  { %v331_v13 = vadd.f32 %v328_v12, %v317_v11 }
  0xd3   :  { %v333_v14 = vmax.f32 %v331_v13, 0.0 }
  0xd5   :  { %337 = vst.msk [vmem:[%s823_s3 + $0x8] sm:$0x3] %vm336_vm2, %v333_v14 }

// kernel: stn_forward.5
= control target key start
LH: loop header
LB: loop body
LE: loop exit
PB: predicated region body
PF: predicated region fallthrough
CT: control target
= control target key end

     0   :  { %s1895_s15 = smov 0   ;;  %s2867_s0 = inlined_call_operand.vmem [shape: f32[2,2,1024], index: 0, kind: input, shape index: {}]   ;;  %s2868_s1 = inlined_call_operand.vmem [shape: f32[2,128,32], index: 1, kind: input, shape index: {}]   ;;  %s2869_s2 = inlined_call_operand.vmem [shape: f32[32,1024], index: 2, kind: input, shape index: {}, may-alias: {2,3}]   ;;  %s2870_s3 = inlined_call_operand.vmem [shape: f32[32,1024], index: 3, kind: input, shape index: {}, may-alias: {2,3}]   ;;  %s2871_s4 = inlined_call_operand.vmem [shape: f32[2,4,1024], index: 4, kind: output, shape index: {}]  }
   0x1 LB: > { %s1901_s16 = sadd.s32 4294967295, %s1868_s15   ;;  %p1712_p0 = scmp.ge.s32.totalorder %s1868_s15, 1  ;;  %s1868_s15 = sphi %s1895_s15, %s14_s15  }
   0x2   : > { %p152_p1 = scmp.lt.s32.totalorder %s1868_s15, 3 }
   0x4   : > { %p153_p2 = pnand %p1712_p0, %p152_p1 }
   0x6   : > { %156 = sbr.rel (%p153_p2) target bundleno = 442 (0x1ba), region = 36 }
   0xb   : > { %s1852_s17 = sshll.u32 %s1901_s16, 4  ;;  %v207_v1 = vld [vmem:[%s2869_s2 + $0xc0] sm:$0xff]  ;;  %v208_v3 = vld [vmem:[%s2869_s2 + $0xc8] sm:$0xff]  ;;  %v209_v5 = vld [vmem:[%s2869_s2 + $0xd0] sm:$0xff]  ;;  %vm387_vm0 = vcmask 261120   ;;  %s1717_s30 = sshll.u32 %s1901_s16, 7 }
   0xc   : > { %s1909_s20 = scalar_lea.vmem %s2867_s0, %s1852_s17  ;;  %v210_v8 = vld [vmem:[%s2869_s2 + $0xd8] sm:$0xff]  ;;  %v199_v9 = vld [vmem:[%s2869_s2 + $0x80] sm:$0xff]  ;;  %v200_v10 = vld [vmem:[%s2869_s2 + $0x88] sm:$0xff]  ;;  %s1995_s7 = scalar_lea.vmem %s2868_s1, %s1717_s30  ;;  %vm1261_vm1 = vcmask 1042434   ;;  %vm1259_vm2 = vcmask 1040384   ;;  %vm1263_vm3 = vcmask 1041408  }
   0xd   : > { %v1912_v0 = vld [vmem:[%s1909_s20] sm:$0xff]  ;;  %v201_v15 = vld [vmem:[%s2869_s2 + $0x90] sm:$0xff]  ;;  %v202_v16 = vld [vmem:[%s2869_s2 + $0x98] sm:$0xff]  ;;  %p173_p3 = scmp.lt.s32.totalorder %s1901_s16, 1  ;;  %vm1265_vm4 = vcmask 1044484   ;;  %vm1267_vm5 = vcmask 1046534  }
   0xe   : > { %v217_v2 = vperm.slane %v1912_v0, 0  ;;  %v218_v4 = vperm.slane %v1912_v0, 2  ;;  %v219_v6 = vperm.slane %v1912_v0, 4  ;;  %v220_v7 = vperm.slane %v1912_v0, 6  ;;  %v191_v17 = vld [vmem:[%s2869_s2 + $0x40] sm:$0xff]  ;;  %v192_v22 = vld [vmem:[%s2869_s2 + $0x48] sm:$0xff] }
   0xf   : > { %v193_v39 = vld [vmem:[%s2869_s2 + $0x50] sm:$0xff]  ;;  %v194_v44 = vld [vmem:[%s2869_s2 + $0x58] sm:$0xff]  ;;  %v183_v49 = vld [vmem:[%s2869_s2] sm:$0xff]  ;;  %s2878_s16 = smov (!%p173_p3, %s1901_s16), 1  ;;  %vm1269_vm6 = vcmask 1045508   ;;  %vm1271_vm7 = vcmask 1043456  }
  0x10   : > { %v1936_v11 = vperm.slane %v217_v2, 0  ;;  %v1938_v12 = vperm.slane %v218_v4, 0  ;;  %v1940_v13 = vperm.slane %v219_v6, 0  ;;  %v1942_v14 = vperm.slane %v220_v7, 0  ;;  %v184_v50 = vld [vmem:[%s2869_s2 + $0x8] sm:$0xff]  ;;  %v185_v55 = vld [vmem:[%s2869_s2 + $0x10] sm:$0xff] }
  0x11   : > { %v186_v60 = vld [vmem:[%s2869_s2 + $0x18] sm:$0xff]  ;;  %v182_v6 = vld [vmem:[%s1909_s20 + $0x8] sm:$0xff]  ;;  %s1851_s11 = sshll.u32 %s2878_s16, 5 }
  0x12   : > { %v265_v18 = vsub.f32 %v207_v1, %v1936_v11  ;;  %v266_v19 = vsub.f32 %v208_v3, %v1938_v12  ;;  %v267_v20 = vsub.f32 %v209_v5, %v1940_v13  ;;  %v268_v21 = vsub.f32 %v210_v8, %v1942_v14  ;;  %s2783_s13 = scalar_lea.vmem %s2871_s4, %s1851_s11 }
  0x13   : > { %v257_v23 = vsub.f32 %v199_v9, %v1936_v11  ;;  %v258_v24 = vsub.f32 %v200_v10, %v1938_v12  ;;  %v259_v25 = vsub.f32 %v201_v15, %v1940_v13  ;;  %v260_v26 = vsub.f32 %v202_v16, %v1942_v14 }
  0x14   : > { %v297_v27 = vand.u32 2147483647, %v265_v18  ;;  %v298_v28 = vand.u32 2147483647, %v266_v19  ;;  %v299_v29 = vand.u32 2147483647, %v267_v20  ;;  %v249_v30 = vsub.f32 %v191_v17, %v1936_v11 }
  0x15   : > { %v300_v31 = vand.u32 2147483647, %v268_v21  ;;  %v289_v32 = vand.u32 2147483647, %v257_v23  ;;  %v290_v33 = vand.u32 2147483647, %v258_v24  ;;  %v250_v34 = vsub.f32 %v192_v22, %v1938_v12 }
  0x16   : > { %v329_v35 = vsub.f32 1.0, %v297_v27  ;;  %v330_v36 = vsub.f32 1.0, %v298_v28  ;;  %v331_v37 = vsub.f32 1.0, %v299_v29  ;;  %v291_v38 = vand.u32 2147483647, %v259_v25  ;;  %v213_v27 = vld [vmem:[%s2869_s2 + $0xf0] sm:$0xff] }
  0x17   : > { %v332_v40 = vsub.f32 1.0, %v300_v31  ;;  %v321_v41 = vsub.f32 1.0, %v289_v32  ;;  %v322_v42 = vsub.f32 1.0, %v290_v33  ;;  %v292_v43 = vand.u32 2147483647, %v260_v26  ;;  %v214_v28 = vld [vmem:[%s2869_s2 + $0xf8] sm:$0xff] }
  0x18   : > { %v361_v45 = vmax.f32 %v329_v35, 0.0  ;;  %v362_v46 = vmax.f32 %v330_v36, 0.0  ;;  %v363_v47 = vmax.f32 %v331_v37, 0.0  ;;  %v323_v48 = vsub.f32 1.0, %v291_v38  ;;  %v211_v35 = vld [vmem:[%s2869_s2 + $0xe0] sm:$0xff] }
  0x19   : > { %v364_v51 = vmax.f32 %v332_v40, 0.0  ;;  %v353_v52 = vmax.f32 %v321_v41, 0.0  ;;  %v354_v53 = vmax.f32 %v322_v42, 0.0  ;;  %v324_v54 = vsub.f32 1.0, %v292_v43  ;;  %v212_v40 = vld [vmem:[%s2869_s2 + $0xe8] sm:$0xff] }
  0x1a   : > { %448 = vmatpush.msra.mxu0 %v361_v45  ;;  %513 = vmatpush.msra.mxu1 %v362_v46  ;;  %v355_v56 = vmax.f32 %v323_v48, 0.0  ;;  %v281_v57 = vand.u32 2147483647, %v249_v30  ;;  %v282_v58 = vand.u32 2147483647, %v250_v34  ;;  %v251_v59 = vsub.f32 %v193_v39, %v1940_v13  ;;  %v2004_v30 = vld [vmem:[%s1995_s7] sm:$0xff] }
  0x1b   : > { %578 = vmatpush.msra.mxu2 %v363_v47  ;;  %643 = vmatpush.msra.mxu3 %v364_v51  ;;  %v356_v61 = vmax.f32 %v324_v54, 0.0  ;;  %v252_v62 = vsub.f32 %v194_v44, %v1942_v14  ;;  %v241_v63 = vsub.f32 %v183_v49, %v1936_v11  ;;  %v242_v1 = vsub.f32 %v184_v50, %v1938_v12  ;;  %v205_v49 = vld [vmem:[%s2869_s2 + $0xb0] sm:$0xff]  ;;  %v206_v50 = vld [vmem:[%s2869_s2 + $0xb8] sm:$0xff]  ;;  %v203_v54 = vld [vmem:[%s2869_s2 + $0xa0] sm:$0xff] }
  0x1c   : > { %449 = vmatpush.msra.mxu0 %v353_v52  ;;  %514 = vmatpush.msra.mxu1 %v354_v53  ;;  %v313_v2 = vsub.f32 1.0, %v281_v57  ;;  %v314_v3 = vsub.f32 1.0, %v282_v58  ;;  %v283_v4 = vand.u32 2147483647, %v251_v59  ;;  %v243_v5 = vsub.f32 %v185_v55, %v1940_v13  ;;  %v204_v55 = vld [vmem:[%s2869_s2 + $0xa8] sm:$0xff] }
  0x1d   : > { %579 = vmatpush.msra.mxu2 %v355_v56  ;;  %644 = vmatpush.msra.mxu3 %v356_v61  ;;  %v284_v7 = vand.u32 2147483647, %v252_v62  ;;  %v273_v8 = vand.u32 2147483647, %v241_v63  ;;  %v274_v9 = vand.u32 2147483647, %v242_v1  ;;  %v244_v10 = vsub.f32 %v186_v60, %v1942_v14 }
  0x1e   : > { %v345_v15 = vmax.f32 %v313_v2, 0.0  ;;  %v346_v11 = vmax.f32 %v314_v3, 0.0  ;;  %v315_v16 = vsub.f32 1.0, %v283_v4  ;;  %v275_v12 = vand.u32 2147483647, %v243_v5  ;;  %v2047_v59 = vld [vmem:[%s1995_s7 + $0x8] sm:$0xff] }
  0x1f   : > { %v316_v17 = vsub.f32 1.0, %v284_v7  ;;  %v305_v18 = vsub.f32 1.0, %v273_v8  ;;  %v306_v19 = vsub.f32 1.0, %v274_v9  ;;  %v276_v20 = vand.u32 2147483647, %v244_v10 }
  0x20   : > { %450 = vmatpush.msra.mxu0 %v345_v15  ;;  %515 = vmatpush.msra.mxu1 %v346_v11  ;;  %v347_v13 = vmax.f32 %v315_v16, 0.0  ;;  %v307_v21 = vsub.f32 1.0, %v275_v12  ;;  %v223_v22 = vperm.slane %v182_v6, 4  ;;  %v224_v14 = vperm.slane %v182_v6, 6  ;;  %v2060_v12 = vld [vmem:[%s1995_s7 + $0x10] sm:$0xff] }
  0x21   : > { %v348_v23 = vmax.f32 %v316_v17, 0.0  ;;  %v337_v24 = vmax.f32 %v305_v18, 0.0  ;;  %v338_v25 = vmax.f32 %v306_v19, 0.0  ;;  %v308_v26 = vsub.f32 1.0, %v276_v20  ;;  %v2071_v17 = vld [vmem:[%s1995_s7 + $0x18] sm:$0xff]  ;;  %v2082_v18 = vld [vmem:[%s1995_s7 + $0x20] sm:$0xff] }
  0x22   : > { %580 = vmatpush.msra.mxu2 %v347_v13  ;;  %v339_v29 = vmax.f32 %v307_v21, 0.0  ;;  %v2006_v31 = vperm.slane %v223_v22, 0  ;;  %v2008_v32 = vperm.slane %v224_v14, 0  ;;  %v221_v33 = vperm.slane %v182_v6, 0  ;;  %v197_v19 = vld [vmem:[%s2869_s2 + $0x70] sm:$0xff]  ;;  %v198_v20 = vld [vmem:[%s2869_s2 + $0x78] sm:$0xff] }
  0x23   : > { %645 = vmatpush.msra.mxu3 %v348_v23  ;;  %451 = vmatpush.msra.mxu0 %v337_v24  ;;  %v340_v34 = vmax.f32 %v308_v26, 0.0  ;;  %v222_v36 = vperm.slane %v182_v6, 2  ;;  %v195_v13 = vld [vmem:[%s2869_s2 + $0x60] sm:$0xff]  ;;  %v196_v23 = vld [vmem:[%s2869_s2 + $0x68] sm:$0xff] }
  0x24   : > { %516 = vmatpush.msra.mxu1 %v338_v25  ;;  %581 = vmatpush.msra.mxu2 %v339_v29  ;;  %v271_v37 = vsub.f32 %v213_v27, %v2006_v31  ;;  %v272_v38 = vsub.f32 %v214_v28, %v2008_v32  ;;  %v2015_v39 = vperm.slane %v221_v33, 0  ;;  %v263_v52 = vsub.f32 %v205_v49, %v2006_v31  ;;  %v2108_v24 = vld [vmem:[%s1995_s7 + $0x28] sm:$0xff] }
  0x25   : > { %646 = vmatpush.msra.mxu3 %v340_v34  ;;  %1718 = vmatmul.msk.f32.vlgmr.msra.gmra.mxu0 %vm387_vm0, %v2004_v30  ;;  %v2022_v41 = vperm.slane %v222_v36, 0  ;;  %v264_v53 = vsub.f32 %v206_v50, %v2008_v32  ;;  %v255_v21 = vsub.f32 %v197_v19, %v2006_v31  ;;  %v256_v22 = vsub.f32 %v198_v20, %v2008_v32  ;;  %v967_v19 = vld [vmem:[%s2870_s3 + $0x58] sm:$0xff] }
  0x26   : > { %1734 = vmatmul.msk.f32.vlgmr.msra.gmra.mxu1 %vm387_vm0, %v2004_v30  ;;  %1750 = vmatmul.msk.f32.vlgmr.msra.gmra.mxu2 %vm387_vm0, %v2004_v30  ;;  %v303_v42 = vand.u32 2147483647, %v271_v37  ;;  %v304_v43 = vand.u32 2147483647, %v272_v38  ;;  %v269_v44 = vsub.f32 %v211_v35, %v2015_v39  ;;  %v261_v60 = vsub.f32 %v203_v54, %v2015_v39 }
  0x27   : > { %1766 = vmatmul.msk.f32.vlgmr.msra.gmra.mxu3 %vm387_vm0, %v2004_v30  ;;  %v270_v45 = vsub.f32 %v212_v40, %v2022_v41  ;;  %v295_v62 = vand.u32 2147483647, %v263_v52  ;;  %v296_v63 = vand.u32 2147483647, %v264_v53  ;;  %v262_v1 = vsub.f32 %v204_v55, %v2022_v41  ;;  %v188_v52 = vld [vmem:[%s2869_s2 + $0x28] sm:$0xff] }
  0x28   : > { %v335_v46 = vsub.f32 1.0, %v303_v42  ;;  %v336_v47 = vsub.f32 1.0, %v304_v43  ;;  %v301_v48 = vand.u32 2147483647, %v269_v44  ;;  %v293_v3 = vand.u32 2147483647, %v261_v60 }
  0x29   : > { %v302_v51 = vand.u32 2147483647, %v270_v45  ;;  %v327_v5 = vsub.f32 1.0, %v295_v62  ;;  %v328_v6 = vsub.f32 1.0, %v296_v63  ;;  %v294_v7 = vand.u32 2147483647, %v262_v1 }
  0x2a   : > { %v367_v56 = vmax.f32 %v335_v46, 0.0  ;;  %v368_v57 = vmax.f32 %v336_v47, 0.0  ;;  %v333_v58 = vsub.f32 1.0, %v301_v48  ;;  %v325_v8 = vsub.f32 1.0, %v293_v3  ;;  %v2120_v43 = vld [vmem:[%s1995_s7 + $0x30] sm:$0xff]  ;;  %v2131_v44 = vld [vmem:[%s1995_s7 + $0x38] sm:$0xff] }
  0x2b   : > { %v334_v61 = vsub.f32 1.0, %v302_v51  ;;  %v359_v9 = vmax.f32 %v327_v5, 0.0  ;;  %v360_v10 = vmax.f32 %v328_v6, 0.0  ;;  %v326_v15 = vsub.f32 1.0, %v294_v7  ;;  %v2142_v45 = vld [vmem:[%s1995_s7 + $0x40] sm:$0xff]  ;;  %v189_v46 = vld [vmem:[%s2869_s2 + $0x30] sm:$0xff] }
  0x2c   : > { %838 = vmatpush.msrb.mxu2 %v367_v56  ;;  %903 = vmatpush.msrb.mxu3 %v368_v57  ;;  %v365_v2 = vmax.f32 %v333_v58, 0.0  ;;  %v357_v11 = vmax.f32 %v325_v8, 0.0  ;;  %v253_v14 = vsub.f32 %v195_v13, %v2015_v39  ;;  %v254_v25 = vsub.f32 %v196_v23, %v2022_v41  ;;  %v190_v47 = vld [vmem:[%s2869_s2 + $0x38] sm:$0xff]  ;;  %v187_v48 = vld [vmem:[%s2869_s2 + $0x20] sm:$0xff]  ;;  %v2168_v53 = vld [vmem:[%s1995_s7 + $0x48] sm:$0xff] }
  0x2d   : > { %v366_v4 = vmax.f32 %v334_v61, 0.0  ;;  %1719 = vmatmul.msk.f32.gmra.mxu0 %vm387_vm0, %v2047_v59  ;;  %v358_v16 = vmax.f32 %v326_v15, 0.0  ;;  %v287_v26 = vand.u32 2147483647, %v255_v21  ;;  %v288_v27 = vand.u32 2147483647, %v256_v22 }
  0x2e   : > { %708 = vmatpush.msrb.mxu0 %v365_v2  ;;  %1735 = vmatmul.msk.f32.gmra.mxu1 %vm387_vm0, %v2047_v59  ;;  %v285_v28 = vand.u32 2147483647, %v253_v14  ;;  %v286_v29 = vand.u32 2147483647, %v254_v25  ;;  %v247_v49 = vsub.f32 %v189_v46, %v2006_v31  ;;  %v248_v50 = vsub.f32 %v190_v47, %v2008_v32  ;;  %v2180_v1 = vld [vmem:[%s1995_s7 + $0x50] sm:$0xff]  ;;  %v2191_v2 = vld [vmem:[%s1995_s7 + $0x58] sm:$0xff] }
  0x2f   : > { %773 = vmatpush.msrb.mxu1 %v366_v4  ;;  %1751 = vmatmul.msk.f32.gmra.mxu2 %vm387_vm0, %v2047_v59  ;;  %v319_v33 = vsub.f32 1.0, %v287_v26  ;;  %v320_v34 = vsub.f32 1.0, %v288_v27  ;;  %v245_v51 = vsub.f32 %v187_v48, %v2015_v39  ;;  %v246_v54 = vsub.f32 %v188_v52, %v2022_v41  ;;  %v2202_v3 = vld [vmem:[%s1995_s7 + $0x60] sm:$0xff]  ;;  %v2213_v4 = vld [vmem:[%s1995_s7 + $0x68] sm:$0xff]  ;;  %v2224_v5 = vld [vmem:[%s1995_s7 + $0x70] sm:$0xff] }
  0x30   : > { %1767 = vmatmul.msk.f32.gmra.mxu3 %vm387_vm0, %v2047_v59  ;;  %839 = vmatpush.msrb.mxu2 %v359_v9  ;;  %v317_v35 = vsub.f32 1.0, %v285_v28  ;;  %v318_v36 = vsub.f32 1.0, %v286_v29  ;;  %v279_v55 = vand.u32 2147483647, %v247_v49  ;;  %v280_v56 = vand.u32 2147483647, %v248_v50 }
  0x31   : > { %904 = vmatpush.msrb.mxu3 %v360_v10  ;;  %709 = vmatpush.msrb.mxu0 %v357_v11  ;;  %v351_v37 = vmax.f32 %v319_v33, 0.0  ;;  %v352_v38 = vmax.f32 %v320_v34, 0.0  ;;  %v277_v57 = vand.u32 2147483647, %v245_v51  ;;  %v278_v58 = vand.u32 2147483647, %v246_v54 }
  0x32   : > { %774 = vmatpush.msrb.mxu1 %v358_v16  ;;  %v349_v40 = vmax.f32 %v317_v35, 0.0  ;;  %v350_v42 = vmax.f32 %v318_v36, 0.0  ;;  %v311_v31 = vsub.f32 1.0, %v279_v55  ;;  %v312_v32 = vsub.f32 1.0, %v280_v56  ;;  %v2235_v6 = vld [vmem:[%s1995_s7 + $0x78] sm:$0xff]  ;;  %v958_v10 = vld [vmem:[%s2870_s3 + $0x10] sm:$0xff] }
  0x33   : > { %840 = vmatpush.msrb.mxu2 %v351_v37  ;;  %905 = vmatpush.msrb.mxu3 %v352_v38  ;;  %v309_v60 = vsub.f32 1.0, %v277_v57  ;;  %v310_v39 = vsub.f32 1.0, %v278_v58  ;;  %v990_v7 = vperm.slane %v1912_v0, 5  ;;  %v991_v8 = vperm.slane %v1912_v0, 7  ;;  %v966_v11 = vld [vmem:[%s2870_s3 + $0x50] sm:$0xff]  ;;  %v959_v16 = vld [vmem:[%s2870_s3 + $0x18] sm:$0xff] }
  0x34   : > { %710 = vmatpush.msrb.mxu0 %v349_v40  ;;  %775 = vmatpush.msrb.mxu1 %v350_v42  ;;  %v343_v41 = vmax.f32 %v311_v31, 0.0  ;;  %v344_v61 = vmax.f32 %v312_v32, 0.0  ;;  %v974_v29 = vld [vmem:[%s2870_s3 + $0x90] sm:$0xff]  ;;  %v975_v34 = vld [vmem:[%s2870_s3 + $0x98] sm:$0xff] }
  0x35   : > { %1720 = vmatmul.msk.f32.gmra.mxu0 %vm387_vm0, %v2060_v12  ;;  %v341_v62 = vmax.f32 %v309_v60, 0.0  ;;  %v342_v63 = vmax.f32 %v310_v39, 0.0  ;;  %v2245_v9 = vperm.slane %v990_v7, 1  ;;  %v2252_v15 = vperm.slane %v991_v8, 1  ;;  %v982_v55 = vld [vmem:[%s2870_s3 + $0xd0] sm:$0xff]  ;;  %v983_v56 = vld [vmem:[%s2870_s3 + $0xd8] sm:$0xff] }
  0x36   : > { %1736 = vmatmul.msk.f32.gmra.mxu1 %vm387_vm0, %v2060_v12  ;;  %841 = vmatpush.msrb.mxu2 %v343_v41 }
  0x37   : > { %1752 = vmatmul.msk.f32.gmra.mxu2 %vm387_vm0, %v2060_v12  ;;  %906 = vmatpush.msrb.mxu3 %v344_v61  ;;  %v1014_v21 = vsub.f32 %v958_v10, %v2245_v9  ;;  %v1022_v22 = vsub.f32 %v966_v11, %v2245_v9  ;;  %v1015_v14 = vsub.f32 %v959_v16, %v2252_v15 }
  0x38   : > { %1768 = vmatmul.msk.f32.gmra.mxu3 %vm387_vm0, %v2060_v12  ;;  %711 = vmatpush.msrb.mxu0 %v341_v62  ;;  %v1023_v23 = vsub.f32 %v967_v19, %v2252_v15  ;;  %v1031_v47 = vsub.f32 %v975_v34, %v2252_v15  ;;  %v1038_v41 = vsub.f32 %v982_v55, %v2245_v9 }
  0x39   : > { %776 = vmatpush.msrb.mxu1 %v342_v63  ;;  %v1046_v25 = vand.u32 2147483647, %v1014_v21  ;;  %v1054_v26 = vand.u32 2147483647, %v1022_v22  ;;  %v1047_v27 = vand.u32 2147483647, %v1015_v14  ;;  %v1039_v7 = vsub.f32 %v983_v56, %v2252_v15 }
  0x3a   : > { %v1055_v28 = vand.u32 2147483647, %v1023_v23  ;;  %v1063_v54 = vand.u32 2147483647, %v1031_v47 }
  0x3b   : > { %v1078_v37 = vsub.f32 1.0, %v1046_v25  ;;  %v1086_v40 = vsub.f32 1.0, %v1054_v26  ;;  %v1079_v42 = vsub.f32 1.0, %v1047_v27  ;;  %v1071_v15 = vand.u32 2147483647, %v1039_v7 }
  0x3c   : > { %v1087_v46 = vsub.f32 1.0, %v1055_v28  ;;  %v1095_v63 = vsub.f32 1.0, %v1063_v54 }
  0x3d   : > { %1721 = vmatmul.msk.f32.gmra.mxu0 %vm387_vm0, %v2071_v17  ;;  %v2295_v48 = vmax.f32 %v1078_v37, 0.0  ;;  %v2299_v49 = vmax.f32 %v1086_v40, 0.0  ;;  %v2301_v51 = vmax.f32 %v1079_v42, 0.0  ;;  %v1103_v27 = vsub.f32 1.0, %v1071_v15 }
  0x3e   : > { %1737 = vmatmul.msk.f32.gmra.mxu1 %vm387_vm0, %v2071_v17  ;;  %v2305_v52 = vmax.f32 %v1087_v46, 0.0  ;;  %v2333_v16 = vmax.f32 %v1095_v63, 0.0 }
  0x3f   : > { %1753 = vmatmul.msk.f32.gmra.mxu2 %vm387_vm0, %v2071_v17 }
  0x40   : > { %1769 = vmatmul.msk.f32.gmra.mxu3 %vm387_vm0, %v2071_v17 }
  0x45   : > { %1722 = vmatmul.msk.f32.gmra.mxu0 %vm387_vm0, %v2082_v18 }
  0x46   : > { %1738 = vmatmul.msk.f32.gmra.mxu1 %vm387_vm0, %v2082_v18 }
  0x47   : > { %1754 = vmatmul.msk.f32.gmra.mxu2 %vm387_vm0, %v2082_v18 }
  0x48   : > { %1770 = vmatmul.msk.f32.gmra.mxu3 %vm387_vm0, %v2082_v18 }
  0x4d   : > { %1723 = vmatmul.msk.f32.gmra.mxu0 %vm387_vm0, %v2108_v24 }
  0x4e   : > { %1739 = vmatmul.msk.f32.gmra.mxu1 %vm387_vm0, %v2108_v24 }
  0x4f   : > { %1755 = vmatmul.msk.f32.gmra.mxu2 %vm387_vm0, %v2108_v24 }
  0x50   : > { %1771 = vmatmul.msk.f32.gmra.mxu3 %vm387_vm0, %v2108_v24 }
  0x55   : > { %1724 = vmatmul.msk.f32.gmra.mxu0 %vm387_vm0, %v2120_v43 }
  0x56   : > { %1740 = vmatmul.msk.f32.gmra.mxu1 %vm387_vm0, %v2120_v43 }
  0x57   : > { %1756 = vmatmul.msk.f32.gmra.mxu2 %vm387_vm0, %v2120_v43 }
  0x58   : > { %1772 = vmatmul.msk.f32.gmra.mxu3 %vm387_vm0, %v2120_v43 }
  0x5d   : > { %1725 = vmatmul.msk.f32.gmra.mxu0 %vm387_vm0, %v2131_v44 }
  0x5e   : > { %1741 = vmatmul.msk.f32.gmra.mxu1 %vm387_vm0, %v2131_v44 }
  0x5f   : > { %1757 = vmatmul.msk.f32.gmra.mxu2 %vm387_vm0, %v2131_v44 }
  0x60   : > { %1773 = vmatmul.msk.f32.gmra.mxu3 %vm387_vm0, %v2131_v44 }
  0x65   : > { %1726 = vmatmul.msk.f32.gmra.mxu0 %vm387_vm0, %v2142_v45 }
  0x66   : > { %1742 = vmatmul.msk.f32.gmra.mxu1 %vm387_vm0, %v2142_v45 }
  0x67   : > { %1758 = vmatmul.msk.f32.gmra.mxu2 %vm387_vm0, %v2142_v45 }
  0x68   : > { %1774 = vmatmul.msk.f32.gmra.mxu3 %vm387_vm0, %v2142_v45 }
  0x6d   : > { %1727 = vmatmul.msk.f32.gmra.mxu0 %vm387_vm0, %v2168_v53 }
  0x6e   : > { %1743 = vmatmul.msk.f32.gmra.mxu1 %vm387_vm0, %v2168_v53 }
  0x6f   : > { %1759 = vmatmul.msk.f32.gmra.mxu2 %vm387_vm0, %v2168_v53 }
  0x70   : > { %1775 = vmatmul.msk.f32.gmra.mxu3 %vm387_vm0, %v2168_v53 }
  0x75   : > { %1728 = vmatmul.msk.f32.gmra.mxu0 %vm387_vm0, %v2180_v1 }
  0x76   : > { %1744 = vmatmul.msk.f32.gmra.mxu1 %vm387_vm0, %v2180_v1 }
  0x77   : > { %1760 = vmatmul.msk.f32.gmra.mxu2 %vm387_vm0, %v2180_v1 }
  0x78   : > { %1776 = vmatmul.msk.f32.gmra.mxu3 %vm387_vm0, %v2180_v1 }
  0x7d   : > { %1729 = vmatmul.msk.f32.gmra.mxu0 %vm387_vm0, %v2191_v2 }
  0x7e   : > { %1745 = vmatmul.msk.f32.gmra.mxu1 %vm387_vm0, %v2191_v2 }
  0x7f   : > { %1761 = vmatmul.msk.f32.gmra.mxu2 %vm387_vm0, %v2191_v2 }
  0x80   : > { %1777 = vmatmul.msk.f32.gmra.mxu3 %vm387_vm0, %v2191_v2 }
  0x85   : > { %1730 = vmatmul.msk.f32.gmra.mxu0 %vm387_vm0, %v2202_v3 }
  0x86   : > { %1746 = vmatmul.msk.f32.gmra.mxu1 %vm387_vm0, %v2202_v3 }
  0x87   : > { %1762 = vmatmul.msk.f32.gmra.mxu2 %vm387_vm0, %v2202_v3 }
  0x88   : > { %1778 = vmatmul.msk.f32.gmra.mxu3 %vm387_vm0, %v2202_v3 }
  0x8d   : > { %1731 = vmatmul.msk.f32.gmra.mxu0 %vm387_vm0, %v2213_v4 }
  0x8e   : > { %1747 = vmatmul.msk.f32.gmra.mxu1 %vm387_vm0, %v2213_v4 }
  0x8f   : > { %1763 = vmatmul.msk.f32.gmra.mxu2 %vm387_vm0, %v2213_v4 }
  0x90   : > { %1779 = vmatmul.msk.f32.gmra.mxu3 %vm387_vm0, %v2213_v4 }
  0x95   : > { %1732 = vmatmul.msk.f32.gmra.mxu0 %vm387_vm0, %v2224_v5 }
  0x96   : > { %1748 = vmatmul.msk.f32.gmra.mxu1 %vm387_vm0, %v2224_v5 }
  0x97   : > { %1764 = vmatmul.msk.f32.gmra.mxu2 %vm387_vm0, %v2224_v5 }
  0x98   : > { %1780 = vmatmul.msk.f32.gmra.mxu3 %vm387_vm0, %v2224_v5 }
  0x9d   : > { %1733 = vmatmul.msk.f32.gmra.mxu0 %vm387_vm0, %v2235_v6 }
  0x9e   : > { %1749 = vmatmul.msk.f32.gmra.mxu1 %vm387_vm0, %v2235_v6 }
  0x9f   : > { %1765 = vmatmul.msk.f32.gmra.mxu2 %vm387_vm0, %v2235_v6 }
  0xa0   : > { %1781 = vmatmul.msk.f32.gmra.mxu3 %vm387_vm0, %v2235_v6 }
  0xa2   : > { %v2263_v20 = vpop.f32.mrf.mxu0 }
  0xa3   : > { %v2265_v13 = vpop.f32.mrf.mxu1 }
  0xa5   : > { %1782 = vmatmul.msk.f32.vlgmr.msrb.gmra.mxu0 %vm387_vm0, %v2004_v30 }
  0xa6   : > { %1798 = vmatmul.msk.f32.vlgmr.msrb.gmra.mxu1 %vm387_vm0, %v2004_v30 }
  0xa7   : > { %1814 = vmatmul.msk.f32.vlgmr.msrb.gmra.mxu2 %vm387_vm0, %v2004_v30 }
  0xa8   : > { %1830 = vmatmul.msk.f32.vlgmr.msrb.gmra.mxu3 %vm387_vm0, %v2004_v30  ;;  %v1030_v30 = vsub.f32 %v974_v29, %v2245_v9  ;;  %v1070_v9 = vand.u32 2147483647, %v1038_v41 }
  0xa9   : > { %v583_v33 = vpop.f32.mrf.mxu2 }
  0xaa   : > { %v648_v35 = vpop.f32.mrf.mxu3  ;;  %v2285_v36 = vpop.f32.mrf.mxu0  ;;  %v1062_v50 = vand.u32 2147483647, %v1030_v30  ;;  %v1142_v31 = vmul.f32 %v2295_v48, %v583_v33  ;;  %v1102_v25 = vsub.f32 1.0, %v1070_v9  ;;  %v2351_v33 = vmax.f32 %v1103_v27, 0.0 }
  0xab   : > { %v2287_v38 = vpop.f32.mrf.mxu1  ;;  %v1143_v61 = vmul.f32 %v2301_v51, %v648_v35 }
  0xac   : > { %v1094_v39 = vsub.f32 1.0, %v1062_v50  ;;  %v2347_v29 = vmax.f32 %v1102_v25, 0.0 }
  0xad   : > { %1783 = vmatmul.msk.f32.gmra.mxu0 %vm387_vm0, %v2047_v59 }
  0xae   : > { %1799 = vmatmul.msk.f32.gmra.mxu1 %vm387_vm0, %v2047_v59  ;;  %v2329_v11 = vmax.f32 %v1094_v39, 0.0 }
  0xaf   : > { %1815 = vmatmul.msk.f32.gmra.mxu2 %vm387_vm0, %v2047_v59 }
  0xb0   : > { %1831 = vmatmul.msk.f32.gmra.mxu3 %vm387_vm0, %v2047_v59 }
  0xb2   : > { %v586_v57 = vpop.f32.mrf.mxu2  ;;  %v2313_v58 = vpop.f32.mrf.mxu0 }
  0xb3   : > { %v1150_v32 = vmul.f32 %v2299_v49, %v586_v57  ;;  %v651_v60 = vpop.f32.mrf.mxu3  ;;  %v2317_v59 = vpop.f32.mrf.mxu1 }
  0xb4   : > { %v1151_v62 = vmul.f32 %v2305_v52, %v651_v60 }
  0xb5   : > { %v1190_v8 = vadd.f32 %v1150_v32, %v1142_v31  ;;  %1784 = vmatmul.msk.f32.gmra.mxu0 %vm387_vm0, %v2060_v12 }
  0xb6   : > { %v1199_v10 = vadd.f32 %v1151_v62, %v1143_v61  ;;  %1800 = vmatmul.msk.f32.gmra.mxu1 %vm387_vm0, %v2060_v12 }
  0xb7   : > { %1816 = vmatmul.msk.f32.gmra.mxu2 %vm387_vm0, %v2060_v12 }
  0xb8   : > { %1832 = vmatmul.msk.f32.gmra.mxu3 %vm387_vm0, %v2060_v12 }
  0xba   : > { %v589_v19 = vpop.f32.mrf.mxu2  ;;  %v2335_v21 = vpop.f32.mrf.mxu0 }
  0xbb   : > { %v1158_v22 = vmul.f32 %v2329_v11, %v589_v19  ;;  %v654_v14 = vpop.f32.mrf.mxu3  ;;  %v2338_v23 = vpop.f32.mrf.mxu1 }
  0xbc   : > { %v1159_v26 = vmul.f32 %v2333_v16, %v654_v14 }
  0xbd   : > { %v1191_v28 = vadd.f32 %v1190_v8, %v1158_v22  ;;  %1785 = vmatmul.msk.f32.gmra.mxu0 %vm387_vm0, %v2071_v17 }
  0xbe   : > { %v1200_v12 = vadd.f32 %v1199_v10, %v1159_v26  ;;  %1801 = vmatmul.msk.f32.gmra.mxu1 %vm387_vm0, %v2071_v17 }
  0xbf   : > { %1817 = vmatmul.msk.f32.gmra.mxu2 %vm387_vm0, %v2071_v17 }
  0xc0   : > { %1833 = vmatmul.msk.f32.gmra.mxu3 %vm387_vm0, %v2071_v17 }
  0xc2   : > { %v592_v34 = vpop.f32.mrf.mxu2  ;;  %v2353_v35 = vpop.f32.mrf.mxu0 }
  0xc3   : > { %v1166_v37 = vmul.f32 %v2347_v29, %v592_v34  ;;  %v657_v40 = vpop.f32.mrf.mxu3  ;;  %v2356_v30 = vpop.f32.mrf.mxu1 }
  0xc4   : > { %v1167_v42 = vmul.f32 %v2351_v33, %v657_v40 }
  0xc5   : > { %v1192_v46 = vadd.f32 %v1191_v28, %v1166_v37  ;;  %1786 = vmatmul.msk.f32.gmra.mxu0 %vm387_vm0, %v2082_v18 }
  0xc6   : > { %v1201_v47 = vadd.f32 %v1200_v12, %v1167_v42  ;;  %1802 = vmatmul.msk.f32.gmra.mxu1 %vm387_vm0, %v2082_v18  ;;  %v989_v12 = vperm.slane %v1912_v0, 3  ;;  %v956_v42 = vld [vmem:[%s2870_s3] sm:$0xff] }
  0xc7   : > { %v1193_v17 = vrot.slane %v1192_v46, 4  ;;  %1818 = vmatmul.msk.f32.gmra.mxu2 %vm387_vm0, %v2082_v18 }
  0xc8   : > { %v1202_v50 = vrot.slane %v1201_v47, 4  ;;  %1834 = vmatmul.msk.f32.gmra.mxu3 %vm387_vm0, %v2082_v18 }
  0xc9   : > { %v1194_v54 = vadd.f32 %v1193_v17, %v1192_v46  ;;  %v964_v46 = vld [vmem:[%s2870_s3 + $0x40] sm:$0xff] }
  0xca   : > { %v1203_v55 = vadd.f32 %v1202_v50, %v1201_v47  ;;  %v595_v56 = vpop.f32.mrf.mxu2  ;;  %v2367_v57 = vpop.f32.mrf.mxu0  ;;  %v957_v50 = vld [vmem:[%s2870_s3 + $0x8] sm:$0xff] }
  0xcb   : > { %v1195_v31 = vrot.slane %v1194_v54, 2  ;;  %v660_v32 = vpop.f32.mrf.mxu3  ;;  %v2369_v60 = vpop.f32.mrf.mxu1  ;;  %v1277_v15 = vmul.f32 %v2295_v48, %v595_v56 }
  0xcc   : > { %v1204_v39 = vrot.slane %v1203_v55, 2  ;;  %v1278_v26 = vmul.f32 %v2301_v51, %v660_v32 }
  0xcd   : > { %v1196_v41 = vadd.f32 %v1195_v31, %v1194_v54  ;;  %1787 = vmatmul.msk.f32.gmra.mxu0 %vm387_vm0, %v2108_v24 }
  0xce   : > { %v1205_v61 = vadd.f32 %v1204_v39, %v1203_v55  ;;  %1803 = vmatmul.msk.f32.gmra.mxu1 %vm387_vm0, %v2108_v24 }
  0xcf   : > { %v1197_v62 = vrot.slane %v1196_v41, 1  ;;  %1819 = vmatmul.msk.f32.gmra.mxu2 %vm387_vm0, %v2108_v24 }
  0xd0   : > { %v1206_v18 = vrot.slane %v1205_v61, 1  ;;  %1835 = vmatmul.msk.f32.gmra.mxu3 %vm387_vm0, %v2108_v24  ;;  %v988_v24 = vperm.slane %v1912_v0, 1  ;;  %v2405_v0 = vperm.slane %v989_v12, 1 }
  0xd1   : > { %v1198_v63 = vadd.f32 %v1197_v62, %v1196_v41 }
  0xd2   : > { %v1207_v7 = vadd.f32 %v1206_v18, %v1205_v61  ;;  %v598_v8 = vpop.f32.mrf.mxu2  ;;  %v2379_v10 = vpop.f32.mrf.mxu0  ;;  %v2400_v40 = vperm.slane %v988_v24, 1  ;;  %v1013_v61 = vsub.f32 %v957_v50, %v2405_v0 }
  0xd3   : > { %v1253_v9 = vrot.slane %v1198_v63, 6  ;;  %v1285_v19 = vmul.f32 %v2299_v49, %v598_v8  ;;  %v663_v22 = vpop.f32.mrf.mxu3  ;;  %v2383_v14 = vpop.f32.mrf.mxu1 }
  0xd4   : > { %v1254_v25 = vrot.slane %v1207_v7, 5  ;;  %v1286_v27 = vmul.f32 %v2305_v52, %v663_v22  ;;  %v1012_v32 = vsub.f32 %v956_v42, %v2400_v40  ;;  %v1020_v39 = vsub.f32 %v964_v46, %v2400_v40 }
  0xd5   : > { %v1325_v28 = vadd.f32 %v1285_v19, %v1277_v15  ;;  %1788 = vmatmul.msk.f32.gmra.mxu0 %vm387_vm0, %v2120_v43  ;;  %v1045_v8 = vand.u32 2147483647, %v1013_v61  ;;  %v972_v15 = vld [vmem:[%s2870_s3 + $0x80] sm:$0xff] }
  0xd6   : > { %v2392_v34 = vsel %vm1261_vm1, %v1253_v9, %v1254_v25  ;;  %v1334_v37 = vadd.f32 %v1286_v27, %v1278_v26  ;;  %1804 = vmatmul.msk.f32.gmra.mxu1 %vm387_vm0, %v2120_v43  ;;  %v1044_v63 = vand.u32 2147483647, %v1012_v32  ;;  %v1052_v7 = vand.u32 2147483647, %v1020_v39  ;;  %v973_v25 = vld [vmem:[%s2870_s3 + $0x88] sm:$0xff] }
  0xd7   : > { %1820 = vmatmul.msk.f32.gmra.mxu2 %vm387_vm0, %v2120_v43  ;;  %v1077_v46 = vsub.f32 1.0, %v1045_v8  ;;  %v1029_v50 = vsub.f32 %v973_v25, %v2405_v0 }
  0xd8   : > { %1836 = vmatmul.msk.f32.gmra.mxu3 %vm387_vm0, %v2120_v43  ;;  %v965_v43 = vld [vmem:[%s2870_s3 + $0x48] sm:$0xff]  ;;  %v1084_v12 = vsub.f32 1.0, %v1052_v7 }
  0xd9   : > { %v1021_v62 = vsub.f32 %v965_v43, %v2405_v0  ;;  %v2456_v61 = vmax.f32 %v1077_v46, 0.0 }
  0xda   : > { %v601_v47 = vpop.f32.mrf.mxu2  ;;  %v2410_v17 = vpop.f32.mrf.mxu0  ;;  %v2454_v32 = vmax.f32 %v1084_v12, 0.0 }
  0xdb   : > { %v1293_v54 = vmul.f32 %v2329_v11, %v601_v47  ;;  %v666_v55 = vpop.f32.mrf.mxu3  ;;  %v2419_v56 = vpop.f32.mrf.mxu1  ;;  %v1053_v9 = vand.u32 2147483647, %v1021_v62 }
  0xdc   : > { %v1294_v31 = vmul.f32 %v2333_v16, %v666_v55 }
  0xdd   : > { %v1326_v41 = vadd.f32 %v1325_v28, %v1293_v54  ;;  %1789 = vmatmul.msk.f32.gmra.mxu0 %vm387_vm0, %v2131_v44  ;;  %v1076_v28 = vsub.f32 1.0, %v1044_v63  ;;  %v1085_v47 = vsub.f32 1.0, %v1053_v9  ;;  %v980_v63 = vld [vmem:[%s2870_s3 + $0xc0] sm:$0xff] }
  0xde   : > { %v1335_v18 = vadd.f32 %v1334_v37, %v1294_v31  ;;  %1805 = vmatmul.msk.f32.gmra.mxu1 %vm387_vm0, %v2131_v44  ;;  %v1028_v37 = vsub.f32 %v972_v15, %v2400_v40 }
  0xdf   : > { %1821 = vmatmul.msk.f32.gmra.mxu2 %vm387_vm0, %v2131_v44  ;;  %v2452_v31 = vmax.f32 %v1076_v28, 0.0  ;;  %v2458_v62 = vmax.f32 %v1085_v47, 0.0 }
  0xe0   : > { %1837 = vmatmul.msk.f32.gmra.mxu3 %vm387_vm0, %v2131_v44  ;;  %v1060_v39 = vand.u32 2147483647, %v1028_v37 }
  0xe2   : > { %v604_v19 = vpop.f32.mrf.mxu2  ;;  %v477_v22 = vpop.f32.mrf.mxu0  ;;  %v1092_v37 = vsub.f32 1.0, %v1060_v39 }
  0xe3   : > { %v1301_v26 = vmul.f32 %v2347_v29, %v604_v19  ;;  %v669_v27 = vpop.f32.mrf.mxu3  ;;  %v542_v24 = vpop.f32.mrf.mxu1  ;;  %v1404_v19 = vmul.f32 %v2452_v31, %v477_v22 }
  0xe4   : > { %v1302_v44 = vmul.f32 %v2351_v33, %v669_v27  ;;  %v1405_v28 = vmul.f32 %v2456_v61, %v542_v24 }
  0xe5   : > { %v1327_v42 = vadd.f32 %v1326_v41, %v1301_v26  ;;  %1790 = vmatmul.msk.f32.gmra.mxu0 %vm387_vm0, %v2142_v45 }
  0xe6   : > { %v1336_v43 = vadd.f32 %v1335_v18, %v1302_v44  ;;  %1806 = vmatmul.msk.f32.gmra.mxu1 %vm387_vm0, %v2142_v45  ;;  %v1061_v18 = vand.u32 2147483647, %v1029_v50 }
  0xe7   : > { %v1328_v54 = vrot.slane %v1327_v42, 4  ;;  %1822 = vmatmul.msk.f32.gmra.mxu2 %vm387_vm0, %v2142_v45 }
  0xe8   : > { %v1337_v55 = vrot.slane %v1336_v43, 4  ;;  %1838 = vmatmul.msk.f32.gmra.mxu3 %vm387_vm0, %v2142_v45  ;;  %v981_v45 = vld [vmem:[%s2870_s3 + $0xc8] sm:$0xff]  ;;  %v1093_v50 = vsub.f32 1.0, %v1061_v18 }
  0xe9   : > { %v1329_v41 = vadd.f32 %v1328_v54, %v1327_v42  ;;  %v1036_v42 = vsub.f32 %v980_v63, %v2400_v40  ;;  %v1037_v22 = vsub.f32 %v981_v45, %v2405_v0  ;;  %v2480_v40 = vmax.f32 %v1092_v37, 0.0 }
  0xea   : > { %v1338_v7 = vadd.f32 %v1337_v55, %v1336_v43  ;;  %v607_v8 = vpop.f32.mrf.mxu2  ;;  %v480_v9 = vpop.f32.mrf.mxu0  ;;  %v2482_v18 = vmax.f32 %v1093_v50, 0.0 }
  0xeb   : > { %v1330_v15 = vrot.slane %v1329_v41, 2  ;;  %v672_v25 = vpop.f32.mrf.mxu3  ;;  %v1412_v26 = vmul.f32 %v2454_v32, %v480_v9  ;;  %v545_v27 = vpop.f32.mrf.mxu1  ;;  %v1068_v39 = vand.u32 2147483647, %v1036_v42  ;;  %v1069_v0 = vand.u32 2147483647, %v1037_v22 }
  0xec   : > { %v1339_v44 = vrot.slane %v1338_v7, 2  ;;  %v1413_v12 = vmul.f32 %v2458_v62, %v545_v27 }
  0xed   : > { %v1331_v46 = vadd.f32 %v1330_v15, %v1329_v41  ;;  %v1436_v47 = vadd.f32 %v1412_v26, %v1404_v19  ;;  %1791 = vmatmul.msk.f32.gmra.mxu0 %vm387_vm0, %v2168_v53  ;;  %v1406_v15 = vmul.f32 %v2295_v48, %v607_v8  ;;  %v1100_v42 = vsub.f32 1.0, %v1068_v39 }
  0xee   : > { %v1340_v43 = vadd.f32 %v1339_v44, %v1338_v7  ;;  %v1445_v54 = vadd.f32 %v1413_v12, %v1405_v28  ;;  %1807 = vmatmul.msk.f32.gmra.mxu1 %vm387_vm0, %v2168_v53  ;;  %v1407_v28 = vmul.f32 %v2301_v51, %v672_v25  ;;  %v1101_v8 = vsub.f32 1.0, %v1069_v0 }
  0xef   : > { %v1332_v55 = vrot.slane %v1331_v46, 1  ;;  %1823 = vmatmul.msk.f32.gmra.mxu2 %vm387_vm0, %v2168_v53  ;;  %v2501_v25 = vmax.f32 %v1100_v42, 0.0 }
  0xf0   : > { %v1341_v24 = vrot.slane %v1340_v43, 1  ;;  %1839 = vmatmul.msk.f32.gmra.mxu3 %vm387_vm0, %v2168_v53 }
  0xf1   : > { %v1333_v41 = vadd.f32 %v1332_v55, %v1331_v46 }
  0xf2   : > { %v1342_v63 = vadd.f32 %v1341_v24, %v1340_v43  ;;  %v610_v7 = vpop.f32.mrf.mxu2  ;;  %v483_v9 = vpop.f32.mrf.mxu0 }
  0xf3   : > { %v1388_v45 = vrot.slane %v1333_v41, 6  ;;  %v1414_v19 = vmul.f32 %v2299_v49, %v610_v7  ;;  %v675_v26 = vpop.f32.mrf.mxu3  ;;  %v1420_v27 = vmul.f32 %v2480_v40, %v483_v9  ;;  %v548_v44 = vpop.f32.mrf.mxu1 }
  0xf4   : > { %v1389_v53 = vrot.slane %v1342_v63, 5  ;;  %v1415_v12 = vmul.f32 %v2305_v52, %v675_v26  ;;  %v1421_v37 = vmul.f32 %v2482_v18, %v548_v44 }
  0xf5   : > { %v1454_v46 = vadd.f32 %v1414_v19, %v1406_v15  ;;  %v1437_v50 = vadd.f32 %v1436_v47, %v1420_v27  ;;  %1792 = vmatmul.msk.f32.gmra.mxu0 %vm387_vm0, %v2180_v1  ;;  %v2503_v47 = vmax.f32 %v1101_v8, 0.0 }
  0xf6   : > { %v2493_v22 = vsel %vm1261_vm1, %v1388_v45, %v1389_v53  ;;  %v1463_v43 = vadd.f32 %v1415_v12, %v1407_v28  ;;  %v1446_v55 = vadd.f32 %v1445_v54, %v1421_v37  ;;  %1808 = vmatmul.msk.f32.gmra.mxu1 %vm387_vm0, %v2180_v1 }
  0xf7   : > { %2872 = vst [vmem:[#allocation2_spill] sm:$0xff] %v2493_v22  ;;  %1824 = vmatmul.msk.f32.gmra.mxu2 %vm387_vm0, %v2180_v1 }
  0xf8   : > { %1840 = vmatmul.msk.f32.gmra.mxu3 %vm387_vm0, %v2180_v1 }
  0xfa   : > { %v613_v24 = vpop.f32.mrf.mxu2  ;;  %v486_v39 = vpop.f32.mrf.mxu0 }
  0xfb   : > { %v1422_v41 = vmul.f32 %v2329_v11, %v613_v24  ;;  %v678_v0 = vpop.f32.mrf.mxu3  ;;  %v1428_v54 = vmul.f32 %v2501_v25, %v486_v39  ;;  %v551_v63 = vpop.f32.mrf.mxu1 }
  0xfc   : > { %v1423_v7 = vmul.f32 %v2333_v16, %v678_v0  ;;  %v1429_v9 = vmul.f32 %v2503_v47, %v551_v63 }
  0xfd   : > { %v1455_v45 = vadd.f32 %v1454_v46, %v1422_v41  ;;  %v1438_v15 = vadd.f32 %v1437_v50, %v1428_v54  ;;  %1793 = vmatmul.msk.f32.gmra.mxu0 %vm387_vm0, %v2191_v2 }
  0xfe   : > { %v1464_v1 = vadd.f32 %v1463_v43, %v1423_v7  ;;  %v1447_v19 = vadd.f32 %v1446_v55, %v1429_v9  ;;  %1809 = vmatmul.msk.f32.gmra.mxu1 %vm387_vm0, %v2191_v2 }
  0xff   : > { %v1439_v26 = vrot.slane %v1438_v15, 4  ;;  %1825 = vmatmul.msk.f32.gmra.mxu2 %vm387_vm0, %v2191_v2 }
 0x100   : > { %v1448_v27 = vrot.slane %v1447_v19, 4  ;;  %1841 = vmatmul.msk.f32.gmra.mxu3 %vm387_vm0, %v2191_v2 }
 0x101   : > { %v1440_v44 = vadd.f32 %v1439_v26, %v1438_v15 }
 0x102   : > { %v1449_v53 = vadd.f32 %v1448_v27, %v1447_v19  ;;  %v616_v28 = vpop.f32.mrf.mxu2  ;;  %v489_v12 = vpop.f32.mrf.mxu0 }
 0x103   : > { %v1441_v37 = vrot.slane %v1440_v44, 2  ;;  %v1430_v42 = vmul.f32 %v2347_v29, %v616_v28  ;;  %v681_v46 = vpop.f32.mrf.mxu3  ;;  %v554_v50 = vpop.f32.mrf.mxu1 }
 0x104   : > { %v1450_v8 = vrot.slane %v1449_v53, 2  ;;  %v1431_v43 = vmul.f32 %v2351_v33, %v681_v46  ;;  %v1534_v27 = vmul.f32 %v2456_v61, %v554_v50 }
 0x105   : > { %v1442_v55 = vadd.f32 %v1441_v37, %v1440_v44  ;;  %v1456_v24 = vadd.f32 %v1455_v45, %v1430_v42  ;;  %1794 = vmatmul.msk.f32.gmra.mxu0 %vm387_vm0, %v2202_v3 }
 0x106   : > { %v1451_v39 = vadd.f32 %v1450_v8, %v1449_v53  ;;  %v1465_v41 = vadd.f32 %v1464_v1, %v1431_v43  ;;  %1810 = vmatmul.msk.f32.gmra.mxu1 %vm387_vm0, %v2202_v3  ;;  %v1533_v1 = vmul.f32 %v2452_v31, %v489_v12 }
 0x107   : > { %v1457_v2 = vrot.slane %v1456_v24, 4  ;;  %1826 = vmatmul.msk.f32.gmra.mxu2 %vm387_vm0, %v2202_v3  ;;  %v1443_v0 = vrot.slane %v1442_v55, 1 }
 0x108   : > { %v1452_v54 = vrot.slane %v1451_v39, 1  ;;  %v1466_v63 = vrot.slane %v1465_v41, 4  ;;  %1842 = vmatmul.msk.f32.gmra.mxu3 %vm387_vm0, %v2202_v3 }
 0x109   : > { %v1458_v7 = vadd.f32 %v1457_v2, %v1456_v24  ;;  %v1444_v37 = vadd.f32 %v1443_v0, %v1442_v55 }
 0x10a   : > { %v1453_v9 = vadd.f32 %v1452_v54, %v1451_v39  ;;  %v1467_v45 = vadd.f32 %v1466_v63, %v1465_v41  ;;  %v619_v15 = vpop.f32.mrf.mxu2  ;;  %v492_v19 = vpop.f32.mrf.mxu0 }
 0x10b   : > { %v1459_v26 = vrot.slane %v1458_v7, 2  ;;  %v684_v44 = vpop.f32.mrf.mxu3  ;;  %v1541_v53 = vmul.f32 %v2454_v32, %v492_v19  ;;  %v557_v28 = vpop.f32.mrf.mxu1 }
 0x10c   : > { %v1516_v42 = vrot.slane %v1453_v9, 7  ;;  %v1468_v46 = vrot.slane %v1467_v45, 2  ;;  %v1542_v8 = vmul.f32 %v2458_v62, %v557_v28 }
 0x10d   : > { %v1460_v3 = vadd.f32 %v1459_v26, %v1458_v7  ;;  %v1565_v43 = vadd.f32 %v1541_v53, %v1533_v1  ;;  %1795 = vmatmul.msk.f32.gmra.mxu0 %vm387_vm0, %v2213_v4  ;;  %v1535_v7 = vmul.f32 %v2295_v48, %v619_v15 }
 0x10e   : > { %v1523_v24 = vsel %vm1259_vm2, %v1444_v37, %v1516_v42  ;;  %v1469_v12 = vadd.f32 %v1468_v46, %v1467_v45  ;;  %v1574_v39 = vadd.f32 %v1542_v8, %v1534_v27  ;;  %1811 = vmatmul.msk.f32.gmra.mxu1 %vm387_vm0, %v2213_v4  ;;  %v1536_v27 = vmul.f32 %v2301_v51, %v684_v44  ;;  %v1861_v42 = vld [vmem:[%s1909_s20 + $0x8] sm:$0xff] }
 0x10f   : > { %v1461_v50 = vrot.slane %v1460_v3, 1  ;;  %1827 = vmatmul.msk.f32.gmra.mxu2 %vm387_vm0, %v2213_v4  ;;  %v992_v46 = vperm.slane %v1861_v42, 1  ;;  %v994_v44 = vperm.slane %v1861_v42, 5  ;;  %v1140_v8 = vmul.f32 %v2452_v31, %v2263_v20 }
 0x110   : > { %v1470_v55 = vrot.slane %v1469_v12, 1  ;;  %1843 = vmatmul.msk.f32.gmra.mxu3 %vm387_vm0, %v2213_v4  ;;  %v995_v20 = vperm.slane %v1861_v42, 7 }
 0x111   : > { %v1462_v41 = vadd.f32 %v1461_v50, %v1460_v3  ;;  %v1148_v3 = vmul.f32 %v2454_v32, %v2285_v36  ;;  %v1149_v36 = vmul.f32 %v2458_v62, %v2287_v38  ;;  %v962_v38 = vld [vmem:[%s2870_s3 + $0x30] sm:$0xff] }
 0x112   : > { %v1471_v2 = vadd.f32 %v1470_v55, %v1469_v12  ;;  %v622_v0 = vpop.f32.mrf.mxu2  ;;  %v495_v54 = vpop.f32.mrf.mxu0 }
 0x113   : > { %v1517_v63 = vrot.slane %v1462_v41, 6  ;;  %v1543_v9 = vmul.f32 %v2299_v49, %v622_v0  ;;  %v687_v45 = vpop.f32.mrf.mxu3  ;;  %v1549_v19 = vmul.f32 %v2480_v40, %v495_v54  ;;  %v560_v26 = vpop.f32.mrf.mxu1 }
 0x114   : > { %v1518_v1 = vrot.slane %v1471_v2, 5  ;;  %v1544_v53 = vmul.f32 %v2305_v52, %v687_v45  ;;  %v1550_v4 = vmul.f32 %v2482_v18, %v560_v26  ;;  %v993_v52 = vperm.slane %v1861_v42, 3 }
 0x115   : > { %v1583_v28 = vadd.f32 %v1543_v9, %v1535_v7  ;;  %v1566_v37 = vadd.f32 %v1565_v43, %v1549_v19  ;;  %1796 = vmatmul.msk.f32.gmra.mxu0 %vm387_vm0, %v2224_v5  ;;  %v1141_v7 = vmul.f32 %v2456_v61, %v2265_v13  ;;  %v1156_v9 = vmul.f32 %v2480_v40, %v2313_v58 }
 0x116   : > { %v1524_v48 = vsel %vm1261_vm1, %v1517_v63, %v1518_v1  ;;  %v1592_v49 = vadd.f32 %v1544_v53, %v1536_v27  ;;  %v1575_v15 = vadd.f32 %v1574_v39, %v1550_v4  ;;  %1812 = vmatmul.msk.f32.gmra.mxu1 %vm387_vm0, %v2224_v5  ;;  %v2563_v39 = vperm.slane %v992_v46, 1 }
 0x117   : > { %v2553_v51 = vsel %vm1263_vm3, %v1523_v24, %v1524_v48  ;;  %1828 = vmatmul.msk.f32.gmra.mxu2 %vm387_vm0, %v2224_v5  ;;  %v2570_v2 = vperm.slane %v993_v52, 1  ;;  %v2579_v63 = vperm.slane %v994_v44, 1  ;;  %v1172_v58 = vadd.f32 %v1148_v3, %v1140_v8  ;;  %v963_v48 = vld [vmem:[%s2870_s3 + $0x38] sm:$0xff] }
 0x118   : > { %2873 = vst [vmem:[#allocation3_spill] sm:$0xff] %v2553_v51  ;;  %1844 = vmatmul.msk.f32.gmra.mxu3 %vm387_vm0, %v2224_v5  ;;  %v960_v5 = vld [vmem:[%s2870_s3 + $0x20] sm:$0xff]  ;;  %v2598_v4 = vperm.slane %v995_v20, 1  ;;  %v1165_v46 = vmul.f32 %v2503_v47, %v2338_v23 }
 0x119   : > { %v1016_v13 = vsub.f32 %v960_v5, %v2563_v39  ;;  %v2628_v5 = vmul.f32 %v2501_v25, %v2335_v21 }
 0x11a   : > { %v625_v43 = vpop.f32.mrf.mxu2  ;;  %v498_v12 = vpop.f32.mrf.mxu0 }
 0x11b   : > { %v1551_v24 = vmul.f32 %v2329_v11, %v625_v43  ;;  %v690_v50 = vpop.f32.mrf.mxu3  ;;  %v1557_v55 = vmul.f32 %v2501_v25, %v498_v12  ;;  %v563_v41 = vpop.f32.mrf.mxu1  ;;  %v961_v11 = vld [vmem:[%s2870_s3 + $0x28] sm:$0xff]  ;;  %v2612_v3 = vand.u32 2147483647, %v1016_v13 }
 0x11c   : > { %v1552_v0 = vmul.f32 %v2333_v16, %v690_v50  ;;  %v1558_v54 = vmul.f32 %v2503_v47, %v563_v41  ;;  %v1157_v16 = vmul.f32 %v2482_v18, %v2317_v59  ;;  %v1017_v53 = vsub.f32 %v961_v11, %v2570_v2  ;;  %v969_v43 = vld [vmem:[%s2870_s3 + $0x68] sm:$0xff] }
 0x11d   : > { %v1584_v45 = vadd.f32 %v1583_v28, %v1551_v24  ;;  %v1567_v19 = vadd.f32 %v1566_v37, %v1557_v55  ;;  %1797 = vmatmul.msk.f32.gmra.mxu0 %vm387_vm0, %v2235_v6  ;;  %v1181_v28 = vadd.f32 %v1149_v36, %v1141_v7  ;;  %v1018_v59 = vsub.f32 %v962_v38, %v2579_v63 }
 0x11e   : > { %v1593_v26 = vadd.f32 %v1592_v49, %v1552_v0  ;;  %v1576_v1 = vadd.f32 %v1575_v15, %v1558_v54  ;;  %1813 = vmatmul.msk.f32.gmra.mxu1 %vm387_vm0, %v2235_v6  ;;  %v2606_v49 = vadd.f32 %v1172_v58, %v1156_v9  ;;  %v2623_v23 = vand.u32 2147483647, %v1017_v53  ;;  %v977_v54 = vld [vmem:[%s2870_s3 + $0xa8] sm:$0xff]  ;;  %v970_v58 = vld [vmem:[%s2870_s3 + $0x70] sm:$0xff]  ;;  %v984_v53 = vld [vmem:[%s2870_s3 + $0xe0] sm:$0xff] }
 0x11f   : > { %v1568_v27 = vrot.slane %v1567_v19, 4  ;;  %1829 = vmatmul.msk.f32.gmra.mxu2 %vm387_vm0, %v2235_v6  ;;  %v1182_v42 = vadd.f32 %v1181_v28, %v1157_v16  ;;  %v1019_v41 = vsub.f32 %v963_v48, %v2598_v4  ;;  %v2631_v0 = vand.u32 2147483647, %v1018_v59  ;;  %v971_v48 = vld [vmem:[%s2870_s3 + $0x78] sm:$0xff] }
 0x120   : > { %v1577_v37 = vrot.slane %v1576_v1, 4  ;;  %1845 = vmatmul.msk.f32.gmra.mxu3 %vm387_vm0, %v2235_v6  ;;  %v968_v6 = vld [vmem:[%s2870_s3 + $0x60] sm:$0xff]  ;;  %v1025_v21 = vsub.f32 %v969_v43, %v2570_v2  ;;  %v1080_v16 = vsub.f32 1.0, %v2612_v3  ;;  %v1081_v59 = vsub.f32 1.0, %v2623_v23 }
 0x121   : > { %v1569_v15 = vadd.f32 %v1568_v27, %v1567_v19  ;;  %v1024_v9 = vsub.f32 %v968_v6, %v2563_v39  ;;  %v2641_v19 = vadd.f32 %v1182_v42, %v1165_v46  ;;  %v2644_v13 = vand.u32 2147483647, %v1019_v41 }
 0x122   : > { %v1578_v52 = vadd.f32 %v1577_v37, %v1576_v1  ;;  %v628_v44 = vpop.f32.mrf.mxu2  ;;  %v2610_v8 = vpop.f32.mrf.mxu0  ;;  %v1040_v23 = vsub.f32 %v984_v53, %v2563_v39  ;;  %v2679_v51 = vmax.f32 %v1080_v16, 0.0  ;;  %v987_v16 = vld [vmem:[%s2870_s3 + $0xf8] sm:$0xff] }
 0x123   : > { %v1570_v12 = vrot.slane %v1569_v15, 2  ;;  %v1559_v24 = vmul.f32 %v2347_v29, %v628_v44  ;;  %v693_v50 = vpop.f32.mrf.mxu3  ;;  %v2621_v55 = vpop.f32.mrf.mxu1  ;;  %v976_v29 = vld [vmem:[%s2870_s3 + $0xa0] sm:$0xff]  ;;  %v1056_v46 = vand.u32 2147483647, %v1024_v9  ;;  %v985_v44 = vld [vmem:[%s2870_s3 + $0xe8] sm:$0xff]  ;;  %v979_v9 = vld [vmem:[%s2870_s3 + $0xb8] sm:$0xff] }
 0x124   : > { %v1579_v20 = vrot.slane %v1578_v52, 2  ;;  %v1560_v36 = vmul.f32 %v2351_v33, %v693_v50  ;;  %v1032_v27 = vsub.f32 %v976_v29, %v2563_v39  ;;  %v978_v50 = vld [vmem:[%s2870_s3 + $0xb0] sm:$0xff]  ;;  %v1027_v29 = vsub.f32 %v971_v48, %v2598_v4 }
 0x125   : > { %v1571_v11 = vadd.f32 %v1570_v12, %v1569_v15  ;;  %v1585_v7 = vadd.f32 %v1584_v45, %v1559_v24  ;;  %v1033_v45 = vsub.f32 %v977_v54, %v2570_v2  ;;  %v1026_v24 = vsub.f32 %v970_v58, %v2579_v63 }
 0x126   : > { %v1580_v38 = vadd.f32 %v1579_v20, %v1578_v52  ;;  %v1594_v33 = vadd.f32 %v1593_v26, %v1560_v36  ;;  %v1057_v52 = vand.u32 2147483647, %v1025_v21  ;;  %v1064_v54 = vand.u32 2147483647, %v1032_v27 }
 0x127   : > { %v1586_v1 = vrot.slane %v1585_v7, 4  ;;  %v1572_v28 = vrot.slane %v1571_v11, 1  ;;  %v1034_v53 = vsub.f32 %v978_v50, %v2579_v63  ;;  %v1035_v27 = vsub.f32 %v979_v9, %v2598_v4 }
 0x128   : > { %v1581_v37 = vrot.slane %v1580_v38, 1  ;;  %v1595_v26 = vrot.slane %v1594_v33, 4  ;;  %v1089_v39 = vsub.f32 1.0, %v1057_v52  ;;  %v1058_v22 = vand.u32 2147483647, %v1026_v24 }
 0x129   : > { %v1587_v15 = vadd.f32 %v1586_v1, %v1585_v7  ;;  %v1065_v7 = vand.u32 2147483647, %v1033_v45  ;;  %v1573_v21 = vadd.f32 %v1572_v28, %v1571_v11  ;;  %v1041_v1 = vsub.f32 %v985_v44, %v2570_v2 }
 0x12a   : > { %v1582_v3 = vadd.f32 %v1581_v37, %v1580_v38  ;;  %v1596_v6 = vadd.f32 %v1595_v26, %v1594_v33  ;;  %v2662_v43 = vpop.f32.mrf.mxu2  ;;  %v716_v12 = vpop.f32.mrf.mxu0  ;;  %v1088_v37 = vsub.f32 1.0, %v1056_v46  ;;  %v1072_v45 = vand.u32 2147483647, %v1040_v23  ;;  %v986_v46 = vld [vmem:[%s2870_s3 + $0xf0] sm:$0xff] }
 0x12b   : > { %v1588_v41 = vrot.slane %v1587_v15, 2  ;;  %v2669_v20 = vpop.f32.mrf.mxu3  ;;  %v781_v36 = vpop.f32.mrf.mxu1  ;;  %v1096_v11 = vsub.f32 1.0, %v1064_v54  ;;  %v1097_v2 = vsub.f32 1.0, %v1065_v7  ;;  %v1066_v50 = vand.u32 2147483647, %v1034_v53 }
 0x12c   : > { %v1645_v38 = vrot.slane %v1582_v3, 7  ;;  %v1597_v33 = vrot.slane %v1596_v6, 2  ;;  %v1083_v3 = vsub.f32 1.0, %v2644_v13  ;;  %v2685_v44 = vmax.f32 %v1088_v37, 0.0 }
 0x12d   : > { %v1589_v58 = vadd.f32 %v1588_v41, %v1587_v15  ;;  %v1073_v15 = vand.u32 2147483647, %v1041_v1  ;;  %v2690_v23 = vmax.f32 %v1089_v39, 0.0  ;;  %v1067_v54 = vand.u32 2147483647, %v1035_v27 }
 0x12e   : > { %v1652_v26 = vsel %vm1259_vm2, %v1573_v21, %v1645_v38  ;;  %v1598_v42 = vadd.f32 %v1597_v33, %v1596_v6  ;;  %v1059_v6 = vand.u32 2147483647, %v1027_v29  ;;  %v1104_v7 = vsub.f32 1.0, %v1072_v45 }
 0x12f   : > { %v1590_v48 = vrot.slane %v1589_v58, 1  ;;  %v2692_v21 = vmax.f32 %v1081_v59, 0.0  ;;  %v2694_v33 = vmax.f32 %v1096_v11, 0.0  ;;  %v1042_v29 = vsub.f32 %v986_v46, %v2579_v63 }
 0x130   : > { %v1599_v28 = vrot.slane %v1598_v42, 1  ;;  %v2697_v37 = vmax.f32 %v1097_v2, 0.0  ;;  %v1105_v53 = vsub.f32 1.0, %v1073_v15  ;;  %v1152_v39 = vmul.f32 %v2685_v44, %v716_v12 }
 0x131   : > { %v1591_v52 = vadd.f32 %v1590_v48, %v1589_v58  ;;  %v1090_v48 = vsub.f32 1.0, %v1058_v22  ;;  %v1091_v27 = vsub.f32 1.0, %v1059_v6  ;;  %v1098_v45 = vsub.f32 1.0, %v1066_v50 }
 0x132   : > { %v1600_v24 = vadd.f32 %v1599_v28, %v1598_v42  ;;  %v846_v41 = vpop.f32.mrf.mxu2  ;;  %v719_v13 = vpop.f32.mrf.mxu0  ;;  %v1043_v42 = vsub.f32 %v987_v16, %v2598_v4  ;;  %v1153_v28 = vmul.f32 %v2690_v23, %v781_v36  ;;  %v1099_v11 = vsub.f32 1.0, %v1067_v54 }
 0x133   : > { %v1646_v9 = vrot.slane %v1591_v52, 6  ;;  %v911_v38 = vpop.f32.mrf.mxu3  ;;  %v784_v1 = vpop.f32.mrf.mxu1  ;;  %v2703_v52 = vmax.f32 %v1104_v7, 0.0  ;;  %v1144_v2 = vmul.f32 %v2679_v51, %v2610_v8  ;;  %v1160_v4 = vmul.f32 %v2694_v33, %v719_v13 }
 0x134   : > { %v1647_v58 = vrot.slane %v1600_v24, 5  ;;  %v1074_v15 = vand.u32 2147483647, %v1042_v29  ;;  %v1145_v22 = vmul.f32 %v2692_v21, %v2621_v55  ;;  %v1161_v12 = vmul.f32 %v2697_v37, %v784_v1 }
 0x135   : > { %v2714_v46 = vmax.f32 %v1105_v53, 0.0  ;;  %v1075_v36 = vand.u32 2147483647, %v1043_v42  ;;  %v1174_v6 = vadd.f32 %v2606_v49, %v2628_v5  ;;  %v1208_v50 = vadd.f32 %v1152_v39, %v1144_v2 }
 0x136   : > { %v1653_v59 = vsel %vm1261_vm1, %v1646_v9, %v1647_v58  ;;  %v2719_v16 = vmax.f32 %v1090_v48, 0.0  ;;  %v2874_v8 = vsub.f32 1.0, %v2631_v0  ;;  %v2725_v13 = vmax.f32 %v1083_v3, 0.0 }
 0x137   : > { %v2706_v63 = vsel %vm1263_vm3, %v1652_v26, %v1653_v59  ;;  %v1184_v26 = vrot.slane %v2641_v19, 4  ;;  %v1217_v55 = vadd.f32 %v1153_v28, %v1145_v22  ;;  %v2727_v54 = vmax.f32 %v1091_v27, 0.0 }
 0x138   : > { %v2723_v24 = vmax.f32 %v2874_v8, 0.0  ;;  %v1209_v1 = vadd.f32 %v1208_v50, %v1160_v4  ;;  %v2729_v29 = vmax.f32 %v1098_v45, 0.0  ;;  %v1106_v53 = vsub.f32 1.0, %v1074_v15 }
 0x139   : > { %v1218_v42 = vadd.f32 %v1217_v55, %v1161_v12  ;;  %v2732_v39 = vmax.f32 %v1099_v11, 0.0  ;;  %v1107_v3 = vsub.f32 1.0, %v1075_v36  ;;  %v1185_v48 = vadd.f32 %v1184_v26, %v2641_v19 }
 0x13a   : > { %v849_v7 = vpop.f32.mrf.mxu2  ;;  %v722_v9 = vpop.f32.mrf.mxu0  ;;  %v1154_v27 = vmul.f32 %v2719_v16, %v846_v41  ;;  %v1175_v28 = vrot.slane %v1174_v6, 4  ;;  %v1155_v45 = vmul.f32 %v2727_v54, %v911_v38  ;;  %v1146_v4 = vmul.f32 %v2723_v24, %v2662_v43 }
 0x13b   : > { %v914_v49 = vpop.f32.mrf.mxu3  ;;  %v1168_v5 = vmul.f32 %v2703_v52, %v722_v9  ;;  %v787_v58 = vpop.f32.mrf.mxu1  ;;  %v1162_v15 = vmul.f32 %v2729_v29, %v849_v7  ;;  %v2741_v11 = vmax.f32 %v1106_v53, 0.0  ;;  %v1147_v12 = vmul.f32 %v2725_v13, %v2669_v20 }
 0x13c   : > { %v1169_v0 = vmul.f32 %v2714_v46, %v787_v58  ;;  %v1163_v19 = vmul.f32 %v2732_v39, %v914_v49  ;;  %v2746_v41 = vmax.f32 %v1107_v3, 0.0  ;;  %v1186_v26 = vrot.slane %v1185_v48, 2 }
 0x13d   : > { %v1210_v59 = vadd.f32 %v1209_v1, %v1168_v5  ;;  %v1226_v50 = vadd.f32 %v1154_v27, %v1146_v4  ;;  %v1235_v8 = vadd.f32 %v1155_v45, %v1147_v12  ;;  %v1176_v7 = vadd.f32 %v1175_v28, %v1174_v6 }
 0x13e   : > { %v1219_v2 = vadd.f32 %v1218_v42, %v1169_v0  ;;  %v1187_v3 = vadd.f32 %v1186_v26, %v1185_v48 }
 0x13f   : > { %v1211_v22 = vrot.slane %v1210_v59, 4  ;;  %v1227_v1 = vadd.f32 %v1226_v50, %v1162_v15  ;;  %v1236_v49 = vadd.f32 %v1235_v8, %v1163_v19  ;;  %v1177_v4 = vrot.slane %v1176_v7, 2 }
 0x140   : > { %v1220_v36 = vrot.slane %v1219_v2, 4  ;;  %v1188_v28 = vrot.slane %v1187_v3, 1 }
 0x141   : > { %v1212_v38 = vadd.f32 %v1211_v22, %v1210_v59  ;;  %v1178_v8 = vadd.f32 %v1177_v4, %v1176_v7  ;;  %v1283_v7 = vmul.f32 %v2454_v32, %v2367_v57 }
 0x142   : > { %v1221_v55 = vadd.f32 %v1220_v36, %v1219_v2  ;;  %v852_v9 = vpop.f32.mrf.mxu2  ;;  %v2748_v43 = vpop.f32.mrf.mxu0 }
 0x143   : > { %v1213_v5 = vrot.slane %v1212_v38, 2  ;;  %v1170_v58 = vmul.f32 %v2741_v11, %v852_v9  ;;  %v917_v53 = vpop.f32.mrf.mxu3  ;;  %v2751_v20 = vpop.f32.mrf.mxu1 }
 0x144   : > { %v1222_v42 = vrot.slane %v1221_v55, 2  ;;  %v1171_v0 = vmul.f32 %v2746_v41, %v917_v53 }
 0x145   : > { %v1228_v27 = vadd.f32 %v1227_v1, %v1170_v58  ;;  %v1214_v59 = vadd.f32 %v1213_v5, %v1212_v38  ;;  %v1284_v1 = vmul.f32 %v2458_v62, %v2369_v60  ;;  %v1275_v62 = vmul.f32 %v2452_v31, %v2353_v35 }
 0x146   : > { %v1223_v45 = vadd.f32 %v1222_v42, %v1221_v55  ;;  %v1237_v2 = vadd.f32 %v1236_v49, %v1171_v0  ;;  %v1189_v55 = vadd.f32 %v1188_v28, %v1187_v3  ;;  %v1179_v0 = vrot.slane %v1178_v8, 1 }
 0x147   : > { %v1229_v22 = vrot.slane %v1228_v27, 4  ;;  %v1215_v12 = vrot.slane %v1214_v59, 1  ;;  %v1292_v3 = vmul.f32 %v2482_v18, %v2383_v14 }
 0x148   : > { %v1238_v6 = vrot.slane %v1237_v2, 4  ;;  %v1224_v36 = vrot.slane %v1223_v45, 1  ;;  %v1252_v60 = vrot.slane %v1189_v55, 7  ;;  %v1180_v57 = vadd.f32 %v1179_v0, %v1178_v8 }
 0x149   : > { %v1230_v15 = vadd.f32 %v1229_v22, %v1228_v27  ;;  %v1216_v58 = vadd.f32 %v1215_v12, %v1214_v59  ;;  %v1276_v27 = vmul.f32 %v2456_v61, %v2356_v30  ;;  %v1300_v30 = vmul.f32 %v2503_v47, %v2419_v56 }
 0x14a   : > { %v1239_v50 = vadd.f32 %v1238_v6, %v1237_v2  ;;  %v2754_v9 = vpop.f32.mrf.mxu2  ;;  %v728_v19 = vpop.f32.mrf.mxu0  ;;  %v1225_v49 = vadd.f32 %v1224_v36, %v1223_v45  ;;  %v1307_v12 = vadd.f32 %v1283_v7, %v1275_v62  ;;  %v1260_v31 = vsel %vm1259_vm2, %v1180_v57, %v1252_v60 }
 0x14b   : > { %v1231_v53 = vrot.slane %v1230_v15, 2  ;;  %v2757_v48 = vpop.f32.mrf.mxu3  ;;  %v793_v26 = vpop.f32.mrf.mxu1  ;;  %v1316_v59 = vadd.f32 %v1284_v1, %v1276_v27  ;;  %v1255_v61 = vrot.slane %v1216_v58, 4  ;;  %v1291_v56 = vmul.f32 %v2480_v40, %v2379_v10 }
 0x14c   : > { %v1240_v38 = vrot.slane %v1239_v50, 2  ;;  %v1256_v22 = vrot.slane %v1225_v49, 3  ;;  %v1287_v47 = vmul.f32 %v2685_v44, %v728_v19  ;;  %v1264_v55 = vsel %vm1263_vm3, %v1260_v31, %v2392_v34 }
 0x14d   : > { %v1232_v5 = vadd.f32 %v1231_v53, %v1230_v15  ;;  %v1317_v36 = vadd.f32 %v1316_v59, %v1292_v3  ;;  %v1279_v40 = vmul.f32 %v2679_v51, %v2748_v43  ;;  %v1299_v1 = vmul.f32 %v2501_v25, %v2410_v17 }
 0x14e   : > { %v1241_v42 = vadd.f32 %v1240_v38, %v1239_v50  ;;  %v1266_v8 = vsel %vm1265_vm4, %v1255_v61, %v1256_v22  ;;  %v1288_v38 = vmul.f32 %v2690_v23, %v793_v26  ;;  %v1280_v58 = vmul.f32 %v2692_v21, %v2751_v20 }
 0x14f   : > { %v1233_v2 = vrot.slane %v1232_v5, 1  ;;  %v1318_v50 = vadd.f32 %v1317_v36, %v1300_v30  ;;  %v1343_v49 = vadd.f32 %v1287_v47, %v1279_v40  ;;  %v1308_v34 = vadd.f32 %v1307_v12, %v1291_v56 }
 0x150   : > { %v1242_v4 = vrot.slane %v1241_v42, 1  ;;  %v1352_v0 = vadd.f32 %v1288_v38, %v1280_v58  ;;  %v1281_v61 = vmul.f32 %v2723_v24, %v2754_v9  ;;  %v1282_v57 = vmul.f32 %v2725_v13, %v2757_v48 }
 0x151   : > { %v1234_v45 = vadd.f32 %v1233_v2, %v1232_v5  ;;  %v1309_v17 = vadd.f32 %v1308_v34, %v1299_v1 }
 0x152   : > { %v1243_v6 = vadd.f32 %v1242_v4, %v1241_v42  ;;  %v858_v28 = vpop.f32.mrf.mxu2  ;;  %v731_v15 = vpop.f32.mrf.mxu0  ;;  %v1319_v42 = vrot.slane %v1318_v50, 4 }
 0x153   : > { %v1257_v32 = vrot.slane %v1234_v45, 2  ;;  %v923_v14 = vpop.f32.mrf.mxu3  ;;  %v796_v18 = vpop.f32.mrf.mxu1  ;;  %v1295_v19 = vmul.f32 %v2694_v33, %v731_v15  ;;  %v1289_v20 = vmul.f32 %v2719_v16, %v858_v28  ;;  %v1310_v15 = vrot.slane %v1309_v17, 4 }
 0x154   : > { %v1258_v35 = vrot.slane %v1243_v6, 1  ;;  %v1296_v26 = vmul.f32 %v2697_v37, %v796_v18  ;;  %v1320_v59 = vadd.f32 %v1319_v42, %v1318_v50  ;;  %v1290_v45 = vmul.f32 %v2727_v54, %v923_v14 }
 0x155   : > { %v1344_v43 = vadd.f32 %v1343_v49, %v1295_v19  ;;  %v1361_v12 = vadd.f32 %v1289_v20, %v1281_v61  ;;  %v1311_v38 = vadd.f32 %v1310_v15, %v1309_v17 }
 0x156   : > { %v1268_v53 = vsel %vm1267_vm5, %v1257_v32, %v1258_v35  ;;  %v1353_v25 = vadd.f32 %v1352_v0, %v1296_v26  ;;  %v1321_v36 = vrot.slane %v1320_v59, 2  ;;  %v1370_v35 = vadd.f32 %v1290_v45, %v1282_v57 }
 0x157   : > { %v1270_v10 = vsel %vm1269_vm6, %v1266_v8, %v1268_v53  ;;  %v1312_v49 = vrot.slane %v1311_v38, 2 }
 0x158   : > { %v1272_v5 = vsel %vm1271_vm7, %v1264_v55, %v1270_v10  ;;  %v1322_v19 = vadd.f32 %v1321_v36, %v1320_v59 }
 0x159   : > { %1274 = vst [vmem:[%s2783_s13] ss:$4 sm:$0xff] %v1272_v5 }
 0x15a   : > { %v861_v27 = vpop.f32.mrf.mxu2  ;;  %v734_v2 = vpop.f32.mrf.mxu0  ;;  %v1323_v0 = vrot.slane %v1322_v19, 1 }
 0x15b   : > { %v926_v7 = vpop.f32.mrf.mxu3  ;;  %v1303_v3 = vmul.f32 %v2703_v52, %v734_v2  ;;  %v799_v4 = vpop.f32.mrf.mxu1  ;;  %v1297_v22 = vmul.f32 %v2729_v29, %v861_v27 }
 0x15c   : > { %v1304_v60 = vmul.f32 %v2714_v46, %v799_v4  ;;  %v1298_v32 = vmul.f32 %v2732_v39, %v926_v7  ;;  %v1324_v59 = vadd.f32 %v1323_v0, %v1322_v19 }
 0x15d   : > { %v1345_v62 = vadd.f32 %v1344_v43, %v1303_v3  ;;  %v1362_v47 = vadd.f32 %v1361_v12, %v1297_v22 }
 0x15e   : > { %v1354_v30 = vadd.f32 %v1353_v25, %v1304_v60  ;;  %v1371_v55 = vadd.f32 %v1370_v35, %v1298_v32  ;;  %v1313_v60 = vadd.f32 %v1312_v49, %v1311_v38  ;;  %v1387_v32 = vrot.slane %v1324_v59, 7 }
 0x15f   : > { %v1346_v6 = vrot.slane %v1345_v62, 4 }
 0x160   : > { %v1355_v18 = vrot.slane %v1354_v30, 4 }
 0x161   : > { %v1347_v28 = vadd.f32 %v1346_v6, %v1345_v62  ;;  %v1314_v6 = vrot.slane %v1313_v60, 1 }
 0x162   : > { %v1356_v31 = vadd.f32 %v1355_v18, %v1354_v30  ;;  %v864_v14 = vpop.f32.mrf.mxu2  ;;  %v737_v56 = vpop.f32.mrf.mxu0 }
 0x163   : > { %v1348_v50 = vrot.slane %v1347_v28, 2  ;;  %v1305_v9 = vmul.f32 %v2741_v11, %v864_v14  ;;  %v929_v8 = vpop.f32.mrf.mxu3  ;;  %v802_v53 = vpop.f32.mrf.mxu1 }
 0x164   : > { %v1357_v10 = vrot.slane %v1356_v31, 2  ;;  %v1306_v48 = vmul.f32 %v2746_v41, %v929_v8  ;;  %v1409_v49 = vmul.f32 %v2692_v21, %v802_v53 }
 0x165   : > { %v1363_v40 = vadd.f32 %v1362_v47, %v1305_v9  ;;  %v1349_v1 = vadd.f32 %v1348_v50, %v1347_v28  ;;  %v1315_v50 = vadd.f32 %v1314_v6, %v1313_v60 }
 0x166   : > { %v1358_v5 = vadd.f32 %v1357_v10, %v1356_v31  ;;  %v1372_v58 = vadd.f32 %v1371_v55, %v1306_v48 }
 0x167   : > { %v1364_v26 = vrot.slane %v1363_v40, 4  ;;  %v1350_v27 = vrot.slane %v1349_v1, 1  ;;  %v1394_v38 = vsel %vm1259_vm2, %v1315_v50, %v1387_v32 }
 0x168   : > { %v1373_v34 = vrot.slane %v1372_v58, 4  ;;  %v1359_v2 = vrot.slane %v1358_v5, 1 }
 0x169   : > { %v1365_v42 = vadd.f32 %v1364_v26, %v1363_v40  ;;  %v1351_v45 = vadd.f32 %v1350_v27, %v1349_v1  ;;  %v2875_v40 = vld [vmem:[#allocation2_spill] sm:$0xff] }
 0x16a   : > { %v1374_v43 = vadd.f32 %v1373_v34, %v1372_v58  ;;  %v867_v7 = vpop.f32.mrf.mxu2  ;;  %v740_v3 = vpop.f32.mrf.mxu0  ;;  %v1360_v30 = vadd.f32 %v1359_v2, %v1358_v5  ;;  %v1396_v19 = vsel %vm1263_vm3, %v1394_v38, %v2875_v40  ;;  %v1408_v5 = vmul.f32 %v2679_v51, %v737_v56 }
 0x16b   : > { %v1366_v4 = vrot.slane %v1365_v42, 2  ;;  %v932_v17 = vpop.f32.mrf.mxu3  ;;  %v805_v25 = vpop.f32.mrf.mxu1  ;;  %v1390_v18 = vrot.slane %v1351_v45, 4  ;;  %v1416_v8 = vmul.f32 %v2685_v44, %v740_v3  ;;  %v1410_v45 = vmul.f32 %v2723_v24, %v867_v7 }
 0x16c   : > { %v1375_v20 = vrot.slane %v1374_v43, 2  ;;  %v1391_v12 = vrot.slane %v1360_v30, 3  ;;  %v1417_v48 = vmul.f32 %v2690_v23, %v805_v25 }
 0x16d   : > { %v1367_v62 = vadd.f32 %v1366_v4, %v1365_v42  ;;  %v1472_v42 = vadd.f32 %v1416_v8, %v1408_v5 }
 0x16e   : > { %v1376_v61 = vadd.f32 %v1375_v20, %v1374_v43  ;;  %v1397_v55 = vsel %vm1265_vm4, %v1390_v18, %v1391_v12  ;;  %v1481_v0 = vadd.f32 %v1417_v48, %v1409_v49 }
 0x16f   : > { %v1368_v22 = vrot.slane %v1367_v62, 1 }
 0x170   : > { %v1377_v15 = vrot.slane %v1376_v61, 1 }
 0x171   : > { %v1369_v57 = vadd.f32 %v1368_v22, %v1367_v62  ;;  %v1411_v22 = vmul.f32 %v2725_v13, %v932_v17 }
 0x172   : > { %v1378_v28 = vadd.f32 %v1377_v15, %v1376_v61  ;;  %v870_v36 = vpop.f32.mrf.mxu2  ;;  %v743_v35 = vpop.f32.mrf.mxu0 }
 0x173   : > { %v1392_v31 = vrot.slane %v1369_v57, 2  ;;  %v935_v14 = vpop.f32.mrf.mxu3  ;;  %v808_v47 = vpop.f32.mrf.mxu1  ;;  %v1424_v58 = vmul.f32 %v2694_v33, %v743_v35  ;;  %v1418_v20 = vmul.f32 %v2719_v16, %v870_v36 }
 0x174   : > { %v1393_v9 = vrot.slane %v1378_v28, 1  ;;  %v1425_v34 = vmul.f32 %v2697_v37, %v808_v47  ;;  %v1419_v53 = vmul.f32 %v2727_v54, %v935_v14 }
 0x175   : > { %v1473_v43 = vadd.f32 %v1472_v42, %v1424_v58  ;;  %v1490_v57 = vadd.f32 %v1418_v20, %v1410_v45 }
 0x176   : > { %v1398_v10 = vsel %vm1267_vm5, %v1392_v31, %v1393_v9  ;;  %v1482_v60 = vadd.f32 %v1481_v0, %v1425_v34  ;;  %v1499_v18 = vadd.f32 %v1419_v53, %v1411_v22 }
 0x177   : > { %v1399_v1 = vsel %vm1269_vm6, %v1397_v55, %v1398_v10 }
 0x178   : > { %v1400_v26 = vsel %vm1271_vm7, %v1396_v19, %v1399_v1 }
 0x179   : > { %1846 = vst [vmem:[%s2783_s13 + $0x1] ss:$4 sm:$0xff] %v1400_v26 }
 0x17a   : > { %v873_v27 = vpop.f32.mrf.mxu2  ;;  %v746_v2 = vpop.f32.mrf.mxu0 }
 0x17b   : > { %v938_v3 = vpop.f32.mrf.mxu3  ;;  %v1432_v4 = vmul.f32 %v2703_v52, %v746_v2  ;;  %v811_v25 = vpop.f32.mrf.mxu1  ;;  %v1426_v30 = vmul.f32 %v2729_v29, %v873_v27 }
 0x17c   : > { %v1433_v56 = vmul.f32 %v2714_v46, %v811_v25  ;;  %v1427_v6 = vmul.f32 %v2732_v39, %v938_v3 }
 0x17d   : > { %v1474_v62 = vadd.f32 %v1473_v43, %v1432_v4  ;;  %v1491_v35 = vadd.f32 %v1490_v57, %v1426_v30 }
 0x17e   : > { %v1483_v59 = vadd.f32 %v1482_v60, %v1433_v56  ;;  %v1500_v50 = vadd.f32 %v1499_v18, %v1427_v6 }
 0x17f   : > { %v1475_v61 = vrot.slane %v1474_v62, 4 }
 0x180   : > { %v1484_v15 = vrot.slane %v1483_v59, 4 }
 0x181   : > { %v1476_v32 = vadd.f32 %v1475_v61, %v1474_v62 }
 0x182   : > { %v1485_v12 = vadd.f32 %v1484_v15, %v1483_v59  ;;  %v876_v28 = vpop.f32.mrf.mxu2  ;;  %v749_v36 = vpop.f32.mrf.mxu0 }
 0x183   : > { %v1477_v31 = vrot.slane %v1476_v32, 2  ;;  %v1434_v14 = vmul.f32 %v2741_v11, %v876_v28  ;;  %v941_v47 = vpop.f32.mrf.mxu3  ;;  %v814_v7 = vpop.f32.mrf.mxu1  ;;  %v1537_v28 = vmul.f32 %v2679_v51, %v749_v36 }
 0x184   : > { %v1486_v9 = vrot.slane %v1485_v12, 2  ;;  %v1435_v8 = vmul.f32 %v2746_v41, %v941_v47  ;;  %v1538_v47 = vmul.f32 %v2692_v21, %v814_v7 }
 0x185   : > { %v1492_v17 = vadd.f32 %v1491_v35, %v1434_v14  ;;  %v1478_v38 = vadd.f32 %v1477_v31, %v1476_v32  ;;  %v2876_v31 = vld [vmem:[#allocation3_spill] sm:$0xff] }
 0x186   : > { %v1487_v55 = vadd.f32 %v1486_v9, %v1485_v12  ;;  %v1501_v10 = vadd.f32 %v1500_v50, %v1435_v8 }
 0x187   : > { %v1493_v48 = vrot.slane %v1492_v17, 4  ;;  %v1479_v1 = vrot.slane %v1478_v38, 1 }
 0x188   : > { %v1502_v40 = vrot.slane %v1501_v10, 4  ;;  %v1488_v5 = vrot.slane %v1487_v55, 1 }
 0x189   : > { %v1494_v19 = vadd.f32 %v1493_v48, %v1492_v17  ;;  %v1480_v43 = vadd.f32 %v1479_v1, %v1478_v38 }
 0x18a   : > { %v1503_v58 = vadd.f32 %v1502_v40, %v1501_v10  ;;  %v879_v26 = vpop.f32.mrf.mxu2  ;;  %v752_v49 = vpop.f32.mrf.mxu0  ;;  %v1489_v3 = vadd.f32 %v1488_v5, %v1487_v55 }
 0x18b   : > { %v1495_v34 = vrot.slane %v1494_v19, 2  ;;  %v944_v42 = vpop.f32.mrf.mxu3  ;;  %v817_v0 = vpop.f32.mrf.mxu1  ;;  %v1519_v20 = vrot.slane %v1480_v43, 4  ;;  %v1545_v15 = vmul.f32 %v2685_v44, %v752_v49 }
 0x18c   : > { %v1504_v27 = vrot.slane %v1503_v58, 2  ;;  %v1520_v62 = vrot.slane %v1489_v3, 3  ;;  %v1546_v18 = vmul.f32 %v2690_v23, %v817_v0  ;;  %v1540_v1 = vmul.f32 %v2725_v13, %v944_v42 }
 0x18d   : > { %v1496_v2 = vadd.f32 %v1495_v34, %v1494_v19  ;;  %v1601_v44 = vadd.f32 %v1545_v15, %v1537_v28 }
 0x18e   : > { %v1505_v4 = vadd.f32 %v1504_v27, %v1503_v58  ;;  %v1526_v57 = vsel %vm1265_vm4, %v1519_v20, %v1520_v62  ;;  %v1610_v9 = vadd.f32 %v1546_v18, %v1538_v47 }
 0x18f   : > { %v1497_v25 = vrot.slane %v1496_v2, 1 }
 0x190   : > { %v1506_v60 = vrot.slane %v1505_v4, 1 }
 0x191   : > { %v1498_v56 = vadd.f32 %v1497_v25, %v1496_v2 }
 0x192   : > { %v1507_v53 = vadd.f32 %v1506_v60, %v1505_v4  ;;  %v882_v59 = vpop.f32.mrf.mxu2  ;;  %v755_v45 = vpop.f32.mrf.mxu0 }
 0x193   : > { %v1521_v30 = vrot.slane %v1498_v56, 2  ;;  %v947_v61 = vpop.f32.mrf.mxu3  ;;  %v820_v22 = vpop.f32.mrf.mxu1  ;;  %v1553_v35 = vmul.f32 %v2694_v33, %v755_v45  ;;  %v1547_v36 = vmul.f32 %v2719_v16, %v882_v59 }
 0x194   : > { %v1522_v6 = vrot.slane %v1507_v53, 1  ;;  %v1554_v50 = vmul.f32 %v2697_v37, %v820_v22  ;;  %v1548_v21 = vmul.f32 %v2727_v54, %v947_v61  ;;  %v1539_v37 = vmul.f32 %v2723_v24, %v879_v26 }
 0x195   : > { %v1602_v38 = vadd.f32 %v1601_v44, %v1553_v35 }
 0x196   : > { %v1527_v32 = vsel %vm1267_vm5, %v1521_v30, %v1522_v6  ;;  %v1611_v51 = vadd.f32 %v1610_v9, %v1554_v50  ;;  %v1619_v58 = vadd.f32 %v1547_v36, %v1539_v37  ;;  %v1628_v34 = vadd.f32 %v1548_v21, %v1540_v1 }
 0x197   : > { %v1528_v12 = vsel %vm1269_vm6, %v1526_v57, %v1527_v32 }
 0x198   : > { %v1529_v14 = vsel %vm1271_vm7, %v2876_v31, %v1528_v12 }
 0x199   : > { %1847 = vst [vmem:[%s2783_s13 + $0x2] ss:$4 sm:$0xff] %v1529_v14 }
 0x19a   : > { %v885_v8 = vpop.f32.mrf.mxu2  ;;  %v758_v17 = vpop.f32.mrf.mxu0 }
 0x19b   : > { %v950_v23 = vpop.f32.mrf.mxu3  ;;  %v1561_v55 = vmul.f32 %v2703_v52, %v758_v17  ;;  %v823_v10 = vpop.f32.mrf.mxu1  ;;  %v1555_v40 = vmul.f32 %v2729_v29, %v885_v8 }
 0x19c   : > { %v1562_v33 = vmul.f32 %v2714_v46, %v823_v10  ;;  %v1556_v5 = vmul.f32 %v2732_v39, %v950_v23 }
 0x19d   : > { %v1603_v48 = vadd.f32 %v1602_v38, %v1561_v55  ;;  %v1620_v16 = vadd.f32 %v1619_v58, %v1555_v40 }
 0x19e   : > { %v1612_v7 = vadd.f32 %v1611_v51, %v1562_v33  ;;  %v1629_v43 = vadd.f32 %v1628_v34, %v1556_v5 }
 0x19f   : > { %v1604_v19 = vrot.slane %v1603_v48, 4 }
 0x1a0   : > { %v1613_v52 = vrot.slane %v1612_v7, 4 }
 0x1a1   : > { %v1605_v49 = vadd.f32 %v1604_v19, %v1603_v48 }
 0x1a2   : > { %v1614_v46 = vadd.f32 %v1613_v52, %v1612_v7  ;;  %v888_v0 = vpop.f32.mrf.mxu2 }
 0x1a3   : > { %v1606_v27 = vrot.slane %v1605_v49, 2  ;;  %v1563_v54 = vmul.f32 %v2741_v11, %v888_v0  ;;  %v953_v2 = vpop.f32.mrf.mxu3 }
 0x1a4   : > { %v1615_v24 = vrot.slane %v1614_v46, 2  ;;  %v1564_v29 = vmul.f32 %v2746_v41, %v953_v2 }
 0x1a5   : > { %v1621_v26 = vadd.f32 %v1620_v16, %v1563_v54  ;;  %v1607_v3 = vadd.f32 %v1606_v27, %v1605_v49 }
 0x1a6   : > { %v1616_v13 = vadd.f32 %v1615_v24, %v1614_v46  ;;  %v1630_v42 = vadd.f32 %v1629_v43, %v1564_v29 }
 0x1a7   : > { %v1622_v39 = vrot.slane %v1621_v26, 4  ;;  %v1608_v60 = vrot.slane %v1607_v3, 1 }
 0x1a8   : > { %v1631_v4 = vrot.slane %v1630_v42, 4  ;;  %v1617_v56 = vrot.slane %v1616_v13, 1 }
 0x1a9   : > { %v1623_v25 = vadd.f32 %v1622_v39, %v1621_v26  ;;  %v1609_v11 = vadd.f32 %v1608_v60, %v1607_v3 }
 0x1aa   : > { %v1632_v20 = vadd.f32 %v1631_v4, %v1630_v42  ;;  %v1618_v45 = vadd.f32 %v1617_v56, %v1616_v13 }
 0x1ab   : > { %v1624_v62 = vrot.slane %v1623_v25, 2  ;;  %v1648_v6 = vrot.slane %v1609_v11, 4 }
 0x1ac   : > { %v1633_v53 = vrot.slane %v1632_v20, 2  ;;  %v1649_v15 = vrot.slane %v1618_v45, 3 }
 0x1ad   : > { %v1625_v59 = vadd.f32 %v1624_v62, %v1623_v25 }
 0x1ae   : > { %v1634_v30 = vadd.f32 %v1633_v53, %v1632_v20  ;;  %v1655_v12 = vsel %vm1265_vm4, %v1648_v6, %v1649_v15 }
 0x1af   : > { %v1626_v61 = vrot.slane %v1625_v59, 1 }
 0x1b0   : > { %v1635_v22 = vrot.slane %v1634_v30, 1 }
 0x1b1   : > { %v1627_v41 = vadd.f32 %v1626_v61, %v1625_v59 }
 0x1b2   : > { %v1636_v57 = vadd.f32 %v1635_v22, %v1634_v30 }
 0x1b3   : > { %v1650_v32 = vrot.slane %v1627_v41, 2 }
 0x1b4   : > { %v1651_v18 = vrot.slane %v1636_v57, 1 }
 0x1b6   : > { %v1656_v28 = vsel %vm1267_vm5, %v1650_v32, %v1651_v18 }
 0x1b7   : > { %v1657_v35 = vsel %vm1269_vm6, %v1655_v12, %v1656_v28 }
 0x1b8   : > { %v1658_v31 = vsel %vm1271_vm7, %v2706_v63, %v1657_v35 }
 0x1b9   : > { %1848 = vst [vmem:[%s2783_s13 + $0x3] ss:$4 sm:$0xff] %v1658_v31 }
 0x1ba PF: > { %s14_s15 = sadd.s32 1, %s1868_s15  }
 0x1bb   : > { %p11_p4 = scmp.ge.s32.totalorder %s14_s15, 4  }
 0x1bd   :  { %13 = sbr.rel (!%p11_p4) target bundleno = 1 (0x1), region = 68 }

</bundles_post_ra>
